<compile_context>
chip_gen: v6e
topology: v6e:2x2x1
jax: 0.10.0
libtpu: 0.0.40
codegen_flags: <defaults>
</compile_context>

<pallas_src>
import functools

import jax
import jax.numpy as jnp
from jax import lax
from jax.experimental import pallas as pl
from jax.experimental.pallas import tpu as pltpu


def _round_up(x, m):
    return (x + m - 1) // m * m


def _pick_time_chunk(t, max_chunk=32):
    tc = min(t, max_chunk)
    while t % tc:
        tc -= 1
    return tc


def _vmem_capacity_bytes():
    try:
        return int(pltpu.get_tpu_info().vmem_capacity_bytes)
    except Exception:  # be robust if the query is unavailable
        return 128 << 20


def _pick_batch_tile(B, T, Ep, Hp, Vp):
    budget = max(_vmem_capacity_bytes() // 4, 8 << 20)
    tc = _pick_time_chunk(T)

    def per_tile_bytes(bt):
        return (2 * T * bt * Ep * 2      # x block (bf16, double-buffered)
                + 2 * T * bt * Vp * 4    # out block (f32, double-buffered)
                + T * bt * Hp * 2        # act scratch (bf16)
                + tc * bt * 4 * Hp * 4   # xproj chunk scratch (f32)
                + bt * Hp * (2 + 4))     # h (bf16) + c (f32) state

    bt = min(_round_up(B, 8), 256)
    while bt > 8 and per_tile_bytes(bt) > budget:
        bt -= 8
    return bt


def _vmem_limit_bytes(T, Bt, TC, Ep, Hp, Vp, weight_bytes):
    est = (2 * T * Bt * Ep * 2
           + 2 * T * Bt * Vp * 4
           + 2 * weight_bytes
           + TC * Bt * 4 * Hp * 4
           + T * Bt * Hp * 2
           + Bt * Hp * (2 + 4))
    cap = _vmem_capacity_bytes()
    # 2x headroom for matmul intermediates / spills, floor at the default
    # scoped limit, ceiling just under physical VMEM of this chip.
    return int(min(max(2 * est, 32 << 20), cap - (8 << 20)))


# ----------------------------------------------------------------------------
# Fused kernel (one batch tile): embedded x -> LSTM stack -> FC, VMEM-resident.
# Gate order follows PyTorch: i, f, g, o (each gate padded to Hp columns).
# ----------------------------------------------------------------------------
def _fused_lstm_fc_kernel(*refs, num_layers, seq_len, chunk_len, batch_tile,
                          hidden_p, unroll):
    x_ref = refs[0]
    layers = [refs[1 + 3 * l: 4 + 3 * l] for l in range(num_layers)]
    fc_w_ref = refs[1 + 3 * num_layers]
    fc_b_ref = refs[2 + 3 * num_layers]
    out_ref = refs[3 + 3 * num_layers]
    xproj_scr = refs[4 + 3 * num_layers]   # (TC*Bt, 4*Hp) f32   x-proj chunk
    act_scr = refs[5 + 3 * num_layers]     # (T*Bt, Hp)   bf16   layer outputs
    h_scr = refs[6 + 3 * num_layers]       # (Bt, Hp)     bf16   h state
    c_scr = refs[7 + 3 * num_layers]       # (Bt, Hp)     f32    c state

    Hp, Bt, TC = hidden_p, batch_tile, chunk_len
    n_chunks = seq_len // TC

    for l, (wih_ref, whh_ref, b_ref) in enumerate(layers):
        inp_ref = x_ref if l == 0 else act_scr
        wih = wih_ref[...]          # (Ein, 4*Hp) bf16
        whh = whh_ref[...]          # (Hp, 4*Hp)  bf16
        b = b_ref[...]              # (1, 4*Hp)   f32 (b_ih + b_hh folded)

        h_scr[...] = jnp.zeros_like(h_scr)
        c_scr[...] = jnp.zeros_like(c_scr)

        def chunk_body(ck, carry, inp_ref=inp_ref, wih=wih, whh=whh, b=b):
            row0 = pl.multiple_of(ck * (TC * Bt), TC * Bt)
            # (1) Input projection for TC time steps as one MXU matmul
            #     (reads the chunk before this layer overwrites act_scr).
            xin = inp_ref[pl.ds(row0, TC * Bt), :]
            xproj_scr[...] = (
                jnp.dot(xin, wih, preferred_element_type=jnp.float32) + b)

            # (2) Serial recurrence over the chunk (bounded unroll).
            def step(s, carry2, whh=whh, row0=row0):
                r = pl.multiple_of(s * Bt, Bt)
                h_prev = h_scr[...]
                c_prev = c_scr[...]
                gates = (xproj_scr[pl.ds(r, Bt), :]
                         + jnp.dot(h_prev, whh,
                                   preferred_element_type=jnp.float32))
                # 128-aligned lane slices (Hp is a multiple of 128).
                i_g = jax.nn.sigmoid(gates[:, 0 * Hp:1 * Hp])
                f_g = jax.nn.sigmoid(gates[:, 1 * Hp:2 * Hp])
                g_g = jnp.tanh(gates[:, 2 * Hp:3 * Hp])
                o_g = jax.nn.sigmoid(gates[:, 3 * Hp:4 * Hp])
                c_new = f_g * c_prev + i_g * g_g          # f32
                h_new = o_g * jnp.tanh(c_new)             # f32
                h_bf = h_new.astype(act_scr.dtype)        # store bf16
                c_scr[...] = c_new
                h_scr[...] = h_bf
                rw = pl.multiple_of(row0 + r, Bt)
                act_scr[pl.ds(rw, Bt), :] = h_bf
                return carry2

            return lax.fori_loop(0, TC, step, carry, unroll=unroll)

        lax.fori_loop(0, n_chunks, chunk_body, 0)

    # (3) Final FC over all T*Bt positions of this tile; Vp is lane-dense.
    out_ref[...] = (
        jnp.dot(act_scr[...], fc_w_ref[...],
                preferred_element_type=jnp.float32) + fc_b_ref[...])


# ----------------------------------------------------------------------------
# Forward pass wrapper. Embedding gather / pad / layout are XLA glue.
# ----------------------------------------------------------------------------
def shakespeare_lstm_forward(tokens, kparams, vocab_size):
    B, T = tokens.shape

    emb_p = kparams["embedding_p"]                      # (V, Ep) bf16
    Ep = emb_p.shape[1]
    Hp = kparams["lstm"][0]["whh_t"].shape[0]
    Vp = kparams["fc_w_t"].shape[1]
    num_layers = len(kparams["lstm"])

    Bt = _pick_batch_tile(B, T, Ep, Hp, Vp)
    Bp = _round_up(B, Bt)
    nb = Bp // Bt
    TC = _pick_time_chunk(T)
    unroll = min(8, TC)

    # Embedding lookup (row 0 == padding_idx is zero). Lay the data out as
    # (batch_tile, time, row_in_tile) so each grid step gets one contiguous
    # time-major slab of T*Bt rows.
    x = jnp.take(emb_p, tokens.T, axis=0)               # (T, B, Ep) bf16
    x = jnp.pad(x, ((0, 0), (0, Bp - B), (0, 0)))
    x = x.reshape(T, nb, Bt, Ep).transpose(1, 0, 2, 3)  # (nb, T, Bt, Ep)
    x2d = x.reshape(nb * T * Bt, Ep)

    flat = [x2d]
    weight_bytes = 0
    for lp in kparams["lstm"]:
        flat += [lp["wih_t"], lp["whh_t"], lp["b"]]
    flat += [kparams["fc_w_t"], kparams["fc_b"]]
    for a in flat[1:]:
        weight_bytes += a.size * a.dtype.itemsize

    in_specs = [pl.BlockSpec((T * Bt, Ep), lambda i: (i, 0))]
    for a in flat[1:]:
        in_specs.append(pl.BlockSpec(a.shape, lambda i: (0, 0)))
    out_spec = pl.BlockSpec((T * Bt, Vp), lambda i: (i, 0))

    kernel = functools.partial(
        _fused_lstm_fc_kernel, num_layers=num_layers, seq_len=T,
        chunk_len=TC, batch_tile=Bt, hidden_p=Hp, unroll=unroll)

    out2d = pl.pallas_call(
        kernel,
        out_shape=jax.ShapeDtypeStruct((nb * T * Bt, Vp), jnp.float32),
        grid=(nb,),
        in_specs=in_specs,
        out_specs=out_spec,
        scratch_shapes=[
            pltpu.VMEM((TC * Bt, 4 * Hp), jnp.float32),  # x-proj chunk
            pltpu.VMEM((T * Bt, Hp), jnp.bfloat16),      # layer h outputs
            pltpu.VMEM((Bt, Hp), jnp.bfloat16),          # h state
            pltpu.VMEM((Bt, Hp), jnp.float32),           # c state (f32)
        ],
        compiler_params=pltpu.CompilerParams(
            dimension_semantics=("parallel",),
            vmem_limit_bytes=_vmem_limit_bytes(T, Bt, TC, Ep, Hp, Vp,
                                               weight_bytes)),
    )(*flat)

    # Undo tiling, strip batch / vocab padding, return batch-first logits.
    out = out2d.reshape(nb, T, Bt, Vp).transpose(1, 0, 2, 3)
    out = out.reshape(T, Bp, Vp)[:, :B, :vocab_size]
    return jnp.transpose(out, (1, 0, 2))                 # (B, T, V)


shakespeare_lstm_forward_jit = jax.jit(shakespeare_lstm_forward,
                                       static_argnums=(2,))


# ----------------------------------------------------------------------------
# Parameter construction (PyTorch-layout "raw" params) and kernel packing
# (transpose, fold b_ih+b_hh, pad per-gate blocks to 128 lanes, bf16 weights).
# ----------------------------------------------------------------------------
def init_raw_params(key, vocab_size, embed_size, hidden_size, num_layers):
    keys = jax.random.split(key, 1 + 4 * num_layers + 2)
    k = iter(keys)

    # nn.Embedding(vocab, embed, padding_idx=0): N(0,1), row 0 zeroed.
    emb = jax.random.normal(next(k), (vocab_size, embed_size), jnp.float32)
    emb = emb.at[0].set(0.0)

    bound = 1.0 / jnp.sqrt(hidden_size)
    lstm = []
    for layer in range(num_layers):
        in_size = embed_size if layer == 0 else hidden_size
        wih = jax.random.uniform(next(k), (4 * hidden_size, in_size),
                                 jnp.float32, -bound, bound)
        whh = jax.random.uniform(next(k), (4 * hidden_size, hidden_size),
                                 jnp.float32, -bound, bound)
        bih = jax.random.uniform(next(k), (4 * hidden_size,),
                                 jnp.float32, -bound, bound)
        bhh = jax.random.uniform(next(k), (4 * hidden_size,),
                                 jnp.float32, -bound, bound)
        lstm.append(dict(wih=wih, whh=whh, bih=bih, bhh=bhh))

    fc_w = jax.random.uniform(next(k), (vocab_size, hidden_size),
                              jnp.float32, -bound, bound)
    fc_b = jax.random.uniform(next(k), (vocab_size,),
                              jnp.float32, -bound, bound)
    return dict(embedding=emb, lstm=lstm, fc_w=fc_w, fc_b=fc_b)


def pack_kernel_params(raw, embed_size, hidden_size, vocab_size):
    Ep = _round_up(embed_size, 128)
    Hp = _round_up(hidden_size, 128)
    Vp = _round_up(vocab_size, 128)
    H = hidden_size

    def pad_gate_w(w, in_size, in_pad):
        # (4H, in) -> (in_pad, 4*Hp) with per-gate 128-aligned column blocks.
        # Zero padding keeps padded hidden lanes exactly zero in the kernel.
        w4 = w.reshape(4, H, in_size)
        w4 = jnp.pad(w4, ((0, 0), (0, Hp - H), (0, in_pad - in_size)))
        return jnp.transpose(w4, (2, 0, 1)).reshape(in_pad, 4 * Hp)

    def pad_gate_b(b):
        b4 = b.reshape(4, H)
        b4 = jnp.pad(b4, ((0, 0), (0, Hp - H)))
        return b4.reshape(1, 4 * Hp)

    emb_p = jnp.pad(raw["embedding"],
                    ((0, 0), (0, Ep - embed_size))).astype(jnp.bfloat16)

    lstm = []
    for layer, p in enumerate(raw["lstm"]):
        in_size = embed_size if layer == 0 else hidden_size
        in_pad = Ep if layer == 0 else Hp
        lstm.append(dict(
            wih_t=pad_gate_w(p["wih"], in_size, in_pad).astype(jnp.bfloat16),
            whh_t=pad_gate_w(p["whh"], hidden_size, Hp).astype(jnp.bfloat16),
            b=pad_gate_b(p["bih"] + p["bhh"]),            # folded, stays f32
        ))

    fc_w_t = jnp.pad(raw["fc_w"].T,
                     ((0, Hp - H), (0, Vp - vocab_size))).astype(jnp.bfloat16)
    fc_b = jnp.pad(raw["fc_b"], (0, Vp - vocab_size)).reshape(1, Vp)

    return dict(embedding_p=emb_p, lstm=lstm, fc_w_t=fc_w_t, fc_b=fc_b)


# ----------------------------------------------------------------------------
# Pure-JAX f32 reference (lax.scan, unpadded params) for a correctness check.
# ----------------------------------------------------------------------------
def reference_forward(tokens, raw):
    emb = jnp.take(raw["embedding"], tokens, axis=0)        # (B, T, E)
    x = jnp.transpose(emb, (1, 0, 2)).astype(jnp.float32)   # (T, B, E)
    B = x.shape[1]

    for p in raw["lstm"]:
        H = p["whh"].shape[1]
        wih_t, whh_t = p["wih"].T, p["whh"].T
        b = p["bih"] + p["bhh"]

        def step(carry, x_t, wih_t=wih_t, whh_t=whh_t, b=b, H=H):
            h, c = carry
            gates = (jnp.dot(x_t, wih_t, precision=lax.Precision.HIGHEST)
                     + jnp.dot(h, whh_t, precision=lax.Precision.HIGHEST) + b)
            i_g = jax.nn.sigmoid(gates[:, 0 * H:1 * H])
            f_g = jax.nn.sigmoid(gates[:, 1 * H:2 * H])
            g_g = jnp.tanh(gates[:, 2 * H:3 * H])
            o_g = jax.nn.sigmoid(gates[:, 3 * H:4 * H])
            c = f_g * c + i_g * g_g
            h = o_g * jnp.tanh(c)
            return (h, c), h

        init = (jnp.zeros((B, H), jnp.float32), jnp.zeros((B, H), jnp.float32))
        _, x = lax.scan(step, init, x)

    out = jnp.transpose(x, (1, 0, 2))                       # (B, T, H)
    return (jnp.dot(out, raw["fc_w"].T, precision=lax.Precision.HIGHEST)
            + raw["fc_b"])


if __name__ == "__main__":
    VOCAB, EMBED, HIDDEN, LAYERS = 90, 32, 64, 2
    B, T = 2, 8

    key = jax.random.PRNGKey(0)
    k_par, k_tok = jax.random.split(key)

    raw = init_raw_params(k_par, VOCAB, EMBED, HIDDEN, LAYERS)
    kparams = pack_kernel_params(raw, EMBED, HIDDEN, VOCAB)
    tokens = jax.random.randint(k_tok, (B, T), 0, VOCAB, dtype=jnp.int32)

    logits = shakespeare_lstm_forward_jit(tokens, kparams, VOCAB)
    logits = jax.block_until_ready(logits)

    assert logits.shape == (B, T, VOCAB), logits.shape
    ref = reference_forward(tokens, raw)
    max_err = float(jnp.max(jnp.abs(logits - ref)))
    # bf16 weights/embeddings/h-activations (f32 accumulation, f32 c-state):
    # expected max abs error a few 1e-3; assert with headroom.
    assert max_err < 5e-2, max_err

    print("KERNEL_OK")
</pallas_src>

<mosaic_0001>
module attributes {stable_mosaic.version = 11 : i64} {
  func.func @_fused_lstm_fc_kernel(%arg0: i32, %arg1: memref<64x128xbf16, #tpu.memory_space<vmem>>, %arg2: memref<128x512xbf16, #tpu.memory_space<vmem>>, %arg3: memref<128x512xbf16, #tpu.memory_space<vmem>>, %arg4: memref<1x512xf32, #tpu.memory_space<vmem>>, %arg5: memref<128x512xbf16, #tpu.memory_space<vmem>>, %arg6: memref<128x512xbf16, #tpu.memory_space<vmem>>, %arg7: memref<1x512xf32, #tpu.memory_space<vmem>>, %arg8: memref<128x128xbf16, #tpu.memory_space<vmem>>, %arg9: memref<1x128xf32, #tpu.memory_space<vmem>>, %arg10: memref<64x128xf32, #tpu.memory_space<vmem>>, %arg11: memref<64x512xf32, #tpu.memory_space<vmem>>, %arg12: memref<64x128xbf16, #tpu.memory_space<vmem>>, %arg13: memref<8x128xbf16, #tpu.memory_space<vmem>>, %arg14: memref<8x128xf32, #tpu.memory_space<vmem>>) attributes {dimension_semantics = [#tpu.dimension_semantics<parallel>], iteration_bounds = array<i64: 1>, scalar_prefetch = 0 : i64, scratch_operands = 4 : i64, tpu.core_type = #tpu.core_type<tc>, window_params = [{transform_indices = @transform_0, window_bounds = array<i64: 64, 128>}, {pipeline_mode = #tpu.pipeline_mode<synchronous>, transform_indices = @transform_1, window_bounds = array<i64: 128, 512>}, {pipeline_mode = #tpu.pipeline_mode<synchronous>, transform_indices = @transform_2, window_bounds = array<i64: 128, 512>}, {pipeline_mode = #tpu.pipeline_mode<synchronous>, transform_indices = @transform_3, window_bounds = array<i64: 1, 512>}, {pipeline_mode = #tpu.pipeline_mode<synchronous>, transform_indices = @transform_4, window_bounds = array<i64: 128, 512>}, {pipeline_mode = #tpu.pipeline_mode<synchronous>, transform_indices = @transform_5, window_bounds = array<i64: 128, 512>}, {pipeline_mode = #tpu.pipeline_mode<synchronous>, transform_indices = @transform_6, window_bounds = array<i64: 1, 512>}, {pipeline_mode = #tpu.pipeline_mode<synchronous>, transform_indices = @transform_7, window_bounds = array<i64: 128, 128>}, {pipeline_mode = #tpu.pipeline_mode<synchronous>, transform_indices = @transform_8, window_bounds = array<i64: 1, 128>}, {transform_indices = @transform_9, window_bounds = array<i64: 64, 128>}]} {
    %c0 = arith.constant 0 : index
    %c0_0 = arith.constant 0 : index
    %0 = vector.load %arg2[%c0, %c0_0] : memref<128x512xbf16, #tpu.memory_space<vmem>>, vector<128x512xbf16>
    %c0_1 = arith.constant 0 : index
    %c0_2 = arith.constant 0 : index
    %1 = vector.load %arg3[%c0_1, %c0_2] : memref<128x512xbf16, #tpu.memory_space<vmem>>, vector<128x512xbf16>
    %c0_3 = arith.constant 0 : index
    %c0_4 = arith.constant 0 : index
    %2 = vector.load %arg4[%c0_3, %c0_4] : memref<1x512xf32, #tpu.memory_space<vmem>>, vector<1x512xf32>
    %cst = arith.constant 0.000000e+00 : bf16
    %3 = vector.broadcast %cst : bf16 to vector<8x128xbf16>
    %c0_5 = arith.constant 0 : index
    %c0_6 = arith.constant 0 : index
    %4 = vector.load %arg13[%c0_5, %c0_6] : memref<8x128xbf16, #tpu.memory_space<vmem>>, vector<8x128xbf16>
    tpu.vector_store %arg13[%c0_5, %c0_6], %3 {strides = array<i32>} : memref<8x128xbf16, #tpu.memory_space<vmem>>, vector<8x128xbf16>,
    %cst_7 = arith.constant 0.000000e+00 : f32
    %5 = vector.broadcast %cst_7 : f32 to vector<8x128xf32>
    %c0_8 = arith.constant 0 : index
    %c0_9 = arith.constant 0 : index
    %6 = vector.load %arg14[%c0_8, %c0_9] : memref<8x128xf32, #tpu.memory_space<vmem>>, vector<8x128xf32>
    tpu.vector_store %arg14[%c0_8, %c0_9], %5 {strides = array<i32>} : memref<8x128xf32, #tpu.memory_space<vmem>>, vector<8x128xf32>,
    %c0_i32 = arith.constant 0 : i32
    %c64_i32 = arith.constant 64 : i32
    %7 = arith.muli %c0_i32, %c64_i32 : i32
    %8 = tpu.assume_multiple %7, 64 : i32
    %9 = arith.index_cast %8 : i32 to index
    %c0_10 = arith.constant 0 : index
    %10 = vector.load %arg1[%9, %c0_10] : memref<64x128xbf16, #tpu.memory_space<vmem>>, vector<64x128xbf16>
    %cst_11 = arith.constant dense<0.000000e+00> : vector<64x512xf32>
    %11 = tpu.matmul %10, %0, %cst_11 {dimension_numbers = #tpu.dot_dimension_numbers<[1], [0], [0], [1], [0, 0, 1, 1], [], []>} : vector<64x128xbf16>, vector<128x512xbf16>, vector<64x512xf32> -> vector<64x512xf32>
    %12 = vector.broadcast %2 : vector<1x512xf32> to vector<64x512xf32>
    %13 = arith.addf %11, %12 : vector<64x512xf32>
    %c0_12 = arith.constant 0 : index
    %c0_13 = arith.constant 0 : index
    %14 = vector.load %arg11[%c0_12, %c0_13] : memref<64x512xf32, #tpu.memory_space<vmem>>, vector<64x512xf32>
    tpu.vector_store %arg11[%c0_12, %c0_13], %13 {strides = array<i32>} : memref<64x512xf32, #tpu.memory_space<vmem>>, vector<64x512xf32>,
    %c0_i32_14 = arith.constant 0 : i32
    %c8_i32 = arith.constant 8 : i32
    %15 = arith.muli %c0_i32_14, %c8_i32 : i32
    %16 = tpu.assume_multiple %15, 8 : i32
    %c0_15 = arith.constant 0 : index
    %c0_16 = arith.constant 0 : index
    %17 = vector.load %arg13[%c0_15, %c0_16] : memref<8x128xbf16, #tpu.memory_space<vmem>>, vector<8x128xbf16>
    %c0_17 = arith.constant 0 : index
    %c0_18 = arith.constant 0 : index
    %18 = vector.load %arg14[%c0_17, %c0_18] : memref<8x128xf32, #tpu.memory_space<vmem>>, vector<8x128xf32>
    %19 = arith.index_cast %16 : i32 to index
    %c0_19 = arith.constant 0 : index
    %20 = vector.load %arg11[%19, %c0_19] : memref<64x512xf32, #tpu.memory_space<vmem>>, vector<8x512xf32>
    %cst_20 = arith.constant dense<0.000000e+00> : vector<8x512xf32>
    %21 = tpu.matmul %17, %1, %cst_20 {dimension_numbers = #tpu.dot_dimension_numbers<[1], [0], [0], [1], [0, 0, 1, 1], [], []>} : vector<8x128xbf16>, vector<128x512xbf16>, vector<8x512xf32> -> vector<8x512xf32>
    %22 = arith.addf %20, %21 : vector<8x512xf32>
    %23 = vector.extract_strided_slice %22 {offsets = [0, 0], sizes = [8, 128], strides = [1, 1]} : vector<8x512xf32> to vector<8x128xf32>
    %24 = arith.negf %23 : vector<8x128xf32>
    %25 = math.exp %24 : vector<8x128xf32>
    %cst_21 = arith.constant 1.000000e+00 : f32
    %26 = vector.broadcast %cst_21 : f32 to vector<8x128xf32>
    %27 = arith.addf %26, %25 : vector<8x128xf32>
    %28 = arith.divf %26, %27 : vector<8x128xf32>
    %29 = vector.extract_strided_slice %22 {offsets = [0, 128], sizes = [8, 128], strides = [1, 1]} : vector<8x512xf32> to vector<8x128xf32>
    %30 = arith.negf %29 : vector<8x128xf32>
    %31 = math.exp %30 : vector<8x128xf32>
    %cst_22 = arith.constant 1.000000e+00 : f32
    %32 = vector.broadcast %cst_22 : f32 to vector<8x128xf32>
    %33 = arith.addf %32, %31 : vector<8x128xf32>
    %34 = arith.divf %32, %33 : vector<8x128xf32>
    %35 = vector.extract_strided_slice %22 {offsets = [0, 256], sizes = [8, 128], strides = [1, 1]} : vector<8x512xf32> to vector<8x128xf32>
    %36 = math.tanh %35 : vector<8x128xf32>
    %37 = vector.extract_strided_slice %22 {offsets = [0, 384], sizes = [8, 128], strides = [1, 1]} : vector<8x512xf32> to vector<8x128xf32>
    %38 = arith.negf %37 : vector<8x128xf32>
    %39 = math.exp %38 : vector<8x128xf32>
    %cst_23 = arith.constant 1.000000e+00 : f32
    %40 = vector.broadcast %cst_23 : f32 to vector<8x128xf32>
    %41 = arith.addf %40, %39 : vector<8x128xf32>
    %42 = arith.divf %40, %41 : vector<8x128xf32>
    %43 = arith.mulf %34, %18 : vector<8x128xf32>
    %44 = arith.mulf %28, %36 : vector<8x128xf32>
    %45 = arith.addf %43, %44 : vector<8x128xf32>
    %46 = math.tanh %45 : vector<8x128xf32>
    %47 = arith.mulf %42, %46 : vector<8x128xf32>
    %48 = arith.truncf %47 : vector<8x128xf32> to vector<8x128xbf16>
    %c0_24 = arith.constant 0 : index
    %c0_25 = arith.constant 0 : index
    %49 = vector.load %arg14[%c0_24, %c0_25] : memref<8x128xf32, #tpu.memory_space<vmem>>, vector<8x128xf32>
    tpu.vector_store %arg14[%c0_24, %c0_25], %45 {strides = array<i32>} : memref<8x128xf32, #tpu.memory_space<vmem>>, vector<8x128xf32>,
    %c0_26 = arith.constant 0 : index
    %c0_27 = arith.constant 0 : index
    %50 = vector.load %arg13[%c0_26, %c0_27] : memref<8x128xbf16, #tpu.memory_space<vmem>>, vector<8x128xbf16>
    tpu.vector_store %arg13[%c0_26, %c0_27], %48 {strides = array<i32>} : memref<8x128xbf16, #tpu.memory_space<vmem>>, vector<8x128xbf16>,
    %51 = arith.addi %8, %16 : i32
    %52 = tpu.assume_multiple %51, 8 : i32
    %53 = arith.index_cast %52 : i32 to index
    %c0_28 = arith.constant 0 : index
    %54 = vector.load %arg12[%53, %c0_28] : memref<64x128xbf16, #tpu.memory_space<vmem>>, vector<8x128xbf16>
    tpu.vector_store %arg12[%53, %c0_28], %48 {strides = array<i32>} : memref<64x128xbf16, #tpu.memory_space<vmem>>, vector<8x128xbf16>,
    %c1_i32 = arith.constant 1 : i32
    %c8_i32_29 = arith.constant 8 : i32
    %55 = arith.muli %c1_i32, %c8_i32_29 : i32
    %56 = tpu.assume_multiple %55, 8 : i32
    %c0_30 = arith.constant 0 : index
    %c0_31 = arith.constant 0 : index
    %57 = vector.load %arg13[%c0_30, %c0_31] : memref<8x128xbf16, #tpu.memory_space<vmem>>, vector<8x128xbf16>
    %c0_32 = arith.constant 0 : index
    %c0_33 = arith.constant 0 : index
    %58 = vector.load %arg14[%c0_32, %c0_33] : memref<8x128xf32, #tpu.memory_space<vmem>>, vector<8x128xf32>
    %59 = arith.index_cast %56 : i32 to index
    %c0_34 = arith.constant 0 : index
    %60 = vector.load %arg11[%59, %c0_34] : memref<64x512xf32, #tpu.memory_space<vmem>>, vector<8x512xf32>
    %cst_35 = arith.constant dense<0.000000e+00> : vector<8x512xf32>
    %61 = tpu.matmul %57, %1, %cst_35 {dimension_numbers = #tpu.dot_dimension_numbers<[1], [0], [0], [1], [0, 0, 1, 1], [], []>} : vector<8x128xbf16>, vector<128x512xbf16>, vector<8x512xf32> -> vector<8x512xf32>
    %62 = arith.addf %60, %61 : vector<8x512xf32>
    %63 = vector.extract_strided_slice %62 {offsets = [0, 0], sizes = [8, 128], strides = [1, 1]} : vector<8x512xf32> to vector<8x128xf32>
    %64 = arith.negf %63 : vector<8x128xf32>
    %65 = math.exp %64 : vector<8x128xf32>
    %cst_36 = arith.constant 1.000000e+00 : f32
    %66 = vector.broadcast %cst_36 : f32 to vector<8x128xf32>
    %67 = arith.addf %66, %65 : vector<8x128xf32>
    %68 = arith.divf %66, %67 : vector<8x128xf32>
    %69 = vector.extract_strided_slice %62 {offsets = [0, 128], sizes = [8, 128], strides = [1, 1]} : vector<8x512xf32> to vector<8x128xf32>
    %70 = arith.negf %69 : vector<8x128xf32>
    %71 = math.exp %70 : vector<8x128xf32>
    %cst_37 = arith.constant 1.000000e+00 : f32
    %72 = vector.broadcast %cst_37 : f32 to vector<8x128xf32>
    %73 = arith.addf %72, %71 : vector<8x128xf32>
    %74 = arith.divf %72, %73 : vector<8x128xf32>
    %75 = vector.extract_strided_slice %62 {offsets = [0, 256], sizes = [8, 128], strides = [1, 1]} : vector<8x512xf32> to vector<8x128xf32>
    %76 = math.tanh %75 : vector<8x128xf32>
    %77 = vector.extract_strided_slice %62 {offsets = [0, 384], sizes = [8, 128], strides = [1, 1]} : vector<8x512xf32> to vector<8x128xf32>
    %78 = arith.negf %77 : vector<8x128xf32>
    %79 = math.exp %78 : vector<8x128xf32>
    %cst_38 = arith.constant 1.000000e+00 : f32
    %80 = vector.broadcast %cst_38 : f32 to vector<8x128xf32>
    %81 = arith.addf %80, %79 : vector<8x128xf32>
    %82 = arith.divf %80, %81 : vector<8x128xf32>
    %83 = arith.mulf %74, %58 : vector<8x128xf32>
    %84 = arith.mulf %68, %76 : vector<8x128xf32>
    %85 = arith.addf %83, %84 : vector<8x128xf32>
    %86 = math.tanh %85 : vector<8x128xf32>
    %87 = arith.mulf %82, %86 : vector<8x128xf32>
    %88 = arith.truncf %87 : vector<8x128xf32> to vector<8x128xbf16>
    %c0_39 = arith.constant 0 : index
    %c0_40 = arith.constant 0 : index
    %89 = vector.load %arg14[%c0_39, %c0_40] : memref<8x128xf32, #tpu.memory_space<vmem>>, vector<8x128xf32>
    tpu.vector_store %arg14[%c0_39, %c0_40], %85 {strides = array<i32>} : memref<8x128xf32, #tpu.memory_space<vmem>>, vector<8x128xf32>,
    %c0_41 = arith.constant 0 : index
    %c0_42 = arith.constant 0 : index
    %90 = vector.load %arg13[%c0_41, %c0_42] : memref<8x128xbf16, #tpu.memory_space<vmem>>, vector<8x128xbf16>
    tpu.vector_store %arg13[%c0_41, %c0_42], %88 {strides = array<i32>} : memref<8x128xbf16, #tpu.memory_space<vmem>>, vector<8x128xbf16>,
    %91 = arith.addi %8, %56 : i32
    %92 = tpu.assume_multiple %91, 8 : i32
    %93 = arith.index_cast %92 : i32 to index
    %c0_43 = arith.constant 0 : index
    %94 = vector.load %arg12[%93, %c0_43] : memref<64x128xbf16, #tpu.memory_space<vmem>>, vector<8x128xbf16>
    tpu.vector_store %arg12[%93, %c0_43], %88 {strides = array<i32>} : memref<64x128xbf16, #tpu.memory_space<vmem>>, vector<8x128xbf16>,
    %c2_i32 = arith.constant 2 : i32
    %c8_i32_44 = arith.constant 8 : i32
    %95 = arith.muli %c2_i32, %c8_i32_44 : i32
    %96 = tpu.assume_multiple %95, 8 : i32
    %c0_45 = arith.constant 0 : index
    %c0_46 = arith.constant 0 : index
    %97 = vector.load %arg13[%c0_45, %c0_46] : memref<8x128xbf16, #tpu.memory_space<vmem>>, vector<8x128xbf16>
    %c0_47 = arith.constant 0 : index
    %c0_48 = arith.constant 0 : index
    %98 = vector.load %arg14[%c0_47, %c0_48] : memref<8x128xf32, #tpu.memory_space<vmem>>, vector<8x128xf32>
    %99 = arith.index_cast %96 : i32 to index
    %c0_49 = arith.constant 0 : index
    %100 = vector.load %arg11[%99, %c0_49] : memref<64x512xf32, #tpu.memory_space<vmem>>, vector<8x512xf32>
    %cst_50 = arith.constant dense<0.000000e+00> : vector<8x512xf32>
    %101 = tpu.matmul %97, %1, %cst_50 {dimension_numbers = #tpu.dot_dimension_numbers<[1], [0], [0], [1], [0, 0, 1, 1], [], []>} : vector<8x128xbf16>, vector<128x512xbf16>, vector<8x512xf32> -> vector<8x512xf32>
    %102 = arith.addf %100, %101 : vector<8x512xf32>
    %103 = vector.extract_strided_slice %102 {offsets = [0, 0], sizes = [8, 128], strides = [1, 1]} : vector<8x512xf32> to vector<8x128xf32>
    %104 = arith.negf %103 : vector<8x128xf32>
    %105 = math.exp %104 : vector<8x128xf32>
    %cst_51 = arith.constant 1.000000e+00 : f32
    %106 = vector.broadcast %cst_51 : f32 to vector<8x128xf32>
    %107 = arith.addf %106, %105 : vector<8x128xf32>
    %108 = arith.divf %106, %107 : vector<8x128xf32>
    %109 = vector.extract_strided_slice %102 {offsets = [0, 128], sizes = [8, 128], strides = [1, 1]} : vector<8x512xf32> to vector<8x128xf32>
    %110 = arith.negf %109 : vector<8x128xf32>
    %111 = math.exp %110 : vector<8x128xf32>
    %cst_52 = arith.constant 1.000000e+00 : f32
    %112 = vector.broadcast %cst_52 : f32 to vector<8x128xf32>
    %113 = arith.addf %112, %111 : vector<8x128xf32>
    %114 = arith.divf %112, %113 : vector<8x128xf32>
    %115 = vector.extract_strided_slice %102 {offsets = [0, 256], sizes = [8, 128], strides = [1, 1]} : vector<8x512xf32> to vector<8x128xf32>
    %116 = math.tanh %115 : vector<8x128xf32>
    %117 = vector.extract_strided_slice %102 {offsets = [0, 384], sizes = [8, 128], strides = [1, 1]} : vector<8x512xf32> to vector<8x128xf32>
    %118 = arith.negf %117 : vector<8x128xf32>
    %119 = math.exp %118 : vector<8x128xf32>
    %cst_53 = arith.constant 1.000000e+00 : f32
    %120 = vector.broadcast %cst_53 : f32 to vector<8x128xf32>
    %121 = arith.addf %120, %119 : vector<8x128xf32>
    %122 = arith.divf %120, %121 : vector<8x128xf32>
    %123 = arith.mulf %114, %98 : vector<8x128xf32>
    %124 = arith.mulf %108, %116 : vector<8x128xf32>
    %125 = arith.addf %123, %124 : vector<8x128xf32>
    %126 = math.tanh %125 : vector<8x128xf32>
    %127 = arith.mulf %122, %126 : vector<8x128xf32>
    %128 = arith.truncf %127 : vector<8x128xf32> to vector<8x128xbf16>
    %c0_54 = arith.constant 0 : index
    %c0_55 = arith.constant 0 : index
    %129 = vector.load %arg14[%c0_54, %c0_55] : memref<8x128xf32, #tpu.memory_space<vmem>>, vector<8x128xf32>
    tpu.vector_store %arg14[%c0_54, %c0_55], %125 {strides = array<i32>} : memref<8x128xf32, #tpu.memory_space<vmem>>, vector<8x128xf32>,
    %c0_56 = arith.constant 0 : index
    %c0_57 = arith.constant 0 : index
    %130 = vector.load %arg13[%c0_56, %c0_57] : memref<8x128xbf16, #tpu.memory_space<vmem>>, vector<8x128xbf16>
    tpu.vector_store %arg13[%c0_56, %c0_57], %128 {strides = array<i32>} : memref<8x128xbf16, #tpu.memory_space<vmem>>, vector<8x128xbf16>,
    %131 = arith.addi %8, %96 : i32
    %132 = tpu.assume_multiple %131, 8 : i32
    %133 = arith.index_cast %132 : i32 to index
    %c0_58 = arith.constant 0 : index
    %134 = vector.load %arg12[%133, %c0_58] : memref<64x128xbf16, #tpu.memory_space<vmem>>, vector<8x128xbf16>
    tpu.vector_store %arg12[%133, %c0_58], %128 {strides = array<i32>} : memref<64x128xbf16, #tpu.memory_space<vmem>>, vector<8x128xbf16>,
    %c3_i32 = arith.constant 3 : i32
    %c8_i32_59 = arith.constant 8 : i32
    %135 = arith.muli %c3_i32, %c8_i32_59 : i32
    %136 = tpu.assume_multiple %135, 8 : i32
    %c0_60 = arith.constant 0 : index
    %c0_61 = arith.constant 0 : index
    %137 = vector.load %arg13[%c0_60, %c0_61] : memref<8x128xbf16, #tpu.memory_space<vmem>>, vector<8x128xbf16>
    %c0_62 = arith.constant 0 : index
    %c0_63 = arith.constant 0 : index
    %138 = vector.load %arg14[%c0_62, %c0_63] : memref<8x128xf32, #tpu.memory_space<vmem>>, vector<8x128xf32>
    %139 = arith.index_cast %136 : i32 to index
    %c0_64 = arith.constant 0 : index
    %140 = vector.load %arg11[%139, %c0_64] : memref<64x512xf32, #tpu.memory_space<vmem>>, vector<8x512xf32>
    %cst_65 = arith.constant dense<0.000000e+00> : vector<8x512xf32>
    %141 = tpu.matmul %137, %1, %cst_65 {dimension_numbers = #tpu.dot_dimension_numbers<[1], [0], [0], [1], [0, 0, 1, 1], [], []>} : vector<8x128xbf16>, vector<128x512xbf16>, vector<8x512xf32> -> vector<8x512xf32>
    %142 = arith.addf %140, %141 : vector<8x512xf32>
    %143 = vector.extract_strided_slice %142 {offsets = [0, 0], sizes = [8, 128], strides = [1, 1]} : vector<8x512xf32> to vector<8x128xf32>
    %144 = arith.negf %143 : vector<8x128xf32>
    %145 = math.exp %144 : vector<8x128xf32>
    %cst_66 = arith.constant 1.000000e+00 : f32
    %146 = vector.broadcast %cst_66 : f32 to vector<8x128xf32>
    %147 = arith.addf %146, %145 : vector<8x128xf32>
    %148 = arith.divf %146, %147 : vector<8x128xf32>
    %149 = vector.extract_strided_slice %142 {offsets = [0, 128], sizes = [8, 128], strides = [1, 1]} : vector<8x512xf32> to vector<8x128xf32>
    %150 = arith.negf %149 : vector<8x128xf32>
    %151 = math.exp %150 : vector<8x128xf32>
    %cst_67 = arith.constant 1.000000e+00 : f32
    %152 = vector.broadcast %cst_67 : f32 to vector<8x128xf32>
    %153 = arith.addf %152, %151 : vector<8x128xf32>
    %154 = arith.divf %152, %153 : vector<8x128xf32>
    %155 = vector.extract_strided_slice %142 {offsets = [0, 256], sizes = [8, 128], strides = [1, 1]} : vector<8x512xf32> to vector<8x128xf32>
    %156 = math.tanh %155 : vector<8x128xf32>
    %157 = vector.extract_strided_slice %142 {offsets = [0, 384], sizes = [8, 128], strides = [1, 1]} : vector<8x512xf32> to vector<8x128xf32>
    %158 = arith.negf %157 : vector<8x128xf32>
    %159 = math.exp %158 : vector<8x128xf32>
    %cst_68 = arith.constant 1.000000e+00 : f32
    %160 = vector.broadcast %cst_68 : f32 to vector<8x128xf32>
    %161 = arith.addf %160, %159 : vector<8x128xf32>
    %162 = arith.divf %160, %161 : vector<8x128xf32>
    %163 = arith.mulf %154, %138 : vector<8x128xf32>
    %164 = arith.mulf %148, %156 : vector<8x128xf32>
    %165 = arith.addf %163, %164 : vector<8x128xf32>
    %166 = math.tanh %165 : vector<8x128xf32>
    %167 = arith.mulf %162, %166 : vector<8x128xf32>
    %168 = arith.truncf %167 : vector<8x128xf32> to vector<8x128xbf16>
    %c0_69 = arith.constant 0 : index
    %c0_70 = arith.constant 0 : index
    %169 = vector.load %arg14[%c0_69, %c0_70] : memref<8x128xf32, #tpu.memory_space<vmem>>, vector<8x128xf32>
    tpu.vector_store %arg14[%c0_69, %c0_70], %165 {strides = array<i32>} : memref<8x128xf32, #tpu.memory_space<vmem>>, vector<8x128xf32>,
    %c0_71 = arith.constant 0 : index
    %c0_72 = arith.constant 0 : index
    %170 = vector.load %arg13[%c0_71, %c0_72] : memref<8x128xbf16, #tpu.memory_space<vmem>>, vector<8x128xbf16>
    tpu.vector_store %arg13[%c0_71, %c0_72], %168 {strides = array<i32>} : memref<8x128xbf16, #tpu.memory_space<vmem>>, vector<8x128xbf16>,
    %171 = arith.addi %8, %136 : i32
    %172 = tpu.assume_multiple %171, 8 : i32
    %173 = arith.index_cast %172 : i32 to index
    %c0_73 = arith.constant 0 : index
    %174 = vector.load %arg12[%173, %c0_73] : memref<64x128xbf16, #tpu.memory_space<vmem>>, vector<8x128xbf16>
    tpu.vector_store %arg12[%173, %c0_73], %168 {strides = array<i32>} : memref<64x128xbf16, #tpu.memory_space<vmem>>, vector<8x128xbf16>,
    %c4_i32 = arith.constant 4 : i32
    %c8_i32_74 = arith.constant 8 : i32
    %175 = arith.muli %c4_i32, %c8_i32_74 : i32
    %176 = tpu.assume_multiple %175, 8 : i32
    %c0_75 = arith.constant 0 : index
    %c0_76 = arith.constant 0 : index
    %177 = vector.load %arg13[%c0_75, %c0_76] : memref<8x128xbf16, #tpu.memory_space<vmem>>, vector<8x128xbf16>
    %c0_77 = arith.constant 0 : index
    %c0_78 = arith.constant 0 : index
    %178 = vector.load %arg14[%c0_77, %c0_78] : memref<8x128xf32, #tpu.memory_space<vmem>>, vector<8x128xf32>
    %179 = arith.index_cast %176 : i32 to index
    %c0_79 = arith.constant 0 : index
    %180 = vector.load %arg11[%179, %c0_79] : memref<64x512xf32, #tpu.memory_space<vmem>>, vector<8x512xf32>
    %cst_80 = arith.constant dense<0.000000e+00> : vector<8x512xf32>
    %181 = tpu.matmul %177, %1, %cst_80 {dimension_numbers = #tpu.dot_dimension_numbers<[1], [0], [0], [1], [0, 0, 1, 1], [], []>} : vector<8x128xbf16>, vector<128x512xbf16>, vector<8x512xf32> -> vector<8x512xf32>
    %182 = arith.addf %180, %181 : vector<8x512xf32>
    %183 = vector.extract_strided_slice %182 {offsets = [0, 0], sizes = [8, 128], strides = [1, 1]} : vector<8x512xf32> to vector<8x128xf32>
    %184 = arith.negf %183 : vector<8x128xf32>
    %185 = math.exp %184 : vector<8x128xf32>
    %cst_81 = arith.constant 1.000000e+00 : f32
    %186 = vector.broadcast %cst_81 : f32 to vector<8x128xf32>
    %187 = arith.addf %186, %185 : vector<8x128xf32>
    %188 = arith.divf %186, %187 : vector<8x128xf32>
    %189 = vector.extract_strided_slice %182 {offsets = [0, 128], sizes = [8, 128], strides = [1, 1]} : vector<8x512xf32> to vector<8x128xf32>
    %190 = arith.negf %189 : vector<8x128xf32>
    %191 = math.exp %190 : vector<8x128xf32>
    %cst_82 = arith.constant 1.000000e+00 : f32
    %192 = vector.broadcast %cst_82 : f32 to vector<8x128xf32>
    %193 = arith.addf %192, %191 : vector<8x128xf32>
    %194 = arith.divf %192, %193 : vector<8x128xf32>
    %195 = vector.extract_strided_slice %182 {offsets = [0, 256], sizes = [8, 128], strides = [1, 1]} : vector<8x512xf32> to vector<8x128xf32>
    %196 = math.tanh %195 : vector<8x128xf32>
    %197 = vector.extract_strided_slice %182 {offsets = [0, 384], sizes = [8, 128], strides = [1, 1]} : vector<8x512xf32> to vector<8x128xf32>
    %198 = arith.negf %197 : vector<8x128xf32>
    %199 = math.exp %198 : vector<8x128xf32>
    %cst_83 = arith.constant 1.000000e+00 : f32
    %200 = vector.broadcast %cst_83 : f32 to vector<8x128xf32>
    %201 = arith.addf %200, %199 : vector<8x128xf32>
    %202 = arith.divf %200, %201 : vector<8x128xf32>
    %203 = arith.mulf %194, %178 : vector<8x128xf32>
    %204 = arith.mulf %188, %196 : vector<8x128xf32>
    %205 = arith.addf %203, %204 : vector<8x128xf32>
    %206 = math.tanh %205 : vector<8x128xf32>
    %207 = arith.mulf %202, %206 : vector<8x128xf32>
    %208 = arith.truncf %207 : vector<8x128xf32> to vector<8x128xbf16>
    %c0_84 = arith.constant 0 : index
    %c0_85 = arith.constant 0 : index
    %209 = vector.load %arg14[%c0_84, %c0_85] : memref<8x128xf32, #tpu.memory_space<vmem>>, vector<8x128xf32>
    tpu.vector_store %arg14[%c0_84, %c0_85], %205 {strides = array<i32>} : memref<8x128xf32, #tpu.memory_space<vmem>>, vector<8x128xf32>,
    %c0_86 = arith.constant 0 : index
    %c0_87 = arith.constant 0 : index
    %210 = vector.load %arg13[%c0_86, %c0_87] : memref<8x128xbf16, #tpu.memory_space<vmem>>, vector<8x128xbf16>
    tpu.vector_store %arg13[%c0_86, %c0_87], %208 {strides = array<i32>} : memref<8x128xbf16, #tpu.memory_space<vmem>>, vector<8x128xbf16>,
    %211 = arith.addi %8, %176 : i32
    %212 = tpu.assume_multiple %211, 8 : i32
    %213 = arith.index_cast %212 : i32 to index
    %c0_88 = arith.constant 0 : index
    %214 = vector.load %arg12[%213, %c0_88] : memref<64x128xbf16, #tpu.memory_space<vmem>>, vector<8x128xbf16>
    tpu.vector_store %arg12[%213, %c0_88], %208 {strides = array<i32>} : memref<64x128xbf16, #tpu.memory_space<vmem>>, vector<8x128xbf16>,
    %c5_i32 = arith.constant 5 : i32
    %c8_i32_89 = arith.constant 8 : i32
    %215 = arith.muli %c5_i32, %c8_i32_89 : i32
    %216 = tpu.assume_multiple %215, 8 : i32
    %c0_90 = arith.constant 0 : index
    %c0_91 = arith.constant 0 : index
    %217 = vector.load %arg13[%c0_90, %c0_91] : memref<8x128xbf16, #tpu.memory_space<vmem>>, vector<8x128xbf16>
    %c0_92 = arith.constant 0 : index
    %c0_93 = arith.constant 0 : index
    %218 = vector.load %arg14[%c0_92, %c0_93] : memref<8x128xf32, #tpu.memory_space<vmem>>, vector<8x128xf32>
    %219 = arith.index_cast %216 : i32 to index
    %c0_94 = arith.constant 0 : index
    %220 = vector.load %arg11[%219, %c0_94] : memref<64x512xf32, #tpu.memory_space<vmem>>, vector<8x512xf32>
    %cst_95 = arith.constant dense<0.000000e+00> : vector<8x512xf32>
    %221 = tpu.matmul %217, %1, %cst_95 {dimension_numbers = #tpu.dot_dimension_numbers<[1], [0], [0], [1], [0, 0, 1, 1], [], []>} : vector<8x128xbf16>, vector<128x512xbf16>, vector<8x512xf32> -> vector<8x512xf32>
    %222 = arith.addf %220, %221 : vector<8x512xf32>
    %223 = vector.extract_strided_slice %222 {offsets = [0, 0], sizes = [8, 128], strides = [1, 1]} : vector<8x512xf32> to vector<8x128xf32>
    %224 = arith.negf %223 : vector<8x128xf32>
    %225 = math.exp %224 : vector<8x128xf32>
    %cst_96 = arith.constant 1.000000e+00 : f32
    %226 = vector.broadcast %cst_96 : f32 to vector<8x128xf32>
    %227 = arith.addf %226, %225 : vector<8x128xf32>
    %228 = arith.divf %226, %227 : vector<8x128xf32>
    %229 = vector.extract_strided_slice %222 {offsets = [0, 128], sizes = [8, 128], strides = [1, 1]} : vector<8x512xf32> to vector<8x128xf32>
    %230 = arith.negf %229 : vector<8x128xf32>
    %231 = math.exp %230 : vector<8x128xf32>
    %cst_97 = arith.constant 1.000000e+00 : f32
    %232 = vector.broadcast %cst_97 : f32 to vector<8x128xf32>
    %233 = arith.addf %232, %231 : vector<8x128xf32>
    %234 = arith.divf %232, %233 : vector<8x128xf32>
    %235 = vector.extract_strided_slice %222 {offsets = [0, 256], sizes = [8, 128], strides = [1, 1]} : vector<8x512xf32> to vector<8x128xf32>
    %236 = math.tanh %235 : vector<8x128xf32>
    %237 = vector.extract_strided_slice %222 {offsets = [0, 384], sizes = [8, 128], strides = [1, 1]} : vector<8x512xf32> to vector<8x128xf32>
    %238 = arith.negf %237 : vector<8x128xf32>
    %239 = math.exp %238 : vector<8x128xf32>
    %cst_98 = arith.constant 1.000000e+00 : f32
    %240 = vector.broadcast %cst_98 : f32 to vector<8x128xf32>
    %241 = arith.addf %240, %239 : vector<8x128xf32>
    %242 = arith.divf %240, %241 : vector<8x128xf32>
    %243 = arith.mulf %234, %218 : vector<8x128xf32>
    %244 = arith.mulf %228, %236 : vector<8x128xf32>
    %245 = arith.addf %243, %244 : vector<8x128xf32>
    %246 = math.tanh %245 : vector<8x128xf32>
    %247 = arith.mulf %242, %246 : vector<8x128xf32>
    %248 = arith.truncf %247 : vector<8x128xf32> to vector<8x128xbf16>
    %c0_99 = arith.constant 0 : index
    %c0_100 = arith.constant 0 : index
    %249 = vector.load %arg14[%c0_99, %c0_100] : memref<8x128xf32, #tpu.memory_space<vmem>>, vector<8x128xf32>
    tpu.vector_store %arg14[%c0_99, %c0_100], %245 {strides = array<i32>} : memref<8x128xf32, #tpu.memory_space<vmem>>, vector<8x128xf32>,
    %c0_101 = arith.constant 0 : index
    %c0_102 = arith.constant 0 : index
    %250 = vector.load %arg13[%c0_101, %c0_102] : memref<8x128xbf16, #tpu.memory_space<vmem>>, vector<8x128xbf16>
    tpu.vector_store %arg13[%c0_101, %c0_102], %248 {strides = array<i32>} : memref<8x128xbf16, #tpu.memory_space<vmem>>, vector<8x128xbf16>,
    %251 = arith.addi %8, %216 : i32
    %252 = tpu.assume_multiple %251, 8 : i32
    %253 = arith.index_cast %252 : i32 to index
    %c0_103 = arith.constant 0 : index
    %254 = vector.load %arg12[%253, %c0_103] : memref<64x128xbf16, #tpu.memory_space<vmem>>, vector<8x128xbf16>
    tpu.vector_store %arg12[%253, %c0_103], %248 {strides = array<i32>} : memref<64x128xbf16, #tpu.memory_space<vmem>>, vector<8x128xbf16>,
    %c6_i32 = arith.constant 6 : i32
    %c8_i32_104 = arith.constant 8 : i32
    %255 = arith.muli %c6_i32, %c8_i32_104 : i32
    %256 = tpu.assume_multiple %255, 8 : i32
    %c0_105 = arith.constant 0 : index
    %c0_106 = arith.constant 0 : index
    %257 = vector.load %arg13[%c0_105, %c0_106] : memref<8x128xbf16, #tpu.memory_space<vmem>>, vector<8x128xbf16>
    %c0_107 = arith.constant 0 : index
    %c0_108 = arith.constant 0 : index
    %258 = vector.load %arg14[%c0_107, %c0_108] : memref<8x128xf32, #tpu.memory_space<vmem>>, vector<8x128xf32>
    %259 = arith.index_cast %256 : i32 to index
    %c0_109 = arith.constant 0 : index
    %260 = vector.load %arg11[%259, %c0_109] : memref<64x512xf32, #tpu.memory_space<vmem>>, vector<8x512xf32>
    %cst_110 = arith.constant dense<0.000000e+00> : vector<8x512xf32>
    %261 = tpu.matmul %257, %1, %cst_110 {dimension_numbers = #tpu.dot_dimension_numbers<[1], [0], [0], [1], [0, 0, 1, 1], [], []>} : vector<8x128xbf16>, vector<128x512xbf16>, vector<8x512xf32> -> vector<8x512xf32>
    %262 = arith.addf %260, %261 : vector<8x512xf32>
    %263 = vector.extract_strided_slice %262 {offsets = [0, 0], sizes = [8, 128], strides = [1, 1]} : vector<8x512xf32> to vector<8x128xf32>
    %264 = arith.negf %263 : vector<8x128xf32>
    %265 = math.exp %264 : vector<8x128xf32>
    %cst_111 = arith.constant 1.000000e+00 : f32
    %266 = vector.broadcast %cst_111 : f32 to vector<8x128xf32>
    %267 = arith.addf %266, %265 : vector<8x128xf32>
    %268 = arith.divf %266, %267 : vector<8x128xf32>
    %269 = vector.extract_strided_slice %262 {offsets = [0, 128], sizes = [8, 128], strides = [1, 1]} : vector<8x512xf32> to vector<8x128xf32>
    %270 = arith.negf %269 : vector<8x128xf32>
    %271 = math.exp %270 : vector<8x128xf32>
    %cst_112 = arith.constant 1.000000e+00 : f32
    %272 = vector.broadcast %cst_112 : f32 to vector<8x128xf32>
    %273 = arith.addf %272, %271 : vector<8x128xf32>
    %274 = arith.divf %272, %273 : vector<8x128xf32>
    %275 = vector.extract_strided_slice %262 {offsets = [0, 256], sizes = [8, 128], strides = [1, 1]} : vector<8x512xf32> to vector<8x128xf32>
    %276 = math.tanh %275 : vector<8x128xf32>
    %277 = vector.extract_strided_slice %262 {offsets = [0, 384], sizes = [8, 128], strides = [1, 1]} : vector<8x512xf32> to vector<8x128xf32>
    %278 = arith.negf %277 : vector<8x128xf32>
    %279 = math.exp %278 : vector<8x128xf32>
    %cst_113 = arith.constant 1.000000e+00 : f32
    %280 = vector.broadcast %cst_113 : f32 to vector<8x128xf32>
    %281 = arith.addf %280, %279 : vector<8x128xf32>
    %282 = arith.divf %280, %281 : vector<8x128xf32>
    %283 = arith.mulf %274, %258 : vector<8x128xf32>
    %284 = arith.mulf %268, %276 : vector<8x128xf32>
    %285 = arith.addf %283, %284 : vector<8x128xf32>
    %286 = math.tanh %285 : vector<8x128xf32>
    %287 = arith.mulf %282, %286 : vector<8x128xf32>
    %288 = arith.truncf %287 : vector<8x128xf32> to vector<8x128xbf16>
    %c0_114 = arith.constant 0 : index
    %c0_115 = arith.constant 0 : index
    %289 = vector.load %arg14[%c0_114, %c0_115] : memref<8x128xf32, #tpu.memory_space<vmem>>, vector<8x128xf32>
    tpu.vector_store %arg14[%c0_114, %c0_115], %285 {strides = array<i32>} : memref<8x128xf32, #tpu.memory_space<vmem>>, vector<8x128xf32>,
    %c0_116 = arith.constant 0 : index
    %c0_117 = arith.constant 0 : index
    %290 = vector.load %arg13[%c0_116, %c0_117] : memref<8x128xbf16, #tpu.memory_space<vmem>>, vector<8x128xbf16>
    tpu.vector_store %arg13[%c0_116, %c0_117], %288 {strides = array<i32>} : memref<8x128xbf16, #tpu.memory_space<vmem>>, vector<8x128xbf16>,
    %291 = arith.addi %8, %256 : i32
    %292 = tpu.assume_multiple %291, 8 : i32
    %293 = arith.index_cast %292 : i32 to index
    %c0_118 = arith.constant 0 : index
    %294 = vector.load %arg12[%293, %c0_118] : memref<64x128xbf16, #tpu.memory_space<vmem>>, vector<8x128xbf16>
    tpu.vector_store %arg12[%293, %c0_118], %288 {strides = array<i32>} : memref<64x128xbf16, #tpu.memory_space<vmem>>, vector<8x128xbf16>,
    %c7_i32 = arith.constant 7 : i32
    %c8_i32_119 = arith.constant 8 : i32
    %295 = arith.muli %c7_i32, %c8_i32_119 : i32
    %296 = tpu.assume_multiple %295, 8 : i32
    %c0_120 = arith.constant 0 : index
    %c0_121 = arith.constant 0 : index
    %297 = vector.load %arg13[%c0_120, %c0_121] : memref<8x128xbf16, #tpu.memory_space<vmem>>, vector<8x128xbf16>
    %c0_122 = arith.constant 0 : index
    %c0_123 = arith.constant 0 : index
    %298 = vector.load %arg14[%c0_122, %c0_123] : memref<8x128xf32, #tpu.memory_space<vmem>>, vector<8x128xf32>
    %299 = arith.index_cast %296 : i32 to index
    %c0_124 = arith.constant 0 : index
    %300 = vector.load %arg11[%299, %c0_124] : memref<64x512xf32, #tpu.memory_space<vmem>>, vector<8x512xf32>
    %cst_125 = arith.constant dense<0.000000e+00> : vector<8x512xf32>
    %301 = tpu.matmul %297, %1, %cst_125 {dimension_numbers = #tpu.dot_dimension_numbers<[1], [0], [0], [1], [0, 0, 1, 1], [], []>} : vector<8x128xbf16>, vector<128x512xbf16>, vector<8x512xf32> -> vector<8x512xf32>
    %302 = arith.addf %300, %301 : vector<8x512xf32>
    %303 = vector.extract_strided_slice %302 {offsets = [0, 0], sizes = [8, 128], strides = [1, 1]} : vector<8x512xf32> to vector<8x128xf32>
    %304 = arith.negf %303 : vector<8x128xf32>
    %305 = math.exp %304 : vector<8x128xf32>
    %cst_126 = arith.constant 1.000000e+00 : f32
    %306 = vector.broadcast %cst_126 : f32 to vector<8x128xf32>
    %307 = arith.addf %306, %305 : vector<8x128xf32>
    %308 = arith.divf %306, %307 : vector<8x128xf32>
    %309 = vector.extract_strided_slice %302 {offsets = [0, 128], sizes = [8, 128], strides = [1, 1]} : vector<8x512xf32> to vector<8x128xf32>
    %310 = arith.negf %309 : vector<8x128xf32>
    %311 = math.exp %310 : vector<8x128xf32>
    %cst_127 = arith.constant 1.000000e+00 : f32
    %312 = vector.broadcast %cst_127 : f32 to vector<8x128xf32>
    %313 = arith.addf %312, %311 : vector<8x128xf32>
    %314 = arith.divf %312, %313 : vector<8x128xf32>
    %315 = vector.extract_strided_slice %302 {offsets = [0, 256], sizes = [8, 128], strides = [1, 1]} : vector<8x512xf32> to vector<8x128xf32>
    %316 = math.tanh %315 : vector<8x128xf32>
    %317 = vector.extract_strided_slice %302 {offsets = [0, 384], sizes = [8, 128], strides = [1, 1]} : vector<8x512xf32> to vector<8x128xf32>
    %318 = arith.negf %317 : vector<8x128xf32>
    %319 = math.exp %318 : vector<8x128xf32>
    %cst_128 = arith.constant 1.000000e+00 : f32
    %320 = vector.broadcast %cst_128 : f32 to vector<8x128xf32>
    %321 = arith.addf %320, %319 : vector<8x128xf32>
    %322 = arith.divf %320, %321 : vector<8x128xf32>
    %323 = arith.mulf %314, %298 : vector<8x128xf32>
    %324 = arith.mulf %308, %316 : vector<8x128xf32>
    %325 = arith.addf %323, %324 : vector<8x128xf32>
    %326 = math.tanh %325 : vector<8x128xf32>
    %327 = arith.mulf %322, %326 : vector<8x128xf32>
    %328 = arith.truncf %327 : vector<8x128xf32> to vector<8x128xbf16>
    %c0_129 = arith.constant 0 : index
    %c0_130 = arith.constant 0 : index
    %329 = vector.load %arg14[%c0_129, %c0_130] : memref<8x128xf32, #tpu.memory_space<vmem>>, vector<8x128xf32>
    tpu.vector_store %arg14[%c0_129, %c0_130], %325 {strides = array<i32>} : memref<8x128xf32, #tpu.memory_space<vmem>>, vector<8x128xf32>,
    %c0_131 = arith.constant 0 : index
    %c0_132 = arith.constant 0 : index
    %330 = vector.load %arg13[%c0_131, %c0_132] : memref<8x128xbf16, #tpu.memory_space<vmem>>, vector<8x128xbf16>
    tpu.vector_store %arg13[%c0_131, %c0_132], %328 {strides = array<i32>} : memref<8x128xbf16, #tpu.memory_space<vmem>>, vector<8x128xbf16>,
    %331 = arith.addi %8, %296 : i32
    %332 = tpu.assume_multiple %331, 8 : i32
    %333 = arith.index_cast %332 : i32 to index
    %c0_133 = arith.constant 0 : index
    %334 = vector.load %arg12[%333, %c0_133] : memref<64x128xbf16, #tpu.memory_space<vmem>>, vector<8x128xbf16>
    tpu.vector_store %arg12[%333, %c0_133], %328 {strides = array<i32>} : memref<64x128xbf16, #tpu.memory_space<vmem>>, vector<8x128xbf16>,
    %c8_i32_134 = arith.constant 8 : i32
    %c1_i32_135 = arith.constant 1 : i32
    %c0_136 = arith.constant 0 : index
    %c0_137 = arith.constant 0 : index
    %335 = vector.load %arg5[%c0_136, %c0_137] : memref<128x512xbf16, #tpu.memory_space<vmem>>, vector<128x512xbf16>
    %c0_138 = arith.constant 0 : index
    %c0_139 = arith.constant 0 : index
    %336 = vector.load %arg6[%c0_138, %c0_139] : memref<128x512xbf16, #tpu.memory_space<vmem>>, vector<128x512xbf16>
    %c0_140 = arith.constant 0 : index
    %c0_141 = arith.constant 0 : index
    %337 = vector.load %arg7[%c0_140, %c0_141] : memref<1x512xf32, #tpu.memory_space<vmem>>, vector<1x512xf32>
    %cst_142 = arith.constant 0.000000e+00 : bf16
    %338 = vector.broadcast %cst_142 : bf16 to vector<8x128xbf16>
    %c0_143 = arith.constant 0 : index
    %c0_144 = arith.constant 0 : index
    %339 = vector.load %arg13[%c0_143, %c0_144] : memref<8x128xbf16, #tpu.memory_space<vmem>>, vector<8x128xbf16>
    tpu.vector_store %arg13[%c0_143, %c0_144], %338 {strides = array<i32>} : memref<8x128xbf16, #tpu.memory_space<vmem>>, vector<8x128xbf16>,
    %cst_145 = arith.constant 0.000000e+00 : f32
    %340 = vector.broadcast %cst_145 : f32 to vector<8x128xf32>
    %c0_146 = arith.constant 0 : index
    %c0_147 = arith.constant 0 : index
    %341 = vector.load %arg14[%c0_146, %c0_147] : memref<8x128xf32, #tpu.memory_space<vmem>>, vector<8x128xf32>
    tpu.vector_store %arg14[%c0_146, %c0_147], %340 {strides = array<i32>} : memref<8x128xf32, #tpu.memory_space<vmem>>, vector<8x128xf32>,
    %c0_i32_148 = arith.constant 0 : i32
    %c64_i32_149 = arith.constant 64 : i32
    %342 = arith.muli %c0_i32_148, %c64_i32_149 : i32
    %343 = tpu.assume_multiple %342, 64 : i32
    %344 = arith.index_cast %343 : i32 to index
    %c0_150 = arith.constant 0 : index
    %345 = vector.load %arg12[%344, %c0_150] : memref<64x128xbf16, #tpu.memory_space<vmem>>, vector<64x128xbf16>
    %cst_151 = arith.constant dense<0.000000e+00> : vector<64x512xf32>
    %346 = tpu.matmul %345, %335, %cst_151 {dimension_numbers = #tpu.dot_dimension_numbers<[1], [0], [0], [1], [0, 0, 1, 1], [], []>} : vector<64x128xbf16>, vector<128x512xbf16>, vector<64x512xf32> -> vector<64x512xf32>
    %347 = vector.broadcast %337 : vector<1x512xf32> to vector<64x512xf32>
    %348 = arith.addf %346, %347 : vector<64x512xf32>
    %c0_152 = arith.constant 0 : index
    %c0_153 = arith.constant 0 : index
    %349 = vector.load %arg11[%c0_152, %c0_153] : memref<64x512xf32, #tpu.memory_space<vmem>>, vector<64x512xf32>
    tpu.vector_store %arg11[%c0_152, %c0_153], %348 {strides = array<i32>} : memref<64x512xf32, #tpu.memory_space<vmem>>, vector<64x512xf32>,
    %c0_i32_154 = arith.constant 0 : i32
    %c8_i32_155 = arith.constant 8 : i32
    %350 = arith.muli %c0_i32_154, %c8_i32_155 : i32
    %351 = tpu.assume_multiple %350, 8 : i32
    %c0_156 = arith.constant 0 : index
    %c0_157 = arith.constant 0 : index
    %352 = vector.load %arg13[%c0_156, %c0_157] : memref<8x128xbf16, #tpu.memory_space<vmem>>, vector<8x128xbf16>
    %c0_158 = arith.constant 0 : index
    %c0_159 = arith.constant 0 : index
    %353 = vector.load %arg14[%c0_158, %c0_159] : memref<8x128xf32, #tpu.memory_space<vmem>>, vector<8x128xf32>
    %354 = arith.index_cast %351 : i32 to index
    %c0_160 = arith.constant 0 : index
    %355 = vector.load %arg11[%354, %c0_160] : memref<64x512xf32, #tpu.memory_space<vmem>>, vector<8x512xf32>
    %cst_161 = arith.constant dense<0.000000e+00> : vector<8x512xf32>
    %356 = tpu.matmul %352, %336, %cst_161 {dimension_numbers = #tpu.dot_dimension_numbers<[1], [0], [0], [1], [0, 0, 1, 1], [], []>} : vector<8x128xbf16>, vector<128x512xbf16>, vector<8x512xf32> -> vector<8x512xf32>
    %357 = arith.addf %355, %356 : vector<8x512xf32>
    %358 = vector.extract_strided_slice %357 {offsets = [0, 0], sizes = [8, 128], strides = [1, 1]} : vector<8x512xf32> to vector<8x128xf32>
    %359 = arith.negf %358 : vector<8x128xf32>
    %360 = math.exp %359 : vector<8x128xf32>
    %cst_162 = arith.constant 1.000000e+00 : f32
    %361 = vector.broadcast %cst_162 : f32 to vector<8x128xf32>
    %362 = arith.addf %361, %360 : vector<8x128xf32>
    %363 = arith.divf %361, %362 : vector<8x128xf32>
    %364 = vector.extract_strided_slice %357 {offsets = [0, 128], sizes = [8, 128], strides = [1, 1]} : vector<8x512xf32> to vector<8x128xf32>
    %365 = arith.negf %364 : vector<8x128xf32>
    %366 = math.exp %365 : vector<8x128xf32>
    %cst_163 = arith.constant 1.000000e+00 : f32
    %367 = vector.broadcast %cst_163 : f32 to vector<8x128xf32>
    %368 = arith.addf %367, %366 : vector<8x128xf32>
    %369 = arith.divf %367, %368 : vector<8x128xf32>
    %370 = vector.extract_strided_slice %357 {offsets = [0, 256], sizes = [8, 128], strides = [1, 1]} : vector<8x512xf32> to vector<8x128xf32>
    %371 = math.tanh %370 : vector<8x128xf32>
    %372 = vector.extract_strided_slice %357 {offsets = [0, 384], sizes = [8, 128], strides = [1, 1]} : vector<8x512xf32> to vector<8x128xf32>
    %373 = arith.negf %372 : vector<8x128xf32>
    %374 = math.exp %373 : vector<8x128xf32>
    %cst_164 = arith.constant 1.000000e+00 : f32
    %375 = vector.broadcast %cst_164 : f32 to vector<8x128xf32>
    %376 = arith.addf %375, %374 : vector<8x128xf32>
    %377 = arith.divf %375, %376 : vector<8x128xf32>
    %378 = arith.mulf %369, %353 : vector<8x128xf32>
    %379 = arith.mulf %363, %371 : vector<8x128xf32>
    %380 = arith.addf %378, %379 : vector<8x128xf32>
    %381 = math.tanh %380 : vector<8x128xf32>
    %382 = arith.mulf %377, %381 : vector<8x128xf32>
    %383 = arith.truncf %382 : vector<8x128xf32> to vector<8x128xbf16>
    %c0_165 = arith.constant 0 : index
    %c0_166 = arith.constant 0 : index
    %384 = vector.load %arg14[%c0_165, %c0_166] : memref<8x128xf32, #tpu.memory_space<vmem>>, vector<8x128xf32>
    tpu.vector_store %arg14[%c0_165, %c0_166], %380 {strides = array<i32>} : memref<8x128xf32, #tpu.memory_space<vmem>>, vector<8x128xf32>,
    %c0_167 = arith.constant 0 : index
    %c0_168 = arith.constant 0 : index
    %385 = vector.load %arg13[%c0_167, %c0_168] : memref<8x128xbf16, #tpu.memory_space<vmem>>, vector<8x128xbf16>
    tpu.vector_store %arg13[%c0_167, %c0_168], %383 {strides = array<i32>} : memref<8x128xbf16, #tpu.memory_space<vmem>>, vector<8x128xbf16>,
    %386 = arith.addi %343, %351 : i32
    %387 = tpu.assume_multiple %386, 8 : i32
    %388 = arith.index_cast %387 : i32 to index
    %c0_169 = arith.constant 0 : index
    %389 = vector.load %arg12[%388, %c0_169] : memref<64x128xbf16, #tpu.memory_space<vmem>>, vector<8x128xbf16>
    tpu.vector_store %arg12[%388, %c0_169], %383 {strides = array<i32>} : memref<64x128xbf16, #tpu.memory_space<vmem>>, vector<8x128xbf16>,
    %c1_i32_170 = arith.constant 1 : i32
    %c8_i32_171 = arith.constant 8 : i32
    %390 = arith.muli %c1_i32_170, %c8_i32_171 : i32
    %391 = tpu.assume_multiple %390, 8 : i32
    %c0_172 = arith.constant 0 : index
    %c0_173 = arith.constant 0 : index
    %392 = vector.load %arg13[%c0_172, %c0_173] : memref<8x128xbf16, #tpu.memory_space<vmem>>, vector<8x128xbf16>
    %c0_174 = arith.constant 0 : index
    %c0_175 = arith.constant 0 : index
    %393 = vector.load %arg14[%c0_174, %c0_175] : memref<8x128xf32, #tpu.memory_space<vmem>>, vector<8x128xf32>
    %394 = arith.index_cast %391 : i32 to index
    %c0_176 = arith.constant 0 : index
    %395 = vector.load %arg11[%394, %c0_176] : memref<64x512xf32, #tpu.memory_space<vmem>>, vector<8x512xf32>
    %cst_177 = arith.constant dense<0.000000e+00> : vector<8x512xf32>
    %396 = tpu.matmul %392, %336, %cst_177 {dimension_numbers = #tpu.dot_dimension_numbers<[1], [0], [0], [1], [0, 0, 1, 1], [], []>} : vector<8x128xbf16>, vector<128x512xbf16>, vector<8x512xf32> -> vector<8x512xf32>
    %397 = arith.addf %395, %396 : vector<8x512xf32>
    %398 = vector.extract_strided_slice %397 {offsets = [0, 0], sizes = [8, 128], strides = [1, 1]} : vector<8x512xf32> to vector<8x128xf32>
    %399 = arith.negf %398 : vector<8x128xf32>
    %400 = math.exp %399 : vector<8x128xf32>
    %cst_178 = arith.constant 1.000000e+00 : f32
    %401 = vector.broadcast %cst_178 : f32 to vector<8x128xf32>
    %402 = arith.addf %401, %400 : vector<8x128xf32>
    %403 = arith.divf %401, %402 : vector<8x128xf32>
    %404 = vector.extract_strided_slice %397 {offsets = [0, 128], sizes = [8, 128], strides = [1, 1]} : vector<8x512xf32> to vector<8x128xf32>
    %405 = arith.negf %404 : vector<8x128xf32>
    %406 = math.exp %405 : vector<8x128xf32>
    %cst_179 = arith.constant 1.000000e+00 : f32
    %407 = vector.broadcast %cst_179 : f32 to vector<8x128xf32>
    %408 = arith.addf %407, %406 : vector<8x128xf32>
    %409 = arith.divf %407, %408 : vector<8x128xf32>
    %410 = vector.extract_strided_slice %397 {offsets = [0, 256], sizes = [8, 128], strides = [1, 1]} : vector<8x512xf32> to vector<8x128xf32>
    %411 = math.tanh %410 : vector<8x128xf32>
    %412 = vector.extract_strided_slice %397 {offsets = [0, 384], sizes = [8, 128], strides = [1, 1]} : vector<8x512xf32> to vector<8x128xf32>
    %413 = arith.negf %412 : vector<8x128xf32>
    %414 = math.exp %413 : vector<8x128xf32>
    %cst_180 = arith.constant 1.000000e+00 : f32
    %415 = vector.broadcast %cst_180 : f32 to vector<8x128xf32>
    %416 = arith.addf %415, %414 : vector<8x128xf32>
    %417 = arith.divf %415, %416 : vector<8x128xf32>
    %418 = arith.mulf %409, %393 : vector<8x128xf32>
    %419 = arith.mulf %403, %411 : vector<8x128xf32>
    %420 = arith.addf %418, %419 : vector<8x128xf32>
    %421 = math.tanh %420 : vector<8x128xf32>
    %422 = arith.mulf %417, %421 : vector<8x128xf32>
    %423 = arith.truncf %422 : vector<8x128xf32> to vector<8x128xbf16>
    %c0_181 = arith.constant 0 : index
    %c0_182 = arith.constant 0 : index
    %424 = vector.load %arg14[%c0_181, %c0_182] : memref<8x128xf32, #tpu.memory_space<vmem>>, vector<8x128xf32>
    tpu.vector_store %arg14[%c0_181, %c0_182], %420 {strides = array<i32>} : memref<8x128xf32, #tpu.memory_space<vmem>>, vector<8x128xf32>,
    %c0_183 = arith.constant 0 : index
    %c0_184 = arith.constant 0 : index
    %425 = vector.load %arg13[%c0_183, %c0_184] : memref<8x128xbf16, #tpu.memory_space<vmem>>, vector<8x128xbf16>
    tpu.vector_store %arg13[%c0_183, %c0_184], %423 {strides = array<i32>} : memref<8x128xbf16, #tpu.memory_space<vmem>>, vector<8x128xbf16>,
    %426 = arith.addi %343, %391 : i32
    %427 = tpu.assume_multiple %426, 8 : i32
    %428 = arith.index_cast %427 : i32 to index
    %c0_185 = arith.constant 0 : index
    %429 = vector.load %arg12[%428, %c0_185] : memref<64x128xbf16, #tpu.memory_space<vmem>>, vector<8x128xbf16>
    tpu.vector_store %arg12[%428, %c0_185], %423 {strides = array<i32>} : memref<64x128xbf16, #tpu.memory_space<vmem>>, vector<8x128xbf16>,
    %c2_i32_186 = arith.constant 2 : i32
    %c8_i32_187 = arith.constant 8 : i32
    %430 = arith.muli %c2_i32_186, %c8_i32_187 : i32
    %431 = tpu.assume_multiple %430, 8 : i32
    %c0_188 = arith.constant 0 : index
    %c0_189 = arith.constant 0 : index
    %432 = vector.load %arg13[%c0_188, %c0_189] : memref<8x128xbf16, #tpu.memory_space<vmem>>, vector<8x128xbf16>
    %c0_190 = arith.constant 0 : index
    %c0_191 = arith.constant 0 : index
    %433 = vector.load %arg14[%c0_190, %c0_191] : memref<8x128xf32, #tpu.memory_space<vmem>>, vector<8x128xf32>
    %434 = arith.index_cast %431 : i32 to index
    %c0_192 = arith.constant 0 : index
    %435 = vector.load %arg11[%434, %c0_192] : memref<64x512xf32, #tpu.memory_space<vmem>>, vector<8x512xf32>
    %cst_193 = arith.constant dense<0.000000e+00> : vector<8x512xf32>
    %436 = tpu.matmul %432, %336, %cst_193 {dimension_numbers = #tpu.dot_dimension_numbers<[1], [0], [0], [1], [0, 0, 1, 1], [], []>} : vector<8x128xbf16>, vector<128x512xbf16>, vector<8x512xf32> -> vector<8x512xf32>
    %437 = arith.addf %435, %436 : vector<8x512xf32>
    %438 = vector.extract_strided_slice %437 {offsets = [0, 0], sizes = [8, 128], strides = [1, 1]} : vector<8x512xf32> to vector<8x128xf32>
    %439 = arith.negf %438 : vector<8x128xf32>
    %440 = math.exp %439 : vector<8x128xf32>
    %cst_194 = arith.constant 1.000000e+00 : f32
    %441 = vector.broadcast %cst_194 : f32 to vector<8x128xf32>
    %442 = arith.addf %441, %440 : vector<8x128xf32>
    %443 = arith.divf %441, %442 : vector<8x128xf32>
    %444 = vector.extract_strided_slice %437 {offsets = [0, 128], sizes = [8, 128], strides = [1, 1]} : vector<8x512xf32> to vector<8x128xf32>
    %445 = arith.negf %444 : vector<8x128xf32>
    %446 = math.exp %445 : vector<8x128xf32>
    %cst_195 = arith.constant 1.000000e+00 : f32
    %447 = vector.broadcast %cst_195 : f32 to vector<8x128xf32>
    %448 = arith.addf %447, %446 : vector<8x128xf32>
    %449 = arith.divf %447, %448 : vector<8x128xf32>
    %450 = vector.extract_strided_slice %437 {offsets = [0, 256], sizes = [8, 128], strides = [1, 1]} : vector<8x512xf32> to vector<8x128xf32>
    %451 = math.tanh %450 : vector<8x128xf32>
    %452 = vector.extract_strided_slice %437 {offsets = [0, 384], sizes = [8, 128], strides = [1, 1]} : vector<8x512xf32> to vector<8x128xf32>
    %453 = arith.negf %452 : vector<8x128xf32>
    %454 = math.exp %453 : vector<8x128xf32>
    %cst_196 = arith.constant 1.000000e+00 : f32
    %455 = vector.broadcast %cst_196 : f32 to vector<8x128xf32>
    %456 = arith.addf %455, %454 : vector<8x128xf32>
    %457 = arith.divf %455, %456 : vector<8x128xf32>
    %458 = arith.mulf %449, %433 : vector<8x128xf32>
    %459 = arith.mulf %443, %451 : vector<8x128xf32>
    %460 = arith.addf %458, %459 : vector<8x128xf32>
    %461 = math.tanh %460 : vector<8x128xf32>
    %462 = arith.mulf %457, %461 : vector<8x128xf32>
    %463 = arith.truncf %462 : vector<8x128xf32> to vector<8x128xbf16>
    %c0_197 = arith.constant 0 : index
    %c0_198 = arith.constant 0 : index
    %464 = vector.load %arg14[%c0_197, %c0_198] : memref<8x128xf32, #tpu.memory_space<vmem>>, vector<8x128xf32>
    tpu.vector_store %arg14[%c0_197, %c0_198], %460 {strides = array<i32>} : memref<8x128xf32, #tpu.memory_space<vmem>>, vector<8x128xf32>,
    %c0_199 = arith.constant 0 : index
    %c0_200 = arith.constant 0 : index
    %465 = vector.load %arg13[%c0_199, %c0_200] : memref<8x128xbf16, #tpu.memory_space<vmem>>, vector<8x128xbf16>
    tpu.vector_store %arg13[%c0_199, %c0_200], %463 {strides = array<i32>} : memref<8x128xbf16, #tpu.memory_space<vmem>>, vector<8x128xbf16>,
    %466 = arith.addi %343, %431 : i32
    %467 = tpu.assume_multiple %466, 8 : i32
    %468 = arith.index_cast %467 : i32 to index
    %c0_201 = arith.constant 0 : index
    %469 = vector.load %arg12[%468, %c0_201] : memref<64x128xbf16, #tpu.memory_space<vmem>>, vector<8x128xbf16>
    tpu.vector_store %arg12[%468, %c0_201], %463 {strides = array<i32>} : memref<64x128xbf16, #tpu.memory_space<vmem>>, vector<8x128xbf16>,
    %c3_i32_202 = arith.constant 3 : i32
    %c8_i32_203 = arith.constant 8 : i32
    %470 = arith.muli %c3_i32_202, %c8_i32_203 : i32
    %471 = tpu.assume_multiple %470, 8 : i32
    %c0_204 = arith.constant 0 : index
    %c0_205 = arith.constant 0 : index
    %472 = vector.load %arg13[%c0_204, %c0_205] : memref<8x128xbf16, #tpu.memory_space<vmem>>, vector<8x128xbf16>
    %c0_206 = arith.constant 0 : index
    %c0_207 = arith.constant 0 : index
    %473 = vector.load %arg14[%c0_206, %c0_207] : memref<8x128xf32, #tpu.memory_space<vmem>>, vector<8x128xf32>
    %474 = arith.index_cast %471 : i32 to index
    %c0_208 = arith.constant 0 : index
    %475 = vector.load %arg11[%474, %c0_208] : memref<64x512xf32, #tpu.memory_space<vmem>>, vector<8x512xf32>
    %cst_209 = arith.constant dense<0.000000e+00> : vector<8x512xf32>
    %476 = tpu.matmul %472, %336, %cst_209 {dimension_numbers = #tpu.dot_dimension_numbers<[1], [0], [0], [1], [0, 0, 1, 1], [], []>} : vector<8x128xbf16>, vector<128x512xbf16>, vector<8x512xf32> -> vector<8x512xf32>
    %477 = arith.addf %475, %476 : vector<8x512xf32>
    %478 = vector.extract_strided_slice %477 {offsets = [0, 0], sizes = [8, 128], strides = [1, 1]} : vector<8x512xf32> to vector<8x128xf32>
    %479 = arith.negf %478 : vector<8x128xf32>
    %480 = math.exp %479 : vector<8x128xf32>
    %cst_210 = arith.constant 1.000000e+00 : f32
    %481 = vector.broadcast %cst_210 : f32 to vector<8x128xf32>
    %482 = arith.addf %481, %480 : vector<8x128xf32>
    %483 = arith.divf %481, %482 : vector<8x128xf32>
    %484 = vector.extract_strided_slice %477 {offsets = [0, 128], sizes = [8, 128], strides = [1, 1]} : vector<8x512xf32> to vector<8x128xf32>
    %485 = arith.negf %484 : vector<8x128xf32>
    %486 = math.exp %485 : vector<8x128xf32>
    %cst_211 = arith.constant 1.000000e+00 : f32
    %487 = vector.broadcast %cst_211 : f32 to vector<8x128xf32>
    %488 = arith.addf %487, %486 : vector<8x128xf32>
    %489 = arith.divf %487, %488 : vector<8x128xf32>
    %490 = vector.extract_strided_slice %477 {offsets = [0, 256], sizes = [8, 128], strides = [1, 1]} : vector<8x512xf32> to vector<8x128xf32>
    %491 = math.tanh %490 : vector<8x128xf32>
    %492 = vector.extract_strided_slice %477 {offsets = [0, 384], sizes = [8, 128], strides = [1, 1]} : vector<8x512xf32> to vector<8x128xf32>
    %493 = arith.negf %492 : vector<8x128xf32>
    %494 = math.exp %493 : vector<8x128xf32>
    %cst_212 = arith.constant 1.000000e+00 : f32
    %495 = vector.broadcast %cst_212 : f32 to vector<8x128xf32>
    %496 = arith.addf %495, %494 : vector<8x128xf32>
    %497 = arith.divf %495, %496 : vector<8x128xf32>
    %498 = arith.mulf %489, %473 : vector<8x128xf32>
    %499 = arith.mulf %483, %491 : vector<8x128xf32>
    %500 = arith.addf %498, %499 : vector<8x128xf32>
    %501 = math.tanh %500 : vector<8x128xf32>
    %502 = arith.mulf %497, %501 : vector<8x128xf32>
    %503 = arith.truncf %502 : vector<8x128xf32> to vector<8x128xbf16>
    %c0_213 = arith.constant 0 : index
    %c0_214 = arith.constant 0 : index
    %504 = vector.load %arg14[%c0_213, %c0_214] : memref<8x128xf32, #tpu.memory_space<vmem>>, vector<8x128xf32>
    tpu.vector_store %arg14[%c0_213, %c0_214], %500 {strides = array<i32>} : memref<8x128xf32, #tpu.memory_space<vmem>>, vector<8x128xf32>,
    %c0_215 = arith.constant 0 : index
    %c0_216 = arith.constant 0 : index
    %505 = vector.load %arg13[%c0_215, %c0_216] : memref<8x128xbf16, #tpu.memory_space<vmem>>, vector<8x128xbf16>
    tpu.vector_store %arg13[%c0_215, %c0_216], %503 {strides = array<i32>} : memref<8x128xbf16, #tpu.memory_space<vmem>>, vector<8x128xbf16>,
    %506 = arith.addi %343, %471 : i32
    %507 = tpu.assume_multiple %506, 8 : i32
    %508 = arith.index_cast %507 : i32 to index
    %c0_217 = arith.constant 0 : index
    %509 = vector.load %arg12[%508, %c0_217] : memref<64x128xbf16, #tpu.memory_space<vmem>>, vector<8x128xbf16>
    tpu.vector_store %arg12[%508, %c0_217], %503 {strides = array<i32>} : memref<64x128xbf16, #tpu.memory_space<vmem>>, vector<8x128xbf16>,
    %c4_i32_218 = arith.constant 4 : i32
    %c8_i32_219 = arith.constant 8 : i32
    %510 = arith.muli %c4_i32_218, %c8_i32_219 : i32
    %511 = tpu.assume_multiple %510, 8 : i32
    %c0_220 = arith.constant 0 : index
    %c0_221 = arith.constant 0 : index
    %512 = vector.load %arg13[%c0_220, %c0_221] : memref<8x128xbf16, #tpu.memory_space<vmem>>, vector<8x128xbf16>
    %c0_222 = arith.constant 0 : index
    %c0_223 = arith.constant 0 : index
    %513 = vector.load %arg14[%c0_222, %c0_223] : memref<8x128xf32, #tpu.memory_space<vmem>>, vector<8x128xf32>
    %514 = arith.index_cast %511 : i32 to index
    %c0_224 = arith.constant 0 : index
    %515 = vector.load %arg11[%514, %c0_224] : memref<64x512xf32, #tpu.memory_space<vmem>>, vector<8x512xf32>
    %cst_225 = arith.constant dense<0.000000e+00> : vector<8x512xf32>
    %516 = tpu.matmul %512, %336, %cst_225 {dimension_numbers = #tpu.dot_dimension_numbers<[1], [0], [0], [1], [0, 0, 1, 1], [], []>} : vector<8x128xbf16>, vector<128x512xbf16>, vector<8x512xf32> -> vector<8x512xf32>
    %517 = arith.addf %515, %516 : vector<8x512xf32>
    %518 = vector.extract_strided_slice %517 {offsets = [0, 0], sizes = [8, 128], strides = [1, 1]} : vector<8x512xf32> to vector<8x128xf32>
    %519 = arith.negf %518 : vector<8x128xf32>
    %520 = math.exp %519 : vector<8x128xf32>
    %cst_226 = arith.constant 1.000000e+00 : f32
    %521 = vector.broadcast %cst_226 : f32 to vector<8x128xf32>
    %522 = arith.addf %521, %520 : vector<8x128xf32>
    %523 = arith.divf %521, %522 : vector<8x128xf32>
    %524 = vector.extract_strided_slice %517 {offsets = [0, 128], sizes = [8, 128], strides = [1, 1]} : vector<8x512xf32> to vector<8x128xf32>
    %525 = arith.negf %524 : vector<8x128xf32>
    %526 = math.exp %525 : vector<8x128xf32>
    %cst_227 = arith.constant 1.000000e+00 : f32
    %527 = vector.broadcast %cst_227 : f32 to vector<8x128xf32>
    %528 = arith.addf %527, %526 : vector<8x128xf32>
    %529 = arith.divf %527, %528 : vector<8x128xf32>
    %530 = vector.extract_strided_slice %517 {offsets = [0, 256], sizes = [8, 128], strides = [1, 1]} : vector<8x512xf32> to vector<8x128xf32>
    %531 = math.tanh %530 : vector<8x128xf32>
    %532 = vector.extract_strided_slice %517 {offsets = [0, 384], sizes = [8, 128], strides = [1, 1]} : vector<8x512xf32> to vector<8x128xf32>
    %533 = arith.negf %532 : vector<8x128xf32>
    %534 = math.exp %533 : vector<8x128xf32>
    %cst_228 = arith.constant 1.000000e+00 : f32
    %535 = vector.broadcast %cst_228 : f32 to vector<8x128xf32>
    %536 = arith.addf %535, %534 : vector<8x128xf32>
    %537 = arith.divf %535, %536 : vector<8x128xf32>
    %538 = arith.mulf %529, %513 : vector<8x128xf32>
    %539 = arith.mulf %523, %531 : vector<8x128xf32>
    %540 = arith.addf %538, %539 : vector<8x128xf32>
    %541 = math.tanh %540 : vector<8x128xf32>
    %542 = arith.mulf %537, %541 : vector<8x128xf32>
    %543 = arith.truncf %542 : vector<8x128xf32> to vector<8x128xbf16>
    %c0_229 = arith.constant 0 : index
    %c0_230 = arith.constant 0 : index
    %544 = vector.load %arg14[%c0_229, %c0_230] : memref<8x128xf32, #tpu.memory_space<vmem>>, vector<8x128xf32>
    tpu.vector_store %arg14[%c0_229, %c0_230], %540 {strides = array<i32>} : memref<8x128xf32, #tpu.memory_space<vmem>>, vector<8x128xf32>,
    %c0_231 = arith.constant 0 : index
    %c0_232 = arith.constant 0 : index
    %545 = vector.load %arg13[%c0_231, %c0_232] : memref<8x128xbf16, #tpu.memory_space<vmem>>, vector<8x128xbf16>
    tpu.vector_store %arg13[%c0_231, %c0_232], %543 {strides = array<i32>} : memref<8x128xbf16, #tpu.memory_space<vmem>>, vector<8x128xbf16>,
    %546 = arith.addi %343, %511 : i32
    %547 = tpu.assume_multiple %546, 8 : i32
    %548 = arith.index_cast %547 : i32 to index
    %c0_233 = arith.constant 0 : index
    %549 = vector.load %arg12[%548, %c0_233] : memref<64x128xbf16, #tpu.memory_space<vmem>>, vector<8x128xbf16>
    tpu.vector_store %arg12[%548, %c0_233], %543 {strides = array<i32>} : memref<64x128xbf16, #tpu.memory_space<vmem>>, vector<8x128xbf16>,
    %c5_i32_234 = arith.constant 5 : i32
    %c8_i32_235 = arith.constant 8 : i32
    %550 = arith.muli %c5_i32_234, %c8_i32_235 : i32
    %551 = tpu.assume_multiple %550, 8 : i32
    %c0_236 = arith.constant 0 : index
    %c0_237 = arith.constant 0 : index
    %552 = vector.load %arg13[%c0_236, %c0_237] : memref<8x128xbf16, #tpu.memory_space<vmem>>, vector<8x128xbf16>
    %c0_238 = arith.constant 0 : index
    %c0_239 = arith.constant 0 : index
    %553 = vector.load %arg14[%c0_238, %c0_239] : memref<8x128xf32, #tpu.memory_space<vmem>>, vector<8x128xf32>
    %554 = arith.index_cast %551 : i32 to index
    %c0_240 = arith.constant 0 : index
    %555 = vector.load %arg11[%554, %c0_240] : memref<64x512xf32, #tpu.memory_space<vmem>>, vector<8x512xf32>
    %cst_241 = arith.constant dense<0.000000e+00> : vector<8x512xf32>
    %556 = tpu.matmul %552, %336, %cst_241 {dimension_numbers = #tpu.dot_dimension_numbers<[1], [0], [0], [1], [0, 0, 1, 1], [], []>} : vector<8x128xbf16>, vector<128x512xbf16>, vector<8x512xf32> -> vector<8x512xf32>
    %557 = arith.addf %555, %556 : vector<8x512xf32>
    %558 = vector.extract_strided_slice %557 {offsets = [0, 0], sizes = [8, 128], strides = [1, 1]} : vector<8x512xf32> to vector<8x128xf32>
    %559 = arith.negf %558 : vector<8x128xf32>
    %560 = math.exp %559 : vector<8x128xf32>
    %cst_242 = arith.constant 1.000000e+00 : f32
    %561 = vector.broadcast %cst_242 : f32 to vector<8x128xf32>
    %562 = arith.addf %561, %560 : vector<8x128xf32>
    %563 = arith.divf %561, %562 : vector<8x128xf32>
    %564 = vector.extract_strided_slice %557 {offsets = [0, 128], sizes = [8, 128], strides = [1, 1]} : vector<8x512xf32> to vector<8x128xf32>
    %565 = arith.negf %564 : vector<8x128xf32>
    %566 = math.exp %565 : vector<8x128xf32>
    %cst_243 = arith.constant 1.000000e+00 : f32
    %567 = vector.broadcast %cst_243 : f32 to vector<8x128xf32>
    %568 = arith.addf %567, %566 : vector<8x128xf32>
    %569 = arith.divf %567, %568 : vector<8x128xf32>
    %570 = vector.extract_strided_slice %557 {offsets = [0, 256], sizes = [8, 128], strides = [1, 1]} : vector<8x512xf32> to vector<8x128xf32>
    %571 = math.tanh %570 : vector<8x128xf32>
    %572 = vector.extract_strided_slice %557 {offsets = [0, 384], sizes = [8, 128], strides = [1, 1]} : vector<8x512xf32> to vector<8x128xf32>
    %573 = arith.negf %572 : vector<8x128xf32>
    %574 = math.exp %573 : vector<8x128xf32>
    %cst_244 = arith.constant 1.000000e+00 : f32
    %575 = vector.broadcast %cst_244 : f32 to vector<8x128xf32>
    %576 = arith.addf %575, %574 : vector<8x128xf32>
    %577 = arith.divf %575, %576 : vector<8x128xf32>
    %578 = arith.mulf %569, %553 : vector<8x128xf32>
    %579 = arith.mulf %563, %571 : vector<8x128xf32>
    %580 = arith.addf %578, %579 : vector<8x128xf32>
    %581 = math.tanh %580 : vector<8x128xf32>
    %582 = arith.mulf %577, %581 : vector<8x128xf32>
    %583 = arith.truncf %582 : vector<8x128xf32> to vector<8x128xbf16>
    %c0_245 = arith.constant 0 : index
    %c0_246 = arith.constant 0 : index
    %584 = vector.load %arg14[%c0_245, %c0_246] : memref<8x128xf32, #tpu.memory_space<vmem>>, vector<8x128xf32>
    tpu.vector_store %arg14[%c0_245, %c0_246], %580 {strides = array<i32>} : memref<8x128xf32, #tpu.memory_space<vmem>>, vector<8x128xf32>,
    %c0_247 = arith.constant 0 : index
    %c0_248 = arith.constant 0 : index
    %585 = vector.load %arg13[%c0_247, %c0_248] : memref<8x128xbf16, #tpu.memory_space<vmem>>, vector<8x128xbf16>
    tpu.vector_store %arg13[%c0_247, %c0_248], %583 {strides = array<i32>} : memref<8x128xbf16, #tpu.memory_space<vmem>>, vector<8x128xbf16>,
    %586 = arith.addi %343, %551 : i32
    %587 = tpu.assume_multiple %586, 8 : i32
    %588 = arith.index_cast %587 : i32 to index
    %c0_249 = arith.constant 0 : index
    %589 = vector.load %arg12[%588, %c0_249] : memref<64x128xbf16, #tpu.memory_space<vmem>>, vector<8x128xbf16>
    tpu.vector_store %arg12[%588, %c0_249], %583 {strides = array<i32>} : memref<64x128xbf16, #tpu.memory_space<vmem>>, vector<8x128xbf16>,
    %c6_i32_250 = arith.constant 6 : i32
    %c8_i32_251 = arith.constant 8 : i32
    %590 = arith.muli %c6_i32_250, %c8_i32_251 : i32
    %591 = tpu.assume_multiple %590, 8 : i32
    %c0_252 = arith.constant 0 : index
    %c0_253 = arith.constant 0 : index
    %592 = vector.load %arg13[%c0_252, %c0_253] : memref<8x128xbf16, #tpu.memory_space<vmem>>, vector<8x128xbf16>
    %c0_254 = arith.constant 0 : index
    %c0_255 = arith.constant 0 : index
    %593 = vector.load %arg14[%c0_254, %c0_255] : memref<8x128xf32, #tpu.memory_space<vmem>>, vector<8x128xf32>
    %594 = arith.index_cast %591 : i32 to index
    %c0_256 = arith.constant 0 : index
    %595 = vector.load %arg11[%594, %c0_256] : memref<64x512xf32, #tpu.memory_space<vmem>>, vector<8x512xf32>
    %cst_257 = arith.constant dense<0.000000e+00> : vector<8x512xf32>
    %596 = tpu.matmul %592, %336, %cst_257 {dimension_numbers = #tpu.dot_dimension_numbers<[1], [0], [0], [1], [0, 0, 1, 1], [], []>} : vector<8x128xbf16>, vector<128x512xbf16>, vector<8x512xf32> -> vector<8x512xf32>
    %597 = arith.addf %595, %596 : vector<8x512xf32>
    %598 = vector.extract_strided_slice %597 {offsets = [0, 0], sizes = [8, 128], strides = [1, 1]} : vector<8x512xf32> to vector<8x128xf32>
    %599 = arith.negf %598 : vector<8x128xf32>
    %600 = math.exp %599 : vector<8x128xf32>
    %cst_258 = arith.constant 1.000000e+00 : f32
    %601 = vector.broadcast %cst_258 : f32 to vector<8x128xf32>
    %602 = arith.addf %601, %600 : vector<8x128xf32>
    %603 = arith.divf %601, %602 : vector<8x128xf32>
    %604 = vector.extract_strided_slice %597 {offsets = [0, 128], sizes = [8, 128], strides = [1, 1]} : vector<8x512xf32> to vector<8x128xf32>
    %605 = arith.negf %604 : vector<8x128xf32>
    %606 = math.exp %605 : vector<8x128xf32>
    %cst_259 = arith.constant 1.000000e+00 : f32
    %607 = vector.broadcast %cst_259 : f32 to vector<8x128xf32>
    %608 = arith.addf %607, %606 : vector<8x128xf32>
    %609 = arith.divf %607, %608 : vector<8x128xf32>
    %610 = vector.extract_strided_slice %597 {offsets = [0, 256], sizes = [8, 128], strides = [1, 1]} : vector<8x512xf32> to vector<8x128xf32>
    %611 = math.tanh %610 : vector<8x128xf32>
    %612 = vector.extract_strided_slice %597 {offsets = [0, 384], sizes = [8, 128], strides = [1, 1]} : vector<8x512xf32> to vector<8x128xf32>
    %613 = arith.negf %612 : vector<8x128xf32>
    %614 = math.exp %613 : vector<8x128xf32>
    %cst_260 = arith.constant 1.000000e+00 : f32
    %615 = vector.broadcast %cst_260 : f32 to vector<8x128xf32>
    %616 = arith.addf %615, %614 : vector<8x128xf32>
    %617 = arith.divf %615, %616 : vector<8x128xf32>
    %618 = arith.mulf %609, %593 : vector<8x128xf32>
    %619 = arith.mulf %603, %611 : vector<8x128xf32>
    %620 = arith.addf %618, %619 : vector<8x128xf32>
    %621 = math.tanh %620 : vector<8x128xf32>
    %622 = arith.mulf %617, %621 : vector<8x128xf32>
    %623 = arith.truncf %622 : vector<8x128xf32> to vector<8x128xbf16>
    %c0_261 = arith.constant 0 : index
    %c0_262 = arith.constant 0 : index
    %624 = vector.load %arg14[%c0_261, %c0_262] : memref<8x128xf32, #tpu.memory_space<vmem>>, vector<8x128xf32>
    tpu.vector_store %arg14[%c0_261, %c0_262], %620 {strides = array<i32>} : memref<8x128xf32, #tpu.memory_space<vmem>>, vector<8x128xf32>,
    %c0_263 = arith.constant 0 : index
    %c0_264 = arith.constant 0 : index
    %625 = vector.load %arg13[%c0_263, %c0_264] : memref<8x128xbf16, #tpu.memory_space<vmem>>, vector<8x128xbf16>
    tpu.vector_store %arg13[%c0_263, %c0_264], %623 {strides = array<i32>} : memref<8x128xbf16, #tpu.memory_space<vmem>>, vector<8x128xbf16>,
    %626 = arith.addi %343, %591 : i32
    %627 = tpu.assume_multiple %626, 8 : i32
    %628 = arith.index_cast %627 : i32 to index
    %c0_265 = arith.constant 0 : index
    %629 = vector.load %arg12[%628, %c0_265] : memref<64x128xbf16, #tpu.memory_space<vmem>>, vector<8x128xbf16>
    tpu.vector_store %arg12[%628, %c0_265], %623 {strides = array<i32>} : memref<64x128xbf16, #tpu.memory_space<vmem>>, vector<8x128xbf16>,
    %c7_i32_266 = arith.constant 7 : i32
    %c8_i32_267 = arith.constant 8 : i32
    %630 = arith.muli %c7_i32_266, %c8_i32_267 : i32
    %631 = tpu.assume_multiple %630, 8 : i32
    %c0_268 = arith.constant 0 : index
    %c0_269 = arith.constant 0 : index
    %632 = vector.load %arg13[%c0_268, %c0_269] : memref<8x128xbf16, #tpu.memory_space<vmem>>, vector<8x128xbf16>
    %c0_270 = arith.constant 0 : index
    %c0_271 = arith.constant 0 : index
    %633 = vector.load %arg14[%c0_270, %c0_271] : memref<8x128xf32, #tpu.memory_space<vmem>>, vector<8x128xf32>
    %634 = arith.index_cast %631 : i32 to index
    %c0_272 = arith.constant 0 : index
    %635 = vector.load %arg11[%634, %c0_272] : memref<64x512xf32, #tpu.memory_space<vmem>>, vector<8x512xf32>
    %cst_273 = arith.constant dense<0.000000e+00> : vector<8x512xf32>
    %636 = tpu.matmul %632, %336, %cst_273 {dimension_numbers = #tpu.dot_dimension_numbers<[1], [0], [0], [1], [0, 0, 1, 1], [], []>} : vector<8x128xbf16>, vector<128x512xbf16>, vector<8x512xf32> -> vector<8x512xf32>
    %637 = arith.addf %635, %636 : vector<8x512xf32>
    %638 = vector.extract_strided_slice %637 {offsets = [0, 0], sizes = [8, 128], strides = [1, 1]} : vector<8x512xf32> to vector<8x128xf32>
    %639 = arith.negf %638 : vector<8x128xf32>
    %640 = math.exp %639 : vector<8x128xf32>
    %cst_274 = arith.constant 1.000000e+00 : f32
    %641 = vector.broadcast %cst_274 : f32 to vector<8x128xf32>
    %642 = arith.addf %641, %640 : vector<8x128xf32>
    %643 = arith.divf %641, %642 : vector<8x128xf32>
    %644 = vector.extract_strided_slice %637 {offsets = [0, 128], sizes = [8, 128], strides = [1, 1]} : vector<8x512xf32> to vector<8x128xf32>
    %645 = arith.negf %644 : vector<8x128xf32>
    %646 = math.exp %645 : vector<8x128xf32>
    %cst_275 = arith.constant 1.000000e+00 : f32
    %647 = vector.broadcast %cst_275 : f32 to vector<8x128xf32>
    %648 = arith.addf %647, %646 : vector<8x128xf32>
    %649 = arith.divf %647, %648 : vector<8x128xf32>
    %650 = vector.extract_strided_slice %637 {offsets = [0, 256], sizes = [8, 128], strides = [1, 1]} : vector<8x512xf32> to vector<8x128xf32>
    %651 = math.tanh %650 : vector<8x128xf32>
    %652 = vector.extract_strided_slice %637 {offsets = [0, 384], sizes = [8, 128], strides = [1, 1]} : vector<8x512xf32> to vector<8x128xf32>
    %653 = arith.negf %652 : vector<8x128xf32>
    %654 = math.exp %653 : vector<8x128xf32>
    %cst_276 = arith.constant 1.000000e+00 : f32
    %655 = vector.broadcast %cst_276 : f32 to vector<8x128xf32>
    %656 = arith.addf %655, %654 : vector<8x128xf32>
    %657 = arith.divf %655, %656 : vector<8x128xf32>
    %658 = arith.mulf %649, %633 : vector<8x128xf32>
    %659 = arith.mulf %643, %651 : vector<8x128xf32>
    %660 = arith.addf %658, %659 : vector<8x128xf32>
    %661 = math.tanh %660 : vector<8x128xf32>
    %662 = arith.mulf %657, %661 : vector<8x128xf32>
    %663 = arith.truncf %662 : vector<8x128xf32> to vector<8x128xbf16>
    %c0_277 = arith.constant 0 : index
    %c0_278 = arith.constant 0 : index
    %664 = vector.load %arg14[%c0_277, %c0_278] : memref<8x128xf32, #tpu.memory_space<vmem>>, vector<8x128xf32>
    tpu.vector_store %arg14[%c0_277, %c0_278], %660 {strides = array<i32>} : memref<8x128xf32, #tpu.memory_space<vmem>>, vector<8x128xf32>,
    %c0_279 = arith.constant 0 : index
    %c0_280 = arith.constant 0 : index
    %665 = vector.load %arg13[%c0_279, %c0_280] : memref<8x128xbf16, #tpu.memory_space<vmem>>, vector<8x128xbf16>
    tpu.vector_store %arg13[%c0_279, %c0_280], %663 {strides = array<i32>} : memref<8x128xbf16, #tpu.memory_space<vmem>>, vector<8x128xbf16>,
    %666 = arith.addi %343, %631 : i32
    %667 = tpu.assume_multiple %666, 8 : i32
    %668 = arith.index_cast %667 : i32 to index
    %c0_281 = arith.constant 0 : index
    %669 = vector.load %arg12[%668, %c0_281] : memref<64x128xbf16, #tpu.memory_space<vmem>>, vector<8x128xbf16>
    tpu.vector_store %arg12[%668, %c0_281], %663 {strides = array<i32>} : memref<64x128xbf16, #tpu.memory_space<vmem>>, vector<8x128xbf16>,
    %c8_i32_282 = arith.constant 8 : i32
    %c1_i32_283 = arith.constant 1 : i32
    %c0_284 = arith.constant 0 : index
    %c0_285 = arith.constant 0 : index
    %670 = vector.load %arg12[%c0_284, %c0_285] : memref<64x128xbf16, #tpu.memory_space<vmem>>, vector<64x128xbf16>
    %c0_286 = arith.constant 0 : index
    %c0_287 = arith.constant 0 : index
    %671 = vector.load %arg8[%c0_286, %c0_287] : memref<128x128xbf16, #tpu.memory_space<vmem>>, vector<128x128xbf16>
    %cst_288 = arith.constant dense<0.000000e+00> : vector<64x128xf32>
    %672 = tpu.matmul %670, %671, %cst_288 {dimension_numbers = #tpu.dot_dimension_numbers<[1], [0], [0], [1], [0, 0, 1, 1], [], []>} : vector<64x128xbf16>, vector<128x128xbf16>, vector<64x128xf32> -> vector<64x128xf32>
    %c0_289 = arith.constant 0 : index
    %c0_290 = arith.constant 0 : index
    %673 = vector.load %arg9[%c0_289, %c0_290] : memref<1x128xf32, #tpu.memory_space<vmem>>, vector<1x128xf32>
    %674 = vector.broadcast %673 : vector<1x128xf32> to vector<64x128xf32>
    %675 = arith.addf %672, %674 : vector<64x128xf32>
    %c0_291 = arith.constant 0 : index
    %c0_292 = arith.constant 0 : index
    %676 = vector.load %arg10[%c0_291, %c0_292] : memref<64x128xf32, #tpu.memory_space<vmem>>, vector<64x128xf32>
    tpu.vector_store %arg10[%c0_291, %c0_292], %675 {strides = array<i32>} : memref<64x128xf32, #tpu.memory_space<vmem>>, vector<64x128xf32>,
    return
  }
  func.func @transform_0(%arg0: i32) -> (i32, i32) {
    %c0_i32 = arith.constant 0 : i32
    %c0_i32_0 = arith.constant 0 : i32
    return %arg0, %c0_i32 : i32, i32
  }
  func.func @transform_1(%arg0: i32) -> (i32, i32) {
    %c0_i32 = arith.constant 0 : i32
    %c0_i32_0 = arith.constant 0 : i32
    %c0_i32_1 = arith.constant 0 : i32
    return %c0_i32, %c0_i32_0 : i32, i32
  }
  func.func @transform_2(%arg0: i32) -> (i32, i32) {
    %c0_i32 = arith.constant 0 : i32
    %c0_i32_0 = arith.constant 0 : i32
    %c0_i32_1 = arith.constant 0 : i32
    return %c0_i32, %c0_i32_0 : i32, i32
  }
  func.func @transform_3(%arg0: i32) -> (i32, i32) {
    %c0_i32 = arith.constant 0 : i32
    %c0_i32_0 = arith.constant 0 : i32
    %c0_i32_1 = arith.constant 0 : i32
    return %c0_i32, %c0_i32_0 : i32, i32
  }
  func.func @transform_4(%arg0: i32) -> (i32, i32) {
    %c0_i32 = arith.constant 0 : i32
    %c0_i32_0 = arith.constant 0 : i32
    %c0_i32_1 = arith.constant 0 : i32
    return %c0_i32, %c0_i32_0 : i32, i32
  }
  func.func @transform_5(%arg0: i32) -> (i32, i32) {
    %c0_i32 = arith.constant 0 : i32
    %c0_i32_0 = arith.constant 0 : i32
    %c0_i32_1 = arith.constant 0 : i32
    return %c0_i32, %c0_i32_0 : i32, i32
  }
  func.func @transform_6(%arg0: i32) -> (i32, i32) {
    %c0_i32 = arith.constant 0 : i32
    %c0_i32_0 = arith.constant 0 : i32
    %c0_i32_1 = arith.constant 0 : i32
    return %c0_i32, %c0_i32_0 : i32, i32
  }
  func.func @transform_7(%arg0: i32) -> (i32, i32) {
    %c0_i32 = arith.constant 0 : i32
    %c0_i32_0 = arith.constant 0 : i32
    %c0_i32_1 = arith.constant 0 : i32
    return %c0_i32, %c0_i32_0 : i32, i32
  }
  func.func @transform_8(%arg0: i32) -> (i32, i32) {
    %c0_i32 = arith.constant 0 : i32
    %c0_i32_0 = arith.constant 0 : i32
    %c0_i32_1 = arith.constant 0 : i32
    return %c0_i32, %c0_i32_0 : i32, i32
  }
  func.func @transform_9(%arg0: i32) -> (i32, i32) {
    %c0_i32 = arith.constant 0 : i32
    %c0_i32_0 = arith.constant 0 : i32
    return %arg0, %c0_i32 : i32, i32
  }
}

</mosaic_0001>

<bundles_post_ra>
// kernel: shakespeare_lstm_forward.1
= control target key start
LH: loop header
LB: loop body
LE: loop exit
PB: predicated region body
PF: predicated region fallthrough
CT: control target
= control target key end

     0   :  { %14 = vsyncpa [#allocation7], 0  ;;  %s5598_s0 = inlined_call_operand.vmem [shape: bf16[64,128], index: 0, kind: input, shape index: {}]   ;;  %s5599_s1 = inlined_call_operand.hbm [shape: bf16[128,512], index: 1, kind: input, shape index: {}]   ;;  %s5600_s2 = inlined_call_operand.hbm [shape: bf16[128,512], index: 2, kind: input, shape index: {}]   ;;  %s5601_s3 = inlined_call_operand.vmem [shape: f32[1,512], index: 3, kind: input, shape index: {}]   ;;  %s5602_s4 = inlined_call_operand.hbm [shape: bf16[128,512], index: 4, kind: input, shape index: {}]   ;;  %s5603_s5 = inlined_call_operand.hbm [shape: bf16[128,512], index: 5, kind: input, shape index: {}]   ;;  %s5604_s6 = inlined_call_operand.vmem [shape: f32[1,512], index: 6, kind: input, shape index: {}]   ;;  %s5605_s7 = inlined_call_operand.vmem [shape: bf16[128,128], index: 7, kind: input, shape index: {}]   ;;  %s5606_s8 = inlined_call_operand.vmem [shape: f32[1,128], index: 8, kind: input, shape index: {}]   ;;  %s5607_s9 = inlined_call_operand.vmem [shape: f32[64,128], index: 9, kind: output, shape index: {}]  }
   0x1   :  { %15 = vsyncpa [#allocation9], 0 }
   0x2   :  { %16 = vsyncpa [#allocation12], 0  ;;  %s4372_s30 = smov [#allocation8]   ;;  %s4373_s11 = smov [#allocation6]  }
   0x3   :  { %s36_s10 = sshll.u32 %s4372_s30, 4  ;;  %s24_s12 = sshll.u32 %s4373_s11, 4  ;;  %s37_s10 = int_to_ptr.vmem [resolvable:$true] %s36_s10  ;;  %s25_s12 = int_to_ptr.vmem [resolvable:$true] %s24_s12 }
   0x4   :  { %s4294_s13 = scalar_lea.vmem %s37_s10, 4096  ;;  %p4299_p1 = scmp.lt.s32.totalorder %s37_s10, %s37_s10 }
   0x5   :  { %p4295_p0 = scmp.ne.s32.totalorder %s37_s10, %s4294_s13  ;;  %p4300_p2 = scmp.lt.s32.totalorder %s4294_s13, %s4294_s13 }
   0x7   :  { %p4301_p3 = por %p4300_p2, %p4299_p1 }
   0x9   :  { %p4302_p4 = pnand %p4301_p3, %p4295_p0 }
   0xb   :  { %4305 = shalt.err (!%p4302_p4)
}
   0xc   :  { %s4374_s14 = smov 256   ;;  %s4375_s15 = smov 16  }
   0xd   :  { %42 = dma.hbm_to_vmem [thread:$0]  %s5600_s2, 4096, %s37_s10, [#allocation9], %s4374_s14, %s4374_s14, %s4375_s15  }
   0xe   :  { %s4314_s18 = scalar_lea.vmem %s25_s12, 4096  ;;  %p4319_p6 = scmp.lt.s32.totalorder %s25_s12, %s25_s12 }
   0xf   :  { %p4315_p5 = scmp.ne.s32.totalorder %s25_s12, %s4314_s18  ;;  %p4320_p7 = scmp.lt.s32.totalorder %s4314_s18, %s4314_s18 }
  0x11   :  { %p4321_p8 = por %p4320_p7, %p4319_p6 }
  0x13   :  { %p4322_p9 = pnand %p4321_p8, %p4315_p5 }
  0x15   :  { %4325 = shalt.err (!%p4322_p9)
}
  0x16   :  { %30 = dma.hbm_to_vmem [thread:$0]  %s5599_s1, 4096, %s25_s12, [#allocation7], %s4374_s14, %s4374_s14, %s4375_s15  }
  0x17   :  { %s4376_s21 = smov [#allocation10]   ;;  %s4377_s23 = smov [#allocation11]  }
  0x18   :  { %s50_s22 = sshll.u32 %s4376_s21, 4  ;;  %s62_s24 = sshll.u32 %s4377_s23, 4  ;;  %s51_s22 = int_to_ptr.vmem [resolvable:$true] %s50_s22  ;;  %s63_s24 = int_to_ptr.vmem [resolvable:$true] %s62_s24 }
  0x19   :  { %s4334_s2 = scalar_lea.vmem %s51_s22, 4096  ;;  %p4339_p11 = scmp.lt.s32.totalorder %s51_s22, %s51_s22 }
  0x1a   :  { %p4335_p10 = scmp.ne.s32.totalorder %s51_s22, %s4334_s2  ;;  %p4340_p12 = scmp.lt.s32.totalorder %s4334_s2, %s4334_s2 }
  0x1c   :  { %p4341_p13 = por %p4340_p12, %p4339_p11 }
  0x1e   :  { %p4342_p0 = pnand %p4341_p13, %p4335_p10 }
  0x20   :  { %4345 = shalt.err (!%p4342_p0)
}
  0x21   :  { %56 = dma.hbm_to_vmem [thread:$0]  %s5602_s4, 4096, %s51_s22, [#allocation9], %s4374_s14, %s4374_s14, %s4375_s15  }
  0x22   :  { %s4354_s1 = scalar_lea.vmem %s63_s24, 4096  ;;  %p4359_p2 = scmp.lt.s32.totalorder %s63_s24, %s63_s24 }
  0x23   :  { %p4355_p1 = scmp.ne.s32.totalorder %s63_s24, %s4354_s1  ;;  %p4360_p3 = scmp.lt.s32.totalorder %s4354_s1, %s4354_s1 }
  0x25   :  { %p4361_p4 = por %p4360_p3, %p4359_p2 }
  0x27   :  { %p4362_p5 = pnand %p4361_p4, %p4355_p1 }
  0x29   :  { %4365 = shalt.err (!%p4362_p5)
}
  0x2a   :  { %68 = dma.hbm_to_vmem [thread:$0]  %s5603_s5, 4096, %s63_s24, [#allocation12], %s4374_s14, %s4374_s14, %s4375_s15  }
  0x2b   :  { %4366 = dma.done.wait [#allocation7], 4096  }
  0x2c   :  { %4367 = vsyncadd [#allocation7], 4294963200 }
  0x2d   :  { %4368 = dma.done.wait [#allocation9], 8192  }
  0x2e   :  { %4369 = vsyncadd [#allocation9], 4294959104 }
  0x2f   :  { %4370 = dma.done.wait [#allocation12], 4096  }
  0x30   :  { %4371 = vsyncadd [#allocation12], 4294963200  ;;  %v5610_v0 = vmov 0   ;;  %v3754_v1 = vld [vmem:[#allocation6 + $0xe4] ss:$16 sps:$4 sm:$0xff]   ;;  %v4506_v34 = vld [vmem:[%s5598_s0] sm:$0xff]  }
  0x31   :  { %400 = vmatprep.mubr.bf16.mxu1 %v5610_v0  ;;  %153 = vst [vmem:[#allocation4] sm:$0xf] %v5610_v0  ;;  %747 = vmatprep.mubr.bf16.mxu0 %v5610_v0  ;;  %v3756_v2 = vld [vmem:[#allocation6 + $0xe0] ss:$16 sps:$4 sm:$0xff]   ;;  %v4456_v3 = vld [vmem:[#allocation8 + $0xe4] ss:$16 sps:$4 sm:$0xff]  }
  0x32   :  { %368 = vmatprep.subr.bf16.mxu1 %v3754_v1  ;;  %v4458_v4 = vld [vmem:[#allocation8 + $0xe0] ss:$16 sps:$4 sm:$0xff]   ;;  %v3760_v5 = vld [vmem:[#allocation6 + $0xc4] ss:$16 sps:$4 sm:$0xff]   ;;  %715 = vmatprep.subr.bf16.mxu0 %v4456_v3  ;;  %v3805_v32 = vld [vmem:[#allocation6 + $0xec] ss:$16 sps:$4 sm:$0xff]  }
  0x33   :  { %369 = vmatpush1.bf16.msra.mxu1 %v3756_v2  ;;  %v3762_v6 = vld [vmem:[#allocation6 + $0xc0] ss:$16 sps:$4 sm:$0xff]   ;;  %v4461_v7 = vld [vmem:[#allocation8 + $0xc4] ss:$16 sps:$4 sm:$0xff]   ;;  %716 = vmatpush1.bf16.msra.mxu0 %v4458_v4  ;;  %v3803_v35 = vld [vmem:[#allocation6 + $0xe8] ss:$16 sps:$4 sm:$0xff]  }
  0x34   :  { %370 = vmatprep.subr.bf16.mxu1 %v3760_v5  ;;  %v4464_v8 = vld [vmem:[#allocation8 + $0xc0] ss:$16 sps:$4 sm:$0xff]   ;;  %717 = vmatprep.subr.bf16.mxu0 %v4461_v7  ;;  %v3766_v9 = vld [vmem:[#allocation6 + $0xa4] ss:$16 sps:$4 sm:$0xff]   ;;  %v3808_v36 = vld [vmem:[#allocation6 + $0xcc] ss:$16 sps:$4 sm:$0xff]  }
  0x35   :  { %v3768_v10 = vld [vmem:[#allocation6 + $0xa0] ss:$16 sps:$4 sm:$0xff]   ;;  %v4467_v11 = vld [vmem:[#allocation8 + $0xa4] ss:$16 sps:$4 sm:$0xff]   ;;  %v3806_v38 = vld [vmem:[#allocation6 + $0xc8] ss:$16 sps:$4 sm:$0xff]  }
  0x36   :  { %v3772_v12 = vld [vmem:[#allocation6 + $0x84] ss:$16 sps:$4 sm:$0xff]   ;;  %v4470_v13 = vld [vmem:[#allocation8 + $0xa0] ss:$16 sps:$4 sm:$0xff]   ;;  %v3812_v39 = vld [vmem:[#allocation6 + $0xac] ss:$16 sps:$4 sm:$0xff]  }
  0x37   :  { %371 = vmatpush1.bf16.msra.mxu1 %v3762_v6  ;;  %718 = vmatpush1.bf16.msra.mxu0 %v4464_v8  ;;  %v4473_v14 = vld [vmem:[#allocation8 + $0x84] ss:$16 sps:$4 sm:$0xff]   ;;  %v3774_v15 = vld [vmem:[#allocation6 + $0x80] ss:$16 sps:$4 sm:$0xff]   ;;  %v3810_v41 = vld [vmem:[#allocation6 + $0xa8] ss:$16 sps:$4 sm:$0xff]  }
  0x38   :  { %372 = vmatprep.subr.bf16.mxu1 %v3766_v9  ;;  %719 = vmatprep.subr.bf16.mxu0 %v4467_v11  ;;  %v3778_v16 = vld [vmem:[#allocation6 + $0x64] ss:$16 sps:$4 sm:$0xff]   ;;  %v4476_v17 = vld [vmem:[#allocation8 + $0x80] ss:$16 sps:$4 sm:$0xff]   ;;  %v4509_v37 = vld [vmem:[#allocation4] sm:$0xf] }
  0x39   :  { %v4479_v18 = vld [vmem:[#allocation8 + $0x64] ss:$16 sps:$4 sm:$0xff]   ;;  %v3780_v19 = vld [vmem:[#allocation6 + $0x60] ss:$16 sps:$4 sm:$0xff]   ;;  %v3815_v42 = vld [vmem:[#allocation6 + $0x8c] ss:$16 sps:$4 sm:$0xff]  }
  0x3a   :  { %v3784_v20 = vld [vmem:[#allocation6 + $0x44] ss:$16 sps:$4 sm:$0xff]   ;;  %v4482_v21 = vld [vmem:[#allocation8 + $0x60] ss:$16 sps:$4 sm:$0xff]   ;;  %v3813_v43 = vld [vmem:[#allocation6 + $0x88] ss:$16 sps:$4 sm:$0xff]  }
  0x3b   :  { %373 = vmatpush1.bf16.msra.mxu1 %v3768_v10  ;;  %720 = vmatpush1.bf16.msra.mxu0 %v4470_v13  ;;  %v4485_v22 = vld [vmem:[#allocation8 + $0x44] ss:$16 sps:$4 sm:$0xff]   ;;  %v3786_v23 = vld [vmem:[#allocation6 + $0x40] ss:$16 sps:$4 sm:$0xff]   ;;  %v3819_v44 = vld [vmem:[#allocation6 + $0x6c] ss:$16 sps:$4 sm:$0xff]  }
  0x3c   :  { %374 = vmatprep.subr.bf16.mxu1 %v3772_v12  ;;  %721 = vmatprep.subr.bf16.mxu0 %v4473_v14  ;;  %v3790_v24 = vld [vmem:[#allocation6 + $0x24] ss:$16 sps:$4 sm:$0xff]   ;;  %v4488_v25 = vld [vmem:[#allocation8 + $0x40] ss:$16 sps:$4 sm:$0xff]   ;;  %v3817_v46 = vld [vmem:[#allocation6 + $0x68] ss:$16 sps:$4 sm:$0xff]   ;;  %v164_v12 = vlaneseq }
  0x3d   :  { %v4491_v26 = vld [vmem:[#allocation8 + $0x24] ss:$16 sps:$4 sm:$0xff]   ;;  %v3792_v27 = vld [vmem:[#allocation6 + $0x20] ss:$16 sps:$4 sm:$0xff]   ;;  %v3822_v47 = vld [vmem:[#allocation6 + $0x4c] ss:$16 sps:$4 sm:$0xff]  }
  0x3e   :  { %v3796_v28 = vld [vmem:[#allocation6 + $0x4] ss:$16 sps:$4 sm:$0xff]   ;;  %v4494_v29 = vld [vmem:[#allocation8 + $0x20] ss:$16 sps:$4 sm:$0xff]   ;;  %v3820_v48 = vld [vmem:[#allocation6 + $0x48] ss:$16 sps:$4 sm:$0xff]  }
  0x3f   :  { %375 = vmatpush1.bf16.msra.mxu1 %v3774_v15  ;;  %722 = vmatpush1.bf16.msra.mxu0 %v4476_v17  ;;  %v4497_v30 = vld [vmem:[#allocation8 + $0x4] ss:$16 sps:$4 sm:$0xff]   ;;  %v3798_v31 = vld [vmem:[#allocation6] ss:$16 sps:$4 sm:$0xff]   ;;  %v3826_v49 = vld [vmem:[#allocation6 + $0x2c] ss:$16 sps:$4 sm:$0xff]  }
  0x40   :  { %376 = vmatprep.subr.bf16.mxu1 %v3778_v16  ;;  %723 = vmatprep.subr.bf16.mxu0 %v4479_v18  ;;  %v4500_v33 = vld [vmem:[#allocation8] ss:$16 sps:$4 sm:$0xff]   ;;  %v3809_v40 = vld [vmem:[%s5598_s0 + $0x8] sm:$0xff]   ;;  %v3823_v50 = vld [vmem:[%s5598_s0 + $0x18] sm:$0xff]   ;;  %v4616_v15 = vshrl.u32 %v164_v12, 7 }
  0x41   :  { %v3816_v45 = vld [vmem:[%s5598_s0 + $0x10] sm:$0xff]   ;;  %v3824_v51 = vld [vmem:[#allocation6 + $0x28] ss:$16 sps:$4 sm:$0xff]  }
  0x42   :  { %v3829_v52 = vld [vmem:[#allocation6 + $0xc] ss:$16 sps:$4 sm:$0xff]   ;;  %v3827_v53 = vld [vmem:[#allocation6 + $0x8] ss:$16 sps:$4 sm:$0xff]   ;;  %5616 = vst [vmem:[#allocation16_spill] sm:$0xff] %v4616_v15  ;;  %v5609_v16 = vsub.s32 0, %v4616_v15 }
  0x43   :  { %377 = vmatpush1.bf16.msra.mxu1 %v3780_v19  ;;  %724 = vmatpush1.bf16.msra.mxu0 %v4482_v21  ;;  %v4538_v54 = vld [vmem:[#allocation8 + $0xec] ss:$16 sps:$4 sm:$0xff]   ;;  %v4542_v55 = vld [vmem:[#allocation8 + $0xe8] ss:$16 sps:$4 sm:$0xff]  }
  0x44   :  { %378 = vmatprep.subr.bf16.mxu1 %v3784_v20  ;;  %725 = vmatprep.subr.bf16.mxu0 %v4485_v22  ;;  %v4545_v56 = vld [vmem:[#allocation8 + $0xcc] ss:$16 sps:$4 sm:$0xff]   ;;  %v4549_v57 = vld [vmem:[#allocation8 + $0xc8] ss:$16 sps:$4 sm:$0xff]  }
  0x45   :  { %v4553_v58 = vld [vmem:[#allocation8 + $0xac] ss:$16 sps:$4 sm:$0xff]   ;;  %v4559_v59 = vld [vmem:[#allocation8 + $0xa8] ss:$16 sps:$4 sm:$0xff]  }
  0x46   :  { %v4561_v60 = vld [vmem:[#allocation8 + $0x8c] ss:$16 sps:$4 sm:$0xff]   ;;  %v4566_v61 = vld [vmem:[#allocation8 + $0x88] ss:$16 sps:$4 sm:$0xff]  }
  0x47   :  { %379 = vmatpush1.bf16.msra.mxu1 %v3786_v23  ;;  %726 = vmatpush1.bf16.msra.mxu0 %v4488_v25  ;;  %v4570_v62 = vld [vmem:[#allocation8 + $0x6c] ss:$16 sps:$4 sm:$0xff]   ;;  %v4573_v63 = vld [vmem:[#allocation8 + $0x68] ss:$16 sps:$4 sm:$0xff]   ;;  %v5608_v23 = vsub.s32 1, %v4616_v15 }
  0x48   :  { %380 = vmatprep.subr.bf16.mxu1 %v3790_v24  ;;  %727 = vmatprep.subr.bf16.mxu0 %v4491_v26  ;;  %v4576_v1 = vld [vmem:[#allocation8 + $0x4c] ss:$16 sps:$4 sm:$0xff]   ;;  %v4579_v2 = vld [vmem:[#allocation8 + $0x48] ss:$16 sps:$4 sm:$0xff]  }
  0x49   :  { %v4583_v5 = vld [vmem:[#allocation8 + $0x2c] ss:$16 sps:$4 sm:$0xff]   ;;  %v4586_v6 = vld [vmem:[#allocation8 + $0x28] ss:$16 sps:$4 sm:$0xff]  }
  0x4a   :  { %v4589_v9 = vld [vmem:[#allocation8 + $0xc] ss:$16 sps:$4 sm:$0xff]   ;;  %v4592_v10 = vld [vmem:[#allocation8 + $0x8] ss:$16 sps:$4 sm:$0xff]  }
  0x4b   :  { %381 = vmatpush1.bf16.msra.mxu1 %v3792_v27  ;;  %728 = vmatpush1.bf16.msra.mxu0 %v4494_v29  ;;  %v152_v19 = vld [vmem:[%s5601_s3] sm:$0xf] }
  0x4c   :  { %382 = vmatprep.subr.bf16.mxu1 %v3796_v28  ;;  %729 = vmatprep.subr.bf16.mxu0 %v4497_v30  ;;  %v167_v28 = vrot.slane %v152_v19, %v5609_v16  ;;  %v5613_v16 = vsub.s32 3, %v4616_v15 }
  0x4f   :  { %383 = vmatpush1.bf16.msra.mxu1 %v3798_v31  ;;  %730 = vmatpush1.bf16.msra.mxu0 %v4500_v33 }
  0x50   :  { %441 = vmatprep.subr.bf16.mxu1 %v3805_v32  ;;  %843 = vmatprep.subr.bf16.mxu0 %v4456_v3 }
  0x52   :  { %401 = vmatmul.mubr.bf16.vlgmr.msra.gmra.mxu1 %v4506_v34  ;;  %748 = vmatmul.mubr.bf16.vlgmr.msra.gmra.mxu0 %v4509_v37 }
  0x53   :  { %442 = vmatpush1.bf16.msra.mxu1 %v3803_v35  ;;  %410 = vmatprep.mubr.bf16.mxu1 %v5610_v0 }
  0x54   :  { %443 = vmatprep.subr.bf16.mxu1 %v3808_v36  ;;  %844 = vmatpush1.bf16.msra.mxu0 %v4458_v4 }
  0x55   :  { %875 = vmatprep.mubr.bf16.mxu0 %v5610_v0  ;;  %845 = vmatprep.subr.bf16.mxu0 %v4461_v7 }
  0x57   :  { %444 = vmatpush1.bf16.msra.mxu1 %v3806_v38 }
  0x58   :  { %445 = vmatprep.subr.bf16.mxu1 %v3812_v39  ;;  %846 = vmatpush1.bf16.msra.mxu0 %v4464_v8 }
  0x59   :  { %847 = vmatprep.subr.bf16.mxu0 %v4467_v11 }
  0x5a   :  { %411 = vmatmul.mubr.bf16.gmra.mxu1 %v3809_v40 }
  0x5b   :  { %446 = vmatpush1.bf16.msra.mxu1 %v3810_v41  ;;  %420 = vmatprep.mubr.bf16.mxu1 %v5610_v0 }
  0x5c   :  { %447 = vmatprep.subr.bf16.mxu1 %v3815_v42  ;;  %848 = vmatpush1.bf16.msra.mxu0 %v4470_v13 }
  0x5d   :  { %849 = vmatprep.subr.bf16.mxu0 %v4473_v14 }
  0x5f   :  { %448 = vmatpush1.bf16.msra.mxu1 %v3813_v43 }
  0x60   :  { %449 = vmatprep.subr.bf16.mxu1 %v3819_v44  ;;  %850 = vmatpush1.bf16.msra.mxu0 %v4476_v17 }
  0x61   :  { %851 = vmatprep.subr.bf16.mxu0 %v4479_v18 }
  0x62   :  { %421 = vmatmul.mubr.bf16.gmra.mxu1 %v3816_v45 }
  0x63   :  { %450 = vmatpush1.bf16.msra.mxu1 %v3817_v46  ;;  %430 = vmatprep.mubr.bf16.mxu1 %v5610_v0 }
  0x64   :  { %451 = vmatprep.subr.bf16.mxu1 %v3822_v47  ;;  %852 = vmatpush1.bf16.msra.mxu0 %v4482_v21 }
  0x65   :  { %853 = vmatprep.subr.bf16.mxu0 %v4485_v22 }
  0x67   :  { %452 = vmatpush1.bf16.msra.mxu1 %v3820_v48 }
  0x68   :  { %453 = vmatprep.subr.bf16.mxu1 %v3826_v49  ;;  %854 = vmatpush1.bf16.msra.mxu0 %v4488_v25 }
  0x69   :  { %855 = vmatprep.subr.bf16.mxu0 %v4491_v26 }
  0x6a   :  { %431 = vmatmul.mubr.bf16.gmra.mxu1 %v3823_v50 }
  0x6b   :  { %454 = vmatpush1.bf16.msra.mxu1 %v3824_v51  ;;  %473 = vmatprep.mubr.bf16.mxu1 %v5610_v0 }
  0x6c   :  { %455 = vmatprep.subr.bf16.mxu1 %v3829_v52  ;;  %856 = vmatpush1.bf16.msra.mxu0 %v4494_v29 }
  0x6d   :  { %857 = vmatprep.subr.bf16.mxu0 %v4497_v30 }
  0x6f   :  { %456 = vmatpush1.bf16.msra.mxu1 %v3827_v53 }
  0x70   :  { %756 = vmatprep.subr.bf16.mxu1 %v4538_v54  ;;  %858 = vmatpush1.bf16.msra.mxu0 %v4500_v33 }
  0x71   :  { %971 = vmatprep.subr.bf16.mxu0 %v4456_v3 }
  0x72   :  { %474 = vmatmul.mubr.bf16.vlgmr.msra.gmra.mxu1 %v4506_v34  ;;  %v171_v34 = vrot.slane %v152_v19, %v5608_v23 }
  0x73   :  { %757 = vmatpush1.bf16.msra.mxu1 %v4542_v55  ;;  %483 = vmatprep.mubr.bf16.mxu1 %v5610_v0 }
  0x74   :  { %758 = vmatprep.subr.bf16.mxu1 %v4545_v56 }
  0x77   :  { %759 = vmatpush1.bf16.msra.mxu1 %v4549_v57 }
  0x78   :  { %760 = vmatprep.subr.bf16.mxu1 %v4553_v58 }
  0x7a   :  { %484 = vmatmul.mubr.bf16.gmra.mxu1 %v3809_v40 }
  0x7b   :  { %761 = vmatpush1.bf16.msra.mxu1 %v4559_v59  ;;  %493 = vmatprep.mubr.bf16.mxu1 %v5610_v0 }
  0x7c   :  { %762 = vmatprep.subr.bf16.mxu1 %v4561_v60 }
  0x7f   :  { %763 = vmatpush1.bf16.msra.mxu1 %v4566_v61 }
  0x80   :  { %764 = vmatprep.subr.bf16.mxu1 %v4570_v62 }
  0x82   :  { %494 = vmatmul.mubr.bf16.gmra.mxu1 %v3816_v45 }
  0x83   :  { %765 = vmatpush1.bf16.msra.mxu1 %v4573_v63  ;;  %503 = vmatprep.mubr.bf16.mxu1 %v5610_v0 }
  0x84   :  { %766 = vmatprep.subr.bf16.mxu1 %v4576_v1 }
  0x87   :  { %767 = vmatpush1.bf16.msra.mxu1 %v4579_v2 }
  0x88   :  { %768 = vmatprep.subr.bf16.mxu1 %v4583_v5 }
  0x8a   :  { %504 = vmatmul.mubr.bf16.gmra.mxu1 %v3823_v50 }
  0x8b   :  { %769 = vmatpush1.bf16.msra.mxu1 %v4586_v6  ;;  %788 = vmatprep.mubr.bf16.mxu1 %v5610_v0 }
  0x8c   :  { %770 = vmatprep.subr.bf16.mxu1 %v4589_v9 }
  0x8f   :  { %771 = vmatpush1.bf16.msra.mxu1 %v4592_v10 }
  0x90   :  { %884 = vmatprep.subr.bf16.mxu1 %v4538_v54 }
  0x92   :  { %789 = vmatmul.mubr.bf16.vlgmr.msra.gmra.mxu1 %v4509_v37 }
  0x93   :  { %885 = vmatpush1.bf16.msra.mxu1 %v4542_v55  ;;  %916 = vmatprep.mubr.bf16.mxu1 %v5610_v0 }
  0x94   :  { %886 = vmatprep.subr.bf16.mxu1 %v4545_v56 }
  0x97   :  { %887 = vmatpush1.bf16.msra.mxu1 %v4549_v57 }
  0x98   :  { %888 = vmatprep.subr.bf16.mxu1 %v4553_v58 }
  0x9b   :  { %889 = vmatpush1.bf16.msra.mxu1 %v4559_v59 }
  0x9c   :  { %890 = vmatprep.subr.bf16.mxu1 %v4561_v60 }
  0x9f   :  { %891 = vmatpush1.bf16.msra.mxu1 %v4566_v61 }
  0xa0   :  { %892 = vmatprep.subr.bf16.mxu1 %v4570_v62 }
  0xa3   :  { %893 = vmatpush1.bf16.msra.mxu1 %v4573_v63 }
  0xa4   :  { %894 = vmatprep.subr.bf16.mxu1 %v4576_v1 }
  0xa7   :  { %895 = vmatpush1.bf16.msra.mxu1 %v4579_v2 }
  0xa8   :  { %896 = vmatprep.subr.bf16.mxu1 %v4583_v5 }
  0xab   :  { %897 = vmatpush1.bf16.msra.mxu1 %v4586_v6 }
  0xac   :  { %898 = vmatprep.subr.bf16.mxu1 %v4589_v9 }
  0xaf   :  { %899 = vmatpush1.bf16.msra.mxu1 %v4592_v10 }
  0xb0   :  { %1012 = vmatprep.subr.bf16.mxu1 %v4538_v54 }
 0x112   :  { %v402_v20 = vpop.f32.mrf.mxu1  ;;  %v749_v27 = vpop.f32.mrf.mxu0 }
 0x114   :  { %v404_v24 = vpop.f32.mrf.mxu1  ;;  %v751_v32 = vpop.f32.mrf.mxu0 }
 0x116   :  { %v406_v31 = vpop.f32.mrf.mxu1  ;;  %v753_v37 = vpop.f32.mrf.mxu0 }
 0x117   :  { %v4627_v35 = vadd.f32 %v406_v31, %v167_v28 }
 0x118   :  { %v408_v36 = vpop.f32.mrf.mxu1  ;;  %v754_v40 = vpop.f32.mrf.mxu0 }
 0x119   :  { %v4629_v38 = vadd.f32 %v408_v36, %v171_v34 }
 0x11a   :  { %v412_v39 = vpop.f32.mrf.mxu1 }
 0x11b   :  { %v4631_v41 = vadd.f32 %v412_v39, %v167_v28 }
 0x11c   :  { %v414_v42 = vpop.f32.mrf.mxu1 }
 0x11d   :  { %v4633_v43 = vadd.f32 %v414_v42, %v171_v34 }
 0x11e   :  { %v416_v44 = vpop.f32.mrf.mxu1 }
 0x11f   :  { %v4635_v45 = vadd.f32 %v416_v44, %v167_v28 }
 0x120   :  { %v418_v46 = vpop.f32.mrf.mxu1 }
 0x121   :  { %v4637_v47 = vadd.f32 %v418_v46, %v171_v34 }
 0x122   :  { %v422_v48 = vpop.f32.mrf.mxu1 }
 0x123   :  { %v4639_v49 = vadd.f32 %v422_v48, %v167_v28 }
 0x124   :  { %v424_v50 = vpop.f32.mrf.mxu1 }
 0x125   :  { %5617 = vst [vmem:[#allocation17_spill] sm:$0xff] %v4639_v49  ;;  %v4641_v51 = vadd.f32 %v424_v50, %v171_v34  ;;  %v5612_v50 = vsub.s32 2, %v4616_v15 }
 0x126   :  { %v426_v52 = vpop.f32.mrf.mxu1 }
 0x127   :  { %5618 = vst [vmem:[#allocation18_spill] sm:$0xff] %v4641_v51  ;;  %v4643_v53 = vadd.f32 %v426_v52, %v167_v28  ;;  %v405_v52 = vadd.f32 %v404_v24, %v171_v34 }
 0x128   :  { %v428_v12 = vpop.f32.mrf.mxu1 }
 0x129   :  { %5619 = vst [vmem:[#allocation19_spill] sm:$0xff] %v4643_v53  ;;  %v4645_v31 = vadd.f32 %v428_v12, %v171_v34  ;;  %v403_v12 = vadd.f32 %v402_v20, %v167_v28 }
 0x12a   :  { %v432_v36 = vpop.f32.mrf.mxu1 }
 0x12b   :  { %5620 = vst [vmem:[#allocation20_spill] sm:$0xff] %v4645_v31  ;;  %v4647_v37 = vadd.f32 %v432_v36, %v167_v28  ;;  %v175_v36 = vrot.slane %v152_v19, %v5612_v50 }
 0x12c   :  { %v434_v39 = vpop.f32.mrf.mxu1 }
 0x12d   :  { %5621 = vst [vmem:[#allocation21_spill] sm:$0xff] %v4647_v37  ;;  %v4649_v40 = vadd.f32 %v434_v39, %v171_v34  ;;  %v798_v39 = vadd.f32 %v751_v32, %v405_v52 }
 0x12e   :  { %v436_v42 = vpop.f32.mrf.mxu1 }
 0x12f   :  { %5622 = vst [vmem:[#allocation22_spill] sm:$0xff] %v4649_v40  ;;  %v4651_v44 = vadd.f32 %v436_v42, %v167_v28  ;;  %v179_v42 = vrot.slane %v152_v19, %v5613_v16  ;;  %v3583_v24 = vmul.f32 -1.442695, %v798_v39 }
 0x130   :  { %v438_v46 = vpop.f32.mrf.mxu1 }
 0x131   :  { %5623 = vst [vmem:[#allocation23_spill] sm:$0xff] %v4651_v44  ;;  %v4653_v48 = vadd.f32 %v438_v46, %v171_v34  ;;  %v797_v46 = vadd.f32 %v749_v27, %v403_v12  ;;  %3966 = vpow2.f32 %v3583_v24 }
 0x132   :  { %v475_v23 = vpop.f32.mrf.mxu1 }
 0x133   :  { %5624 = vst [vmem:[#allocation24_spill] sm:$0xff] %v4653_v48  ;;  %v3582_v20 = vmul.f32 -1.442695, %v797_v46  ;;  %v476_v49 = vadd.f32 %v475_v23, %v175_v36 }
 0x134   :  { %v477_v0 = vpop.f32.mrf.mxu1 }
 0x135   :  { %3968 = vpow2.f32 %v3582_v20 }
 0x136   :  { %v479_v37 = vpop.f32.mrf.mxu1 }
 0x137   :  { %v4661_v44 = vadd.f32 %v479_v37, %v175_v36 }
 0x138   :  { %v481_v48 = vpop.f32.mrf.mxu1 }
 0x139   :  { %v4663_v40 = vadd.f32 %v481_v48, %v179_v42 }
 0x13a   :  { %v485_v31 = vpop.f32.mrf.mxu1 }
 0x13b   :  { %v4665_v34 = vadd.f32 %v485_v31, %v175_v36 }
 0x13c   :  { %v487_v28 = vpop.f32.mrf.mxu1 }
 0x13d   :  { %v4667_v53 = vadd.f32 %v487_v28, %v179_v42 }
 0x13e   :  { %v489_v50 = vpop.f32.mrf.mxu1 }
 0x13f   :  { %v4669_v32 = vadd.f32 %v489_v50, %v175_v36  ;;  %v3967_v50 = vpop.eup %3966 }
 0x140   :  { %v491_v19 = vpop.f32.mrf.mxu1 }
 0x141   :  { %5625 = vst [vmem:[#allocation25_spill] sm:$0xff] %v4669_v32  ;;  %v4671_v37 = vadd.f32 %v491_v19, %v179_v42 }
 0x142   :  { %v495_v27 = vpop.f32.mrf.mxu1  ;;  %v3969_v15 = vpop.eup %3968 }
 0x143   :  { %5626 = vst [vmem:[#allocation26_spill] sm:$0xff] %v4671_v37  ;;  %v4673_v52 = vadd.f32 %v495_v27, %v175_v36  ;;  %v810_v27 = vadd.f32 1.0, %v3967_v50 }
 0x144   :  { %v497_v48 = vpop.f32.mrf.mxu1 }
 0x145   :  { %5627 = vst [vmem:[#allocation27_spill] sm:$0xff] %v4673_v52  ;;  %v4675_v12 = vadd.f32 %v497_v48, %v179_v42  ;;  %v804_v48 = vadd.f32 1.0, %v3969_v15  ;;  %3970 = vrcp.f32 %v810_v27 }
 0x146   :  { %v499_v31 = vpop.f32.mrf.mxu1 }
 0x147   :  { %5628 = vst [vmem:[#allocation28_spill] sm:$0xff] %v4675_v12  ;;  %v4677_v39 = vadd.f32 %v499_v31, %v175_v36  ;;  %3972 = vrcp.f32 %v804_v48 }
 0x148   :  { %v501_v46 = vpop.f32.mrf.mxu1 }
 0x149   :  { %5629 = vst [vmem:[#allocation29_spill] sm:$0xff] %v4677_v39  ;;  %v4679_v28 = vadd.f32 %v501_v46, %v179_v42  ;;  %v478_v46 = vadd.f32 %v477_v0, %v179_v42 }
 0x14a   :  { %v505_v16 = vpop.f32.mrf.mxu1 }
 0x14b   :  { %5630 = vst [vmem:[#allocation30_spill] sm:$0xff] %v4679_v28  ;;  %v4681_v24 = vadd.f32 %v505_v16, %v175_v36 }
 0x14c   :  { %v507_v20 = vpop.f32.mrf.mxu1 }
 0x14d   :  { %5631 = vst [vmem:[#allocation31_spill] sm:$0xff] %v4681_v24  ;;  %v4683_v19 = vadd.f32 %v507_v20, %v179_v42 }
 0x14e   :  { %v509_v51 = vpop.f32.mrf.mxu1 }
 0x14f   :  { %5632 = vst [vmem:[#allocation32_spill] sm:$0xff] %v4683_v19  ;;  %v4685_v52 = vadd.f32 %v509_v51, %v175_v36 }
 0x150   :  { %v511_v12 = vpop.f32.mrf.mxu1 }
 0x151   :  { %5633 = vst [vmem:[#allocation33_spill] sm:$0xff] %v4685_v52  ;;  %v4687_v31 = vadd.f32 %v511_v12, %v179_v42 }
 0x152   :  { %v790_v39 = vpop.f32.mrf.mxu1  ;;  %v3971_v50 = vpop.eup %3970 }
 0x153   :  { %v799_v28 = vadd.f32 %v790_v39, %v476_v49  ;;  %v820_v15 = vmul.f32 0.0, %v3971_v50 }
 0x154   :  { %v792_v16 = vpop.f32.mrf.mxu1  ;;  %v3973_v51 = vpop.eup %3972 }
 0x155   :  { %3974 = vtanh.f32 %v799_v28  ;;  %v800_v24 = vadd.f32 %v792_v16, %v478_v46 }
 0x156   :  { %v794_v32 = vpop.f32.mrf.mxu1 }
 0x157   :  { %v3584_v20 = vmul.f32 -1.442695, %v800_v24 }
 0x158   :  { %v795_v19 = vpop.f32.mrf.mxu1 }
 0x159   :  { %3976 = vpow2.f32 %v3584_v20 }
 0x162   :  { %v3975_v52 = vpop.eup %3974 }
 0x163   :  { %v821_v37 = vmul.f32 %v3975_v52, %v3973_v51 }
 0x165   :  { %v4689_v23 = vadd.f32 %v821_v37, %v820_v15  ;;  %v5634_v37 = vmov 0  }
 0x166   :  { %v3977_v36 = vpop.eup %3976 }
 0x167   :  { %v817_v12 = vadd.f32 1.0, %v3977_v36  ;;  %3978 = vtanh.f32 %v4689_v23 }
 0x169   :  { %3980 = vrcp.f32 %v817_v12 }
 0x174   :  { %v3979_v0 = vpop.eup %3978 }
 0x176   :  { %v3981_v49 = vpop.eup %3980 }
 0x177   :  { %v824_v42 = vmul.f32 %v3981_v49, %v3979_v0 }
 0x179   :  { %v825_v39 = vpack.c.bf16 %v824_v42, %v824_v42 }
 0x17b   :  { %827 = vst [vmem:[#allocation4] sm:$0xf] %v825_v39  ;;  %833 = vst [vmem:[#allocation3] sm:$0xf] %v825_v39 }
 0x182   :  { %v834_v32 = vld [vmem:[#allocation4] sm:$0xf] }
 0x183   :  { %876 = vmatmul.mubr.bf16.vlgmr.msra.gmra.mxu0 %v834_v32  ;;  %917 = vmatmul.mubr.bf16.vlgmr.msra.gmra.mxu1 %v834_v32 }
 0x184   :  { %972 = vmatpush1.bf16.msra.mxu0 %v4458_v4  ;;  %1013 = vmatpush1.bf16.msra.mxu1 %v4542_v55 }
 0x185   :  { %973 = vmatprep.subr.bf16.mxu0 %v4461_v7  ;;  %1014 = vmatprep.subr.bf16.mxu1 %v4545_v56 }
 0x186   :  { %1003 = vmatprep.mubr.bf16.mxu0 %v5634_v37  ;;  %1044 = vmatprep.mubr.bf16.mxu1 %v5634_v37 }
 0x188   :  { %974 = vmatpush1.bf16.msra.mxu0 %v4464_v8  ;;  %1015 = vmatpush1.bf16.msra.mxu1 %v4549_v57 }
 0x189   :  { %975 = vmatprep.subr.bf16.mxu0 %v4467_v11  ;;  %1016 = vmatprep.subr.bf16.mxu1 %v4553_v58 }
 0x18c   :  { %976 = vmatpush1.bf16.msra.mxu0 %v4470_v13  ;;  %1017 = vmatpush1.bf16.msra.mxu1 %v4559_v59 }
 0x18d   :  { %977 = vmatprep.subr.bf16.mxu0 %v4473_v14  ;;  %1018 = vmatprep.subr.bf16.mxu1 %v4561_v60 }
 0x190   :  { %978 = vmatpush1.bf16.msra.mxu0 %v4476_v17  ;;  %1019 = vmatpush1.bf16.msra.mxu1 %v4566_v61 }
 0x191   :  { %979 = vmatprep.subr.bf16.mxu0 %v4479_v18  ;;  %1020 = vmatprep.subr.bf16.mxu1 %v4570_v62 }
 0x194   :  { %980 = vmatpush1.bf16.msra.mxu0 %v4482_v21  ;;  %1021 = vmatpush1.bf16.msra.mxu1 %v4573_v63 }
 0x195   :  { %981 = vmatprep.subr.bf16.mxu0 %v4485_v22  ;;  %1022 = vmatprep.subr.bf16.mxu1 %v4576_v1 }
 0x198   :  { %982 = vmatpush1.bf16.msra.mxu0 %v4488_v25  ;;  %1023 = vmatpush1.bf16.msra.mxu1 %v4579_v2 }
 0x199   :  { %983 = vmatprep.subr.bf16.mxu0 %v4491_v26  ;;  %1024 = vmatprep.subr.bf16.mxu1 %v4583_v5 }
 0x19c   :  { %984 = vmatpush1.bf16.msra.mxu0 %v4494_v29  ;;  %1025 = vmatpush1.bf16.msra.mxu1 %v4586_v6 }
 0x19d   :  { %985 = vmatprep.subr.bf16.mxu0 %v4497_v30  ;;  %1026 = vmatprep.subr.bf16.mxu1 %v4589_v9 }
 0x1a0   :  { %986 = vmatpush1.bf16.msra.mxu0 %v4500_v33  ;;  %1027 = vmatpush1.bf16.msra.mxu1 %v4592_v10 }
 0x1a1   :  { %1099 = vmatprep.subr.bf16.mxu0 %v4456_v3  ;;  %1140 = vmatprep.subr.bf16.mxu1 %v4538_v54 }
 0x243   :  { %v877_v4 = vpop.f32.mrf.mxu0  ;;  %v918_v7 = vpop.f32.mrf.mxu1 }
 0x244   :  { %v925_v8 = vadd.f32 %v877_v4, %v4627_v35  ;;  %v927_v16 = vadd.f32 %v918_v7, %v4661_v44 }
 0x245   :  { %v879_v11 = vpop.f32.mrf.mxu0  ;;  %v920_v13 = vpop.f32.mrf.mxu1 }
 0x246   :  { %v3585_v52 = vmul.f32 -1.442695, %v925_v8  ;;  %v926_v28 = vadd.f32 %v879_v11, %v4629_v38  ;;  %v928_v3 = vadd.f32 %v920_v13, %v4663_v40  ;;  %v4734_v11 = vld [vmem:[#allocation8 + $0xe0] ss:$16 sps:$4 sm:$0xff]  }
 0x247   :  { %v881_v24 = vpop.f32.mrf.mxu0  ;;  %v922_v19 = vpop.f32.mrf.mxu1  ;;  %v4744_v13 = vld [vmem:[#allocation8 + $0xc0] ss:$16 sps:$4 sm:$0xff]  }
 0x248   :  { %3982 = vpow2.f32 %v3585_v52  ;;  %v3586_v27 = vmul.f32 -1.442695, %v926_v28  ;;  %v3587_v20 = vmul.f32 -1.442695, %v928_v3  ;;  %v4748_v52 = vld [vmem:[#allocation8 + $0xa4] ss:$16 sps:$4 sm:$0xff]  }
 0x249   :  { %v882_v48 = vpop.f32.mrf.mxu0  ;;  %v923_v46 = vpop.f32.mrf.mxu1  ;;  %v4752_v28 = vld [vmem:[#allocation8 + $0xa0] ss:$16 sps:$4 sm:$0xff]  }
 0x24a   :  { %3984 = vpow2.f32 %v3586_v27 }
 0x24b   :  { %3986 = vtanh.f32 %v927_v16 }
 0x24c   :  { %3988 = vpow2.f32 %v3587_v20 }
 0x255   :  { %v3983_v50 = vpop.eup %3982 }
 0x256   :  { %v932_v51 = vadd.f32 1.0, %v3983_v50 }
 0x257   :  { %v3985_v35 = vpop.eup %3984 }
 0x258   :  { %3990 = vrcp.f32 %v932_v51  ;;  %v938_v15 = vadd.f32 1.0, %v3985_v35  ;;  %v3987_v38 = vpop.eup %3986 }
 0x259   :  { %v3989_v36 = vpop.eup %3988 }
 0x25a   :  { %3992 = vrcp.f32 %v938_v15  ;;  %v945_v42 = vadd.f32 1.0, %v3989_v36 }
 0x25c   :  { %3994 = vrcp.f32 %v945_v42 }
 0x265   :  { %v3991_v12 = vpop.eup %3990 }
 0x266   :  { %v949_v0 = vmul.f32 %v3991_v12, %v3987_v38 }
 0x267   :  { %v3993_v49 = vpop.eup %3992 }
 0x268   :  { %v948_v39 = vmul.f32 %v3993_v49, %v4689_v23  ;;  %v4738_v23 = vld [vmem:[#allocation8 + $0xc4] ss:$16 sps:$4 sm:$0xff]  }
 0x269   :  { %v3995_v44 = vpop.eup %3994 }
 0x26a   :  { %v4731_v40 = vadd.f32 %v949_v0, %v948_v39 }
 0x26c   :  { %3996 = vtanh.f32 %v4731_v40 }
 0x279   :  { %v3997_v32 = vpop.eup %3996 }
 0x27a   :  { %v952_v4 = vmul.f32 %v3997_v32, %v3995_v44  ;;  %v4804_v44 = vld [vmem:[#allocation8 + $0x80] ss:$16 sps:$4 sm:$0xff]   ;;  %v4808_v32 = vld [vmem:[#allocation8 + $0x64] ss:$16 sps:$4 sm:$0xff]  }
 0x27c   :  { %v953_v7 = vpack.c.bf16 %v952_v4, %v952_v4  ;;  %v4812_v4 = vld [vmem:[#allocation8 + $0x60] ss:$16 sps:$4 sm:$0xff]  }
 0x27e   :  { %955 = vst [vmem:[#allocation4] sm:$0xf] %v953_v7  ;;  %961 = vst [vmem:[#allocation3 + $0x4] sm:$0xf] %v953_v7  ;;  %v4816_v7 = vld [vmem:[#allocation8 + $0x44] ss:$16 sps:$4 sm:$0xff]  }
 0x285   :  { %v962_v8 = vld [vmem:[#allocation4] sm:$0xf] }
 0x286   :  { %1004 = vmatmul.mubr.bf16.vlgmr.msra.gmra.mxu0 %v962_v8  ;;  %1045 = vmatmul.mubr.bf16.vlgmr.msra.gmra.mxu1 %v962_v8  ;;  %v4820_v8 = vld [vmem:[#allocation8 + $0x40] ss:$16 sps:$4 sm:$0xff]  }
 0x287   :  { %1100 = vmatpush1.bf16.msra.mxu0 %v4734_v11  ;;  %1141 = vmatpush1.bf16.msra.mxu1 %v4542_v55 }
 0x288   :  { %1101 = vmatprep.subr.bf16.mxu0 %v4738_v23  ;;  %1142 = vmatprep.subr.bf16.mxu1 %v4545_v56 }
 0x289   :  { %1131 = vmatprep.mubr.bf16.mxu0 %v5634_v37  ;;  %1172 = vmatprep.mubr.bf16.mxu1 %v5634_v37 }
 0x28b   :  { %1102 = vmatpush1.bf16.msra.mxu0 %v4744_v13  ;;  %1143 = vmatpush1.bf16.msra.mxu1 %v4549_v57 }
 0x28c   :  { %1103 = vmatprep.subr.bf16.mxu0 %v4748_v52  ;;  %1144 = vmatprep.subr.bf16.mxu1 %v4553_v58 }
 0x28f   :  { %1104 = vmatpush1.bf16.msra.mxu0 %v4752_v28  ;;  %1145 = vmatpush1.bf16.msra.mxu1 %v4559_v59 }
 0x290   :  { %1105 = vmatprep.subr.bf16.mxu0 %v4473_v14  ;;  %1146 = vmatprep.subr.bf16.mxu1 %v4561_v60  ;;  %v4776_v14 = vld [vmem:[#allocation8 + $0xe4] ss:$16 sps:$4 sm:$0xff]  }
 0x293   :  { %1106 = vmatpush1.bf16.msra.mxu0 %v4476_v17  ;;  %1147 = vmatpush1.bf16.msra.mxu1 %v4566_v61 }
 0x294   :  { %1107 = vmatprep.subr.bf16.mxu0 %v4479_v18  ;;  %1148 = vmatprep.subr.bf16.mxu1 %v4570_v62 }
 0x297   :  { %1108 = vmatpush1.bf16.msra.mxu0 %v4482_v21  ;;  %1149 = vmatpush1.bf16.msra.mxu1 %v4573_v63 }
 0x298   :  { %1109 = vmatprep.subr.bf16.mxu0 %v4485_v22  ;;  %1150 = vmatprep.subr.bf16.mxu1 %v4576_v1 }
 0x29b   :  { %1110 = vmatpush1.bf16.msra.mxu0 %v4488_v25  ;;  %1151 = vmatpush1.bf16.msra.mxu1 %v4579_v2 }
 0x29c   :  { %1111 = vmatprep.subr.bf16.mxu0 %v4491_v26  ;;  %1152 = vmatprep.subr.bf16.mxu1 %v4583_v5 }
 0x29f   :  { %1112 = vmatpush1.bf16.msra.mxu0 %v4494_v29  ;;  %1153 = vmatpush1.bf16.msra.mxu1 %v4586_v6 }
 0x2a0   :  { %1113 = vmatprep.subr.bf16.mxu0 %v4497_v30  ;;  %1154 = vmatprep.subr.bf16.mxu1 %v4589_v9 }
 0x2a3   :  { %1114 = vmatpush1.bf16.msra.mxu0 %v4500_v33  ;;  %1155 = vmatpush1.bf16.msra.mxu1 %v4592_v10 }
 0x2a4   :  { %1227 = vmatprep.subr.bf16.mxu0 %v4776_v14  ;;  %1268 = vmatprep.subr.bf16.mxu1 %v4538_v54 }
 0x346   :  { %v1005_v17 = vpop.f32.mrf.mxu0  ;;  %v1046_v18 = vpop.f32.mrf.mxu1 }
 0x347   :  { %v1053_v21 = vadd.f32 %v1005_v17, %v4631_v41  ;;  %v1055_v46 = vadd.f32 %v1046_v18, %v4665_v34  ;;  %v4824_v17 = vld [vmem:[#allocation8 + $0x24] ss:$16 sps:$4 sm:$0xff]   ;;  %v4828_v18 = vld [vmem:[#allocation8 + $0x20] ss:$16 sps:$4 sm:$0xff]  }
 0x348   :  { %v1007_v22 = vpop.f32.mrf.mxu0  ;;  %v1048_v25 = vpop.f32.mrf.mxu1 }
 0x349   :  { %v3588_v26 = vmul.f32 -1.442695, %v1053_v21  ;;  %v1054_v29 = vadd.f32 %v1007_v22, %v4633_v43  ;;  %v1056_v48 = vadd.f32 %v1048_v25, %v4667_v53  ;;  %v4832_v21 = vld [vmem:[#allocation8 + $0x4] ss:$16 sps:$4 sm:$0xff]   ;;  %v4836_v22 = vld [vmem:[#allocation8] ss:$16 sps:$4 sm:$0xff]  }
 0x34a   :  { %v1009_v30 = vpop.f32.mrf.mxu0  ;;  %v1050_v24 = vpop.f32.mrf.mxu1 }
 0x34b   :  { %3998 = vpow2.f32 %v3588_v26  ;;  %v3589_v33 = vmul.f32 -1.442695, %v1054_v29  ;;  %v3590_v3 = vmul.f32 -1.442695, %v1056_v48 }
 0x34c   :  { %v1010_v19 = vpop.f32.mrf.mxu0  ;;  %v1051_v27 = vpop.f32.mrf.mxu1 }
 0x34d   :  { %4000 = vpow2.f32 %v3589_v33 }
 0x34e   :  { %4002 = vtanh.f32 %v1055_v46 }
 0x34f   :  { %4004 = vpow2.f32 %v3590_v3 }
 0x358   :  { %v3999_v16 = vpop.eup %3998 }
 0x359   :  { %v1060_v20 = vadd.f32 1.0, %v3999_v16 }
 0x35a   :  { %v4001_v41 = vpop.eup %4000 }
 0x35b   :  { %4006 = vrcp.f32 %v1060_v20  ;;  %v1066_v50 = vadd.f32 1.0, %v4001_v41  ;;  %v4003_v43 = vpop.eup %4002  ;;  %v5635_v20 = vld [vmem:[#allocation26_spill] sm:$0xff] }
 0x35c   :  { %v4005_v51 = vpop.eup %4004 }
 0x35d   :  { %4008 = vrcp.f32 %v1066_v50  ;;  %v1073_v36 = vadd.f32 1.0, %v4005_v51  ;;  %v5636_v50 = vld [vmem:[#allocation25_spill] sm:$0xff] }
 0x35f   :  { %4010 = vrcp.f32 %v1073_v36 }
 0x368   :  { %v4007_v35 = vpop.eup %4006 }
 0x369   :  { %v1077_v15 = vmul.f32 %v4007_v35, %v4003_v43 }
 0x36a   :  { %v4009_v38 = vpop.eup %4008 }
 0x36b   :  { %v1076_v12 = vmul.f32 %v4009_v38, %v4731_v40  ;;  %v4800_v40 = vld [vmem:[#allocation8 + $0x84] ss:$16 sps:$4 sm:$0xff]  }
 0x36c   :  { %v4011_v34 = vpop.eup %4010 }
 0x36d   :  { %v4785_v53 = vadd.f32 %v1077_v15, %v1076_v12 }
 0x36f   :  { %4012 = vtanh.f32 %v4785_v53 }
 0x37c   :  { %v4013_v0 = vpop.eup %4012 }
 0x37d   :  { %v1080_v49 = vmul.f32 %v4013_v0, %v4011_v34 }
 0x37f   :  { %v1081_v42 = vpack.c.bf16 %v1080_v49, %v1080_v49 }
 0x381   :  { %1083 = vst [vmem:[#allocation4] sm:$0xf] %v1081_v42  ;;  %1089 = vst [vmem:[#allocation3 + $0x8] sm:$0xf] %v1081_v42 }
 0x388   :  { %v1090_v39 = vld [vmem:[#allocation4] sm:$0xf] }
 0x389   :  { %1132 = vmatmul.mubr.bf16.vlgmr.msra.gmra.mxu0 %v1090_v39  ;;  %1173 = vmatmul.mubr.bf16.vlgmr.msra.gmra.mxu1 %v1090_v39 }
 0x38a   :  { %1228 = vmatpush1.bf16.msra.mxu0 %v4734_v11  ;;  %1269 = vmatpush1.bf16.msra.mxu1 %v4542_v55 }
 0x38b   :  { %1229 = vmatprep.subr.bf16.mxu0 %v4738_v23  ;;  %1270 = vmatprep.subr.bf16.mxu1 %v4545_v56 }
 0x38c   :  { %1259 = vmatprep.mubr.bf16.mxu0 %v5634_v37  ;;  %1300 = vmatprep.mubr.bf16.mxu1 %v5634_v37 }
 0x38e   :  { %1230 = vmatpush1.bf16.msra.mxu0 %v4744_v13  ;;  %1271 = vmatpush1.bf16.msra.mxu1 %v4549_v57 }
 0x38f   :  { %1231 = vmatprep.subr.bf16.mxu0 %v4748_v52  ;;  %1272 = vmatprep.subr.bf16.mxu1 %v4553_v58 }
 0x392   :  { %1232 = vmatpush1.bf16.msra.mxu0 %v4752_v28  ;;  %1273 = vmatpush1.bf16.msra.mxu1 %v4559_v59 }
 0x393   :  { %1233 = vmatprep.subr.bf16.mxu0 %v4800_v40  ;;  %1274 = vmatprep.subr.bf16.mxu1 %v4561_v60 }
 0x396   :  { %1234 = vmatpush1.bf16.msra.mxu0 %v4804_v44  ;;  %1275 = vmatpush1.bf16.msra.mxu1 %v4566_v61 }
 0x397   :  { %1235 = vmatprep.subr.bf16.mxu0 %v4808_v32  ;;  %1276 = vmatprep.subr.bf16.mxu1 %v4570_v62 }
 0x39a   :  { %1236 = vmatpush1.bf16.msra.mxu0 %v4812_v4  ;;  %1277 = vmatpush1.bf16.msra.mxu1 %v4573_v63 }
 0x39b   :  { %1237 = vmatprep.subr.bf16.mxu0 %v4816_v7  ;;  %1278 = vmatprep.subr.bf16.mxu1 %v4576_v1 }
 0x39e   :  { %1238 = vmatpush1.bf16.msra.mxu0 %v4820_v8  ;;  %1279 = vmatpush1.bf16.msra.mxu1 %v4579_v2 }
 0x39f   :  { %1239 = vmatprep.subr.bf16.mxu0 %v4824_v17  ;;  %1280 = vmatprep.subr.bf16.mxu1 %v4583_v5 }
 0x3a2   :  { %1240 = vmatpush1.bf16.msra.mxu0 %v4828_v18  ;;  %1281 = vmatpush1.bf16.msra.mxu1 %v4586_v6 }
 0x3a3   :  { %1241 = vmatprep.subr.bf16.mxu0 %v4832_v21  ;;  %1282 = vmatprep.subr.bf16.mxu1 %v4589_v9 }
 0x3a6   :  { %1242 = vmatpush1.bf16.msra.mxu0 %v4836_v22  ;;  %1283 = vmatpush1.bf16.msra.mxu1 %v4592_v10 }
 0x3a7   :  { %1355 = vmatprep.subr.bf16.mxu0 %v4776_v14  ;;  %1396 = vmatprep.subr.bf16.mxu1 %v4538_v54 }
 0x449   :  { %v1133_v25 = vpop.f32.mrf.mxu0  ;;  %v1174_v26 = vpop.f32.mrf.mxu1 }
 0x44a   :  { %v1181_v29 = vadd.f32 %v1133_v25, %v4635_v45  ;;  %v1183_v43 = vadd.f32 %v1174_v26, %v5636_v50  ;;  %v5639_v50 = vld [vmem:[#allocation28_spill] sm:$0xff] }
 0x44b   :  { %v1135_v30 = vpop.f32.mrf.mxu0  ;;  %v1176_v24 = vpop.f32.mrf.mxu1 }
 0x44c   :  { %v3591_v33 = vmul.f32 -1.442695, %v1181_v29  ;;  %v1182_v19 = vadd.f32 %v1135_v30, %v4637_v47  ;;  %v1184_v41 = vadd.f32 %v1176_v24, %v5635_v20 }
 0x44d   :  { %v1137_v27 = vpop.f32.mrf.mxu0  ;;  %v1178_v48 = vpop.f32.mrf.mxu1 }
 0x44e   :  { %4014 = vpow2.f32 %v3591_v33  ;;  %v3592_v46 = vmul.f32 -1.442695, %v1182_v19  ;;  %v3593_v51 = vmul.f32 -1.442695, %v1184_v41  ;;  %v5638_v27 = vld [vmem:[#allocation18_spill] sm:$0xff] }
 0x44f   :  { %v1138_v3 = vpop.f32.mrf.mxu0  ;;  %v1179_v16 = vpop.f32.mrf.mxu1 }
 0x450   :  { %4016 = vpow2.f32 %v3592_v46 }
 0x451   :  { %4018 = vtanh.f32 %v1183_v43 }
 0x452   :  { %4020 = vpow2.f32 %v3593_v51  ;;  %v5640_v51 = vld [vmem:[#allocation27_spill] sm:$0xff] }
 0x45b   :  { %v4015_v35 = vpop.eup %4014 }
 0x45c   :  { %v1188_v15 = vadd.f32 1.0, %v4015_v35 }
 0x45d   :  { %v4017_v45 = vpop.eup %4016 }
 0x45e   :  { %4022 = vrcp.f32 %v1188_v15  ;;  %v1194_v38 = vadd.f32 1.0, %v4017_v45  ;;  %v4019_v47 = vpop.eup %4018 }
 0x45f   :  { %v4021_v36 = vpop.eup %4020 }
 0x460   :  { %4024 = vrcp.f32 %v1194_v38  ;;  %v1201_v49 = vadd.f32 1.0, %v4021_v36 }
 0x462   :  { %4026 = vrcp.f32 %v1201_v49 }
 0x46b   :  { %v4023_v12 = vpop.eup %4022 }
 0x46c   :  { %v1205_v34 = vmul.f32 %v4023_v12, %v4019_v47 }
 0x46d   :  { %v4025_v0 = vpop.eup %4024 }
 0x46e   :  { %v1204_v42 = vmul.f32 %v4025_v0, %v4785_v53 }
 0x46f   :  { %v4027_v25 = vpop.eup %4026 }
 0x470   :  { %v4847_v39 = vadd.f32 %v1205_v34, %v1204_v42 }
 0x472   :  { %4028 = vtanh.f32 %v4847_v39 }
 0x47f   :  { %v4029_v26 = vpop.eup %4028 }
 0x480   :  { %v1208_v29 = vmul.f32 %v4029_v26, %v4027_v25 }
 0x482   :  { %v1209_v30 = vpack.c.bf16 %v1208_v29, %v1208_v29 }
 0x484   :  { %1211 = vst [vmem:[#allocation4] sm:$0xf] %v1209_v30  ;;  %1217 = vst [vmem:[#allocation3 + $0xc] sm:$0xf] %v1209_v30 }
 0x48b   :  { %v1218_v24 = vld [vmem:[#allocation4] sm:$0xf] }
 0x48c   :  { %1260 = vmatmul.mubr.bf16.vlgmr.msra.gmra.mxu0 %v1218_v24  ;;  %1301 = vmatmul.mubr.bf16.vlgmr.msra.gmra.mxu1 %v1218_v24 }
 0x48d   :  { %1356 = vmatpush1.bf16.msra.mxu0 %v4734_v11  ;;  %1397 = vmatpush1.bf16.msra.mxu1 %v4542_v55 }
 0x48e   :  { %1357 = vmatprep.subr.bf16.mxu0 %v4738_v23  ;;  %1398 = vmatprep.subr.bf16.mxu1 %v4545_v56 }
 0x48f   :  { %1387 = vmatprep.mubr.bf16.mxu0 %v5634_v37  ;;  %1428 = vmatprep.mubr.bf16.mxu1 %v5634_v37 }
 0x491   :  { %1358 = vmatpush1.bf16.msra.mxu0 %v4744_v13  ;;  %1399 = vmatpush1.bf16.msra.mxu1 %v4549_v57  ;;  %v5637_v57 = vld [vmem:[#allocation17_spill] sm:$0xff] }
 0x492   :  { %1359 = vmatprep.subr.bf16.mxu0 %v4748_v52  ;;  %1400 = vmatprep.subr.bf16.mxu1 %v4553_v58 }
 0x495   :  { %1360 = vmatpush1.bf16.msra.mxu0 %v4752_v28  ;;  %1401 = vmatpush1.bf16.msra.mxu1 %v4559_v59 }
 0x496   :  { %1361 = vmatprep.subr.bf16.mxu0 %v4800_v40  ;;  %1402 = vmatprep.subr.bf16.mxu1 %v4561_v60 }
 0x499   :  { %1362 = vmatpush1.bf16.msra.mxu0 %v4804_v44  ;;  %1403 = vmatpush1.bf16.msra.mxu1 %v4566_v61 }
 0x49a   :  { %1363 = vmatprep.subr.bf16.mxu0 %v4808_v32  ;;  %1404 = vmatprep.subr.bf16.mxu1 %v4570_v62 }
 0x49d   :  { %1364 = vmatpush1.bf16.msra.mxu0 %v4812_v4  ;;  %1405 = vmatpush1.bf16.msra.mxu1 %v4573_v63 }
 0x49e   :  { %1365 = vmatprep.subr.bf16.mxu0 %v4816_v7  ;;  %1406 = vmatprep.subr.bf16.mxu1 %v4576_v1 }
 0x4a1   :  { %1366 = vmatpush1.bf16.msra.mxu0 %v4820_v8  ;;  %1407 = vmatpush1.bf16.msra.mxu1 %v4579_v2 }
 0x4a2   :  { %1367 = vmatprep.subr.bf16.mxu0 %v4824_v17  ;;  %1408 = vmatprep.subr.bf16.mxu1 %v4583_v5 }
 0x4a5   :  { %1368 = vmatpush1.bf16.msra.mxu0 %v4828_v18  ;;  %1409 = vmatpush1.bf16.msra.mxu1 %v4586_v6 }
 0x4a6   :  { %1369 = vmatprep.subr.bf16.mxu0 %v4832_v21  ;;  %1410 = vmatprep.subr.bf16.mxu1 %v4589_v9 }
 0x4a9   :  { %1370 = vmatpush1.bf16.msra.mxu0 %v4836_v22  ;;  %1411 = vmatpush1.bf16.msra.mxu1 %v4592_v10 }
 0x4aa   :  { %1483 = vmatprep.subr.bf16.mxu0 %v4776_v14  ;;  %1524 = vmatprep.subr.bf16.mxu1 %v4538_v54 }
 0x54c   :  { %v1261_v55 = vpop.f32.mrf.mxu0  ;;  %v1302_v56 = vpop.f32.mrf.mxu1 }
 0x54d   :  { %v1309_v58 = vadd.f32 %v1261_v55, %v5637_v57  ;;  %v1311_v54 = vadd.f32 %v1302_v56, %v5640_v51  ;;  %v4893_v57 = vld [vmem:[#allocation8 + $0xe8] ss:$16 sps:$4 sm:$0xff]  }
 0x54e   :  { %v1263_v53 = vpop.f32.mrf.mxu0  ;;  %v1304_v33 = vpop.f32.mrf.mxu1 }
 0x54f   :  { %v3594_v19 = vmul.f32 -1.442695, %v1309_v58  ;;  %v1310_v48 = vadd.f32 %v1263_v53, %v5638_v27  ;;  %v1312_v43 = vadd.f32 %v1304_v33, %v5639_v50  ;;  %v4903_v58 = vld [vmem:[#allocation8 + $0xc8] ss:$16 sps:$4 sm:$0xff]   ;;  %v4907_v53 = vld [vmem:[#allocation8 + $0xac] ss:$16 sps:$4 sm:$0xff]  }
 0x550   :  { %v1265_v46 = vpop.f32.mrf.mxu0  ;;  %v1306_v3 = vpop.f32.mrf.mxu1 }
 0x551   :  { %4030 = vpow2.f32 %v3594_v19  ;;  %v3595_v16 = vmul.f32 -1.442695, %v1310_v48  ;;  %v3596_v35 = vmul.f32 -1.442695, %v1312_v43  ;;  %v5644_v3 = vld [vmem:[#allocation29_spill] sm:$0xff] }
 0x552   :  { %v1266_v20 = vpop.f32.mrf.mxu0  ;;  %v1307_v41 = vpop.f32.mrf.mxu1 }
 0x553   :  { %4032 = vpow2.f32 %v3595_v16 }
 0x554   :  { %4034 = vtanh.f32 %v1311_v54 }
 0x555   :  { %4036 = vpow2.f32 %v3596_v35 }
 0x55e   :  { %v4031_v15 = vpop.eup %4030 }
 0x55f   :  { %v1316_v45 = vadd.f32 1.0, %v4031_v15 }
 0x560   :  { %v4033_v38 = vpop.eup %4032 }
 0x561   :  { %4038 = vrcp.f32 %v1316_v45  ;;  %v1322_v47 = vadd.f32 1.0, %v4033_v38  ;;  %v4035_v36 = vpop.eup %4034 }
 0x562   :  { %v4037_v12 = vpop.eup %4036 }
 0x563   :  { %4040 = vrcp.f32 %v1322_v47  ;;  %v1329_v42 = vadd.f32 1.0, %v4037_v12 }
 0x565   :  { %4042 = vrcp.f32 %v1329_v42 }
 0x56e   :  { %v4039_v34 = vpop.eup %4038 }
 0x56f   :  { %v1333_v0 = vmul.f32 %v4039_v34, %v4035_v36 }
 0x570   :  { %v4041_v49 = vpop.eup %4040 }
 0x571   :  { %v1332_v25 = vmul.f32 %v4041_v49, %v4847_v39  ;;  %v4897_v39 = vld [vmem:[#allocation8 + $0xcc] ss:$16 sps:$4 sm:$0xff]  }
 0x572   :  { %v4043_v29 = vpop.eup %4042 }
 0x573   :  { %v4889_v26 = vadd.f32 %v1333_v0, %v1332_v25 }
 0x575   :  { %4044 = vtanh.f32 %v4889_v26 }
 0x582   :  { %v4045_v30 = vpop.eup %4044 }
 0x583   :  { %v1336_v24 = vmul.f32 %v4045_v30, %v4043_v29  ;;  %v3856_v29 = vld [vmem:[#allocation10 + $0xe4] ss:$16 sps:$4 sm:$0xff]  }
 0x585   :  { %v1337_v55 = vpack.c.bf16 %v1336_v24, %v1336_v24  ;;  %v5645_v24 = vld [vmem:[#allocation21_spill] sm:$0xff] }
 0x587   :  { %1339 = vst [vmem:[#allocation4] sm:$0xf] %v1337_v55  ;;  %1345 = vst [vmem:[#allocation3 + $0x10] sm:$0xf] %v1337_v55 }
 0x58e   :  { %v1346_v56 = vld [vmem:[#allocation4] sm:$0xf] }
 0x58f   :  { %1388 = vmatmul.mubr.bf16.vlgmr.msra.gmra.mxu0 %v1346_v56  ;;  %1429 = vmatmul.mubr.bf16.vlgmr.msra.gmra.mxu1 %v1346_v56 }
 0x590   :  { %1484 = vmatpush1.bf16.msra.mxu0 %v4734_v11  ;;  %1525 = vmatpush1.bf16.msra.mxu1 %v4893_v57 }
 0x591   :  { %1485 = vmatprep.subr.bf16.mxu0 %v4738_v23  ;;  %1526 = vmatprep.subr.bf16.mxu1 %v4897_v39 }
 0x592   :  { %1515 = vmatprep.mubr.bf16.mxu0 %v5634_v37  ;;  %1556 = vmatprep.mubr.bf16.mxu1 %v5634_v37 }
 0x594   :  { %1486 = vmatpush1.bf16.msra.mxu0 %v4744_v13  ;;  %1527 = vmatpush1.bf16.msra.mxu1 %v4903_v58 }
 0x595   :  { %1487 = vmatprep.subr.bf16.mxu0 %v4748_v52  ;;  %1528 = vmatprep.subr.bf16.mxu1 %v4907_v53 }
 0x598   :  { %1488 = vmatpush1.bf16.msra.mxu0 %v4752_v28  ;;  %1529 = vmatpush1.bf16.msra.mxu1 %v4559_v59  ;;  %v4242_v59 = vld [vmem:[#allocation8 + $0xec] ss:$16 sps:$4 sm:$0xff]  }
 0x599   :  { %1489 = vmatprep.subr.bf16.mxu0 %v4800_v40  ;;  %1530 = vmatprep.subr.bf16.mxu1 %v4561_v60 }
 0x59c   :  { %1490 = vmatpush1.bf16.msra.mxu0 %v4804_v44  ;;  %1531 = vmatpush1.bf16.msra.mxu1 %v4566_v61 }
 0x59d   :  { %1491 = vmatprep.subr.bf16.mxu0 %v4808_v32  ;;  %1532 = vmatprep.subr.bf16.mxu1 %v4570_v62  ;;  %v5641_v62 = vld [vmem:[#allocation19_spill] sm:$0xff] }
 0x5a0   :  { %1492 = vmatpush1.bf16.msra.mxu0 %v4812_v4  ;;  %1533 = vmatpush1.bf16.msra.mxu1 %v4573_v63 }
 0x5a1   :  { %1493 = vmatprep.subr.bf16.mxu0 %v4816_v7  ;;  %1534 = vmatprep.subr.bf16.mxu1 %v4576_v1 }
 0x5a4   :  { %1494 = vmatpush1.bf16.msra.mxu0 %v4820_v8  ;;  %1535 = vmatpush1.bf16.msra.mxu1 %v4579_v2 }
 0x5a5   :  { %1495 = vmatprep.subr.bf16.mxu0 %v4824_v17  ;;  %1536 = vmatprep.subr.bf16.mxu1 %v4583_v5 }
 0x5a8   :  { %1496 = vmatpush1.bf16.msra.mxu0 %v4828_v18  ;;  %1537 = vmatpush1.bf16.msra.mxu1 %v4586_v6  ;;  %v5642_v6 = vld [vmem:[#allocation20_spill] sm:$0xff] }
 0x5a9   :  { %1497 = vmatprep.subr.bf16.mxu0 %v4832_v21  ;;  %1538 = vmatprep.subr.bf16.mxu1 %v4589_v9 }
 0x5ac   :  { %1498 = vmatpush1.bf16.msra.mxu0 %v4836_v22  ;;  %1539 = vmatpush1.bf16.msra.mxu1 %v4592_v10  ;;  %v5643_v10 = vld [vmem:[#allocation30_spill] sm:$0xff] }
 0x5ad   :  { %1611 = vmatprep.subr.bf16.mxu0 %v4776_v14  ;;  %1652 = vmatprep.subr.bf16.mxu1 %v4242_v59 }
 0x64f   :  { %v1389_v60 = vpop.f32.mrf.mxu0  ;;  %v1430_v61 = vpop.f32.mrf.mxu1 }
 0x650   :  { %v1437_v63 = vadd.f32 %v1389_v60, %v5641_v62  ;;  %v1439_v16 = vadd.f32 %v1430_v61, %v5644_v3  ;;  %v5647_v61 = vld [vmem:[#allocation32_spill] sm:$0xff] }
 0x651   :  { %v1391_v1 = vpop.f32.mrf.mxu0  ;;  %v1432_v2 = vpop.f32.mrf.mxu1 }
 0x652   :  { %v3597_v5 = vmul.f32 -1.442695, %v1437_v63  ;;  %v1438_v33 = vadd.f32 %v1391_v1, %v5642_v6  ;;  %v1440_v14 = vadd.f32 %v1432_v2, %v5643_v10  ;;  %v5648_v63 = vld [vmem:[#allocation31_spill] sm:$0xff] }
 0x653   :  { %v1393_v19 = vpop.f32.mrf.mxu0  ;;  %v1434_v27 = vpop.f32.mrf.mxu1 }
 0x654   :  { %4046 = vpow2.f32 %v3597_v5  ;;  %v3598_v9 = vmul.f32 -1.442695, %v1438_v33  ;;  %v3599_v20 = vmul.f32 -1.442695, %v1440_v14 }
 0x655   :  { %v1394_v48 = vpop.f32.mrf.mxu0  ;;  %v1435_v46 = vpop.f32.mrf.mxu1 }
 0x656   :  { %4048 = vpow2.f32 %v3598_v9 }
 0x657   :  { %4050 = vtanh.f32 %v1439_v16 }
 0x658   :  { %4052 = vpow2.f32 %v3599_v20 }
 0x661   :  { %v4047_v41 = vpop.eup %4046 }
 0x662   :  { %v1444_v50 = vadd.f32 1.0, %v4047_v41 }
 0x663   :  { %v4049_v43 = vpop.eup %4048 }
 0x664   :  { %4054 = vrcp.f32 %v1444_v50  ;;  %v1450_v51 = vadd.f32 1.0, %v4049_v43  ;;  %v4051_v54 = vpop.eup %4050 }
 0x665   :  { %v4053_v35 = vpop.eup %4052 }
 0x666   :  { %4056 = vrcp.f32 %v1450_v51  ;;  %v1457_v47 = vadd.f32 1.0, %v4053_v35  ;;  %v3854_v51 = vld [vmem:[#allocation10 + $0xe0] ss:$16 sps:$4 sm:$0xff]   ;;  %v3862_v35 = vld [vmem:[#allocation10 + $0xc4] ss:$16 sps:$4 sm:$0xff]  }
 0x668   :  { %4058 = vrcp.f32 %v1457_v47  ;;  %v3863_v47 = vld [vmem:[#allocation10 + $0xc8] ss:$16 sps:$4 sm:$0xff]  }
 0x671   :  { %v4055_v15 = vpop.eup %4054 }
 0x672   :  { %v1461_v45 = vmul.f32 %v4055_v15, %v4051_v54  ;;  %v3857_v54 = vld [vmem:[#allocation10 + $0xe8] ss:$16 sps:$4 sm:$0xff]   ;;  %v3865_v15 = vld [vmem:[#allocation10 + $0xcc] ss:$16 sps:$4 sm:$0xff]  }
 0x673   :  { %v4057_v38 = vpop.eup %4056 }
 0x674   :  { %v1460_v36 = vmul.f32 %v4057_v38, %v4889_v26  ;;  %v4245_v26 = vld [vmem:[#allocation8 + $0x88] ss:$16 sps:$4 sm:$0xff]   ;;  %v3860_v38 = vld [vmem:[#allocation10 + $0xc0] ss:$16 sps:$4 sm:$0xff]  }
 0x675   :  { %v4059_v34 = vpop.eup %4058 }
 0x676   :  { %v4938_v12 = vadd.f32 %v1461_v45, %v1460_v36  ;;  %v3868_v36 = vld [vmem:[#allocation10 + $0xa4] ss:$16 sps:$4 sm:$0xff]  }
 0x678   :  { %4060 = vtanh.f32 %v4938_v12 }
 0x685   :  { %v4061_v0 = vpop.eup %4060 }
 0x686   :  { %v1464_v49 = vmul.f32 %v4061_v0, %v4059_v34  ;;  %v3866_v34 = vld [vmem:[#allocation10 + $0xa0] ss:$16 sps:$4 sm:$0xff]   ;;  %v3869_v0 = vld [vmem:[#allocation10 + $0xa8] ss:$16 sps:$4 sm:$0xff]  }
 0x688   :  { %v1465_v42 = vpack.c.bf16 %v1464_v49, %v1464_v49  ;;  %v3874_v49 = vld [vmem:[#allocation10 + $0x84] ss:$16 sps:$4 sm:$0xff]  }
 0x68a   :  { %1467 = vst [vmem:[#allocation4] sm:$0xf] %v1465_v42  ;;  %1473 = vst [vmem:[#allocation3 + $0x14] sm:$0xf] %v1465_v42  ;;  %v3877_v42 = vld [vmem:[#allocation10 + $0x8c] ss:$16 sps:$4 sm:$0xff]  }
 0x691   :  { %v1474_v25 = vld [vmem:[#allocation4] sm:$0xf] }
 0x692   :  { %1516 = vmatmul.mubr.bf16.vlgmr.msra.gmra.mxu0 %v1474_v25  ;;  %1557 = vmatmul.mubr.bf16.vlgmr.msra.gmra.mxu1 %v1474_v25  ;;  %v3872_v25 = vld [vmem:[#allocation10 + $0x80] ss:$16 sps:$4 sm:$0xff]  }
 0x693   :  { %1612 = vmatpush1.bf16.msra.mxu0 %v4734_v11  ;;  %1653 = vmatpush1.bf16.msra.mxu1 %v4893_v57  ;;  %v4243_v11 = vld [vmem:[#allocation8 + $0xa8] ss:$16 sps:$4 sm:$0xff]  }
 0x694   :  { %1613 = vmatprep.subr.bf16.mxu0 %v4738_v23  ;;  %1654 = vmatprep.subr.bf16.mxu1 %v4897_v39  ;;  %v4244_v23 = vld [vmem:[#allocation8 + $0x8c] ss:$16 sps:$4 sm:$0xff]   ;;  %v5646_v39 = vld [vmem:[#allocation22_spill] sm:$0xff] }
 0x695   :  { %1643 = vmatprep.mubr.bf16.mxu0 %v5634_v37  ;;  %1684 = vmatprep.mubr.bf16.mxu1 %v5634_v37 }
 0x697   :  { %1614 = vmatpush1.bf16.msra.mxu0 %v4744_v13  ;;  %1655 = vmatpush1.bf16.msra.mxu1 %v4903_v58  ;;  %v4246_v13 = vld [vmem:[#allocation8 + $0x6c] ss:$16 sps:$4 sm:$0xff]  }
 0x698   :  { %1615 = vmatprep.subr.bf16.mxu0 %v4748_v52  ;;  %1656 = vmatprep.subr.bf16.mxu1 %v4907_v53  ;;  %v4247_v52 = vld [vmem:[#allocation8 + $0x68] ss:$16 sps:$4 sm:$0xff]  }
 0x69b   :  { %1616 = vmatpush1.bf16.msra.mxu0 %v4752_v28  ;;  %1657 = vmatpush1.bf16.msra.mxu1 %v4243_v11  ;;  %v4248_v28 = vld [vmem:[#allocation8 + $0x4c] ss:$16 sps:$4 sm:$0xff]   ;;  %v3875_v11 = vld [vmem:[#allocation10 + $0x88] ss:$16 sps:$4 sm:$0xff]  }
 0x69c   :  { %1617 = vmatprep.subr.bf16.mxu0 %v4800_v40  ;;  %1658 = vmatprep.subr.bf16.mxu1 %v4244_v23  ;;  %v4249_v40 = vld [vmem:[#allocation8 + $0x48] ss:$16 sps:$4 sm:$0xff]   ;;  %v3880_v23 = vld [vmem:[#allocation10 + $0x64] ss:$16 sps:$4 sm:$0xff]  }
 0x69f   :  { %1618 = vmatpush1.bf16.msra.mxu0 %v4804_v44  ;;  %1659 = vmatpush1.bf16.msra.mxu1 %v4245_v26  ;;  %v4250_v44 = vld [vmem:[#allocation8 + $0x2c] ss:$16 sps:$4 sm:$0xff]  }
 0x6a0   :  { %1619 = vmatprep.subr.bf16.mxu0 %v4808_v32  ;;  %1660 = vmatprep.subr.bf16.mxu1 %v4246_v13  ;;  %v4251_v32 = vld [vmem:[#allocation8 + $0x28] ss:$16 sps:$4 sm:$0xff]   ;;  %v3883_v26 = vld [vmem:[#allocation10 + $0x6c] ss:$16 sps:$4 sm:$0xff]   ;;  %v3878_v13 = vld [vmem:[#allocation10 + $0x60] ss:$16 sps:$4 sm:$0xff]  }
 0x6a3   :  { %1620 = vmatpush1.bf16.msra.mxu0 %v4812_v4  ;;  %1661 = vmatpush1.bf16.msra.mxu1 %v4247_v52  ;;  %v4252_v4 = vld [vmem:[#allocation8 + $0xc] ss:$16 sps:$4 sm:$0xff]   ;;  %v3881_v52 = vld [vmem:[#allocation10 + $0x68] ss:$16 sps:$4 sm:$0xff]  }
 0x6a4   :  { %1621 = vmatprep.subr.bf16.mxu0 %v4816_v7  ;;  %1662 = vmatprep.subr.bf16.mxu1 %v4248_v28  ;;  %v4253_v7 = vld [vmem:[#allocation8 + $0x8] ss:$16 sps:$4 sm:$0xff]   ;;  %v3886_v28 = vld [vmem:[#allocation10 + $0x44] ss:$16 sps:$4 sm:$0xff]  }
 0x6a7   :  { %1622 = vmatpush1.bf16.msra.mxu0 %v4820_v8  ;;  %1663 = vmatpush1.bf16.msra.mxu1 %v4249_v40  ;;  %v3859_v8 = vld [vmem:[#allocation10 + $0xec] ss:$16 sps:$4 sm:$0xff]  }
 0x6a8   :  { %1623 = vmatprep.subr.bf16.mxu0 %v4824_v17  ;;  %1664 = vmatprep.subr.bf16.mxu1 %v4250_v44  ;;  %v3889_v40 = vld [vmem:[#allocation10 + $0x4c] ss:$16 sps:$4 sm:$0xff]   ;;  %v3884_v44 = vld [vmem:[#allocation10 + $0x40] ss:$16 sps:$4 sm:$0xff]  }
 0x6ab   :  { %1624 = vmatpush1.bf16.msra.mxu0 %v4828_v18  ;;  %1665 = vmatpush1.bf16.msra.mxu1 %v4251_v32  ;;  %v3887_v32 = vld [vmem:[#allocation10 + $0x48] ss:$16 sps:$4 sm:$0xff]  }
 0x6ac   :  { %1625 = vmatprep.subr.bf16.mxu0 %v4832_v21  ;;  %1666 = vmatprep.subr.bf16.mxu1 %v4252_v4  ;;  %v3892_v4 = vld [vmem:[#allocation10 + $0x24] ss:$16 sps:$4 sm:$0xff]  }
 0x6af   :  { %1626 = vmatpush1.bf16.msra.mxu0 %v4836_v22  ;;  %1667 = vmatpush1.bf16.msra.mxu1 %v4253_v7  ;;  %v3895_v7 = vld [vmem:[#allocation10 + $0x2c] ss:$16 sps:$4 sm:$0xff]  }
 0x6b0   :  { %2010 = vmatprep.subr.bf16.mxu0 %v3856_v29  ;;  %2083 = vmatprep.subr.bf16.mxu1 %v3859_v8  ;;  %v3890_v29 = vld [vmem:[#allocation10 + $0x20] ss:$16 sps:$4 sm:$0xff]   ;;  %v3893_v8 = vld [vmem:[#allocation10 + $0x28] ss:$16 sps:$4 sm:$0xff]  }
 0x752   :  { %v1517_v30 = vpop.f32.mrf.mxu0  ;;  %v1558_v17 = vpop.f32.mrf.mxu1 }
 0x753   :  { %v1565_v55 = vadd.f32 %v1517_v30, %v5645_v24  ;;  %v1567_v1 = vadd.f32 %v1558_v17, %v5648_v63  ;;  %v3898_v30 = vld [vmem:[#allocation10 + $0x4] ss:$16 sps:$4 sm:$0xff]   ;;  %v3901_v17 = vld [vmem:[#allocation10 + $0xc] ss:$16 sps:$4 sm:$0xff]   ;;  %v3896_v24 = vld [vmem:[#allocation10] ss:$16 sps:$4 sm:$0xff]  }
 0x754   :  { %v1519_v56 = vpop.f32.mrf.mxu0  ;;  %v1560_v18 = vpop.f32.mrf.mxu1  ;;  %v5004_v63 = vld [vmem:[#allocation11 + $0xac] ss:$16 sps:$4 sm:$0xff]  }
 0x755   :  { %v3600_v57 = vmul.f32 -1.442695, %v1565_v55  ;;  %v1566_v58 = vadd.f32 %v1519_v56, %v5646_v39  ;;  %v1568_v62 = vadd.f32 %v1560_v18, %v5647_v61  ;;  %v3899_v55 = vld [vmem:[#allocation10 + $0x8] ss:$16 sps:$4 sm:$0xff]   ;;  %v3902_v56 = vld [vmem:[#allocation3] sm:$0xff]  }
 0x756   :  { %v1521_v21 = vpop.f32.mrf.mxu0  ;;  %v1562_v53 = vpop.f32.mrf.mxu1  ;;  %v3903_v18 = vld [vmem:[#allocation3 + $0x8] sm:$0xff]  }
 0x757   :  { %4062 = vpow2.f32 %v3600_v57  ;;  %v3601_v59 = vmul.f32 -1.442695, %v1566_v58  ;;  %v3602_v2 = vmul.f32 -1.442695, %v1568_v62  ;;  %v3904_v57 = vld [vmem:[#allocation3 + $0x10] sm:$0xff]  }
 0x758   :  { %v1522_v22 = vpop.f32.mrf.mxu0  ;;  %v1563_v60 = vpop.f32.mrf.mxu1  ;;  %v4978_v39 = vld [vmem:[#allocation11 + $0xe4] ss:$16 sps:$4 sm:$0xff]   ;;  %v4980_v58 = vld [vmem:[#allocation11 + $0xec] ss:$16 sps:$4 sm:$0xff]   ;;  %v4982_v21 = vld [vmem:[#allocation11 + $0xe0] ss:$16 sps:$4 sm:$0xff]  }
 0x759   :  { %4064 = vpow2.f32 %v3601_v59  ;;  %v4984_v53 = vld [vmem:[#allocation11 + $0xe8] ss:$16 sps:$4 sm:$0xff]   ;;  %v4990_v59 = vld [vmem:[#allocation11 + $0xc4] ss:$16 sps:$4 sm:$0xff]   ;;  %v4992_v22 = vld [vmem:[#allocation11 + $0xcc] ss:$16 sps:$4 sm:$0xff]  }
 0x75a   :  { %4066 = vtanh.f32 %v1567_v1  ;;  %v4994_v60 = vld [vmem:[#allocation11 + $0xc0] ss:$16 sps:$4 sm:$0xff]   ;;  %v4996_v61 = vld [vmem:[#allocation11 + $0xc8] ss:$16 sps:$4 sm:$0xff]   ;;  %v5002_v62 = vld [vmem:[#allocation11 + $0xa4] ss:$16 sps:$4 sm:$0xff]  }
 0x75b   :  { %4068 = vpow2.f32 %v3602_v2  ;;  %v5006_v1 = vld [vmem:[#allocation11 + $0xa0] ss:$16 sps:$4 sm:$0xff]   ;;  %v5008_v2 = vld [vmem:[#allocation11 + $0xa8] ss:$16 sps:$4 sm:$0xff]  }
 0x764   :  { %v4063_v5 = vpop.eup %4062 }
 0x765   :  { %v1572_v6 = vadd.f32 1.0, %v4063_v5  ;;  %v5014_v5 = vld [vmem:[#allocation11 + $0x84] ss:$16 sps:$4 sm:$0xff]  }
 0x766   :  { %v4065_v33 = vpop.eup %4064 }
 0x767   :  { %4070 = vrcp.f32 %v1572_v6  ;;  %v1578_v19 = vadd.f32 1.0, %v4065_v33  ;;  %v4067_v27 = vpop.eup %4066  ;;  %v5016_v6 = vld [vmem:[#allocation11 + $0x8c] ss:$16 sps:$4 sm:$0xff]   ;;  %v5018_v33 = vld [vmem:[#allocation11 + $0x80] ss:$16 sps:$4 sm:$0xff]  }
 0x768   :  { %v4069_v9 = vpop.eup %4068 }
 0x769   :  { %4072 = vrcp.f32 %v1578_v19  ;;  %v1585_v14 = vadd.f32 1.0, %v4069_v9  ;;  %v5020_v19 = vld [vmem:[#allocation11 + $0x88] ss:$16 sps:$4 sm:$0xff]   ;;  %v5028_v9 = vld [vmem:[#allocation11 + $0x6c] ss:$16 sps:$4 sm:$0xff]  }
 0x76b   :  { %4074 = vrcp.f32 %v1585_v14  ;;  %v5038_v14 = vld [vmem:[#allocation11 + $0x4c] ss:$16 sps:$4 sm:$0xff]  }
 0x774   :  { %v4071_v48 = vpop.eup %4070 }
 0x775   :  { %v1589_v46 = vmul.f32 %v4071_v48, %v4067_v27  ;;  %v5026_v27 = vld [vmem:[#allocation11 + $0x64] ss:$16 sps:$4 sm:$0xff]   ;;  %v5030_v48 = vld [vmem:[#allocation11 + $0x60] ss:$16 sps:$4 sm:$0xff]  }
 0x776   :  { %v4073_v10 = vpop.eup %4072 }
 0x777   :  { %v1588_v3 = vmul.f32 %v4073_v10, %v4938_v12  ;;  %v3871_v12 = vld [vmem:[#allocation10 + $0xac] ss:$16 sps:$4 sm:$0xff]   ;;  %v5034_v10 = vld [vmem:[#allocation11 + $0x44] ss:$16 sps:$4 sm:$0xff]  }
 0x778   :  { %v4075_v20 = vpop.eup %4074 }
 0x779   :  { %v4967_v16 = vadd.f32 %v1589_v46, %v1588_v3  ;;  %v5032_v46 = vld [vmem:[#allocation11 + $0x68] ss:$16 sps:$4 sm:$0xff]   ;;  %v5042_v3 = vld [vmem:[#allocation11 + $0x40] ss:$16 sps:$4 sm:$0xff]  }
 0x77b   :  { %4076 = vtanh.f32 %v4967_v16 }
 0x788   :  { %v4077_v41 = vpop.eup %4076 }
 0x789   :  { %v1592_v50 = vmul.f32 %v4077_v41, %v4075_v20  ;;  %v5044_v20 = vld [vmem:[#allocation11 + $0x48] ss:$16 sps:$4 sm:$0xff]   ;;  %v5050_v41 = vld [vmem:[#allocation11 + $0x24] ss:$16 sps:$4 sm:$0xff]  }
 0x78b   :  { %v1593_v43 = vpack.c.bf16 %v1592_v50, %v1592_v50  ;;  %v5052_v50 = vld [vmem:[#allocation11 + $0x2c] ss:$16 sps:$4 sm:$0xff]  }
 0x78d   :  { %1601 = vst [vmem:[#allocation3 + $0x18] sm:$0xf] %v1593_v43  ;;  %1595 = vst [vmem:[#allocation4] sm:$0xf] %v1593_v43  ;;  %v5054_v43 = vld [vmem:[#allocation11 + $0x20] ss:$16 sps:$4 sm:$0xff]  }
 0x794   :  { %v1602_v45 = vld [vmem:[#allocation4] sm:$0xf] }
 0x795   :  { %1644 = vmatmul.mubr.bf16.vlgmr.msra.gmra.mxu0 %v1602_v45  ;;  %1685 = vmatmul.mubr.bf16.vlgmr.msra.gmra.mxu1 %v1602_v45  ;;  %v5068_v45 = vld [vmem:[#allocation11 + $0x8] ss:$16 sps:$4 sm:$0xff]  }
 0x796   :  { %2011 = vmatpush1.bf16.msra.mxu0 %v3854_v51  ;;  %2084 = vmatpush1.bf16.msra.mxu1 %v3857_v54  ;;  %v5056_v51 = vld [vmem:[#allocation11 + $0x28] ss:$16 sps:$4 sm:$0xff]   ;;  %v5058_v54 = vld [vmem:[#allocation11 + $0x4] ss:$16 sps:$4 sm:$0xff]  }
 0x797   :  { %2012 = vmatprep.subr.bf16.mxu0 %v3862_v35  ;;  %2085 = vmatprep.subr.bf16.mxu1 %v3865_v15  ;;  %v5062_v35 = vld [vmem:[#allocation11 + $0xc] ss:$16 sps:$4 sm:$0xff]   ;;  %v5066_v15 = vld [vmem:[#allocation11] ss:$16 sps:$4 sm:$0xff]  }
 0x798   :  { %2042 = vmatprep.mubr.bf16.mxu0 %v5634_v37  ;;  %2115 = vmatprep.mubr.bf16.mxu1 %v5634_v37 }
 0x79a   :  { %2013 = vmatpush1.bf16.msra.mxu0 %v3860_v38  ;;  %2086 = vmatpush1.bf16.msra.mxu1 %v3863_v47 }
 0x79b   :  { %2014 = vmatprep.subr.bf16.mxu0 %v3868_v36  ;;  %2087 = vmatprep.subr.bf16.mxu1 %v3871_v12  ;;  %v5649_v36 = vld [vmem:[#allocation23_spill] sm:$0xff] }
 0x79e   :  { %2015 = vmatpush1.bf16.msra.mxu0 %v3866_v34  ;;  %2088 = vmatpush1.bf16.msra.mxu1 %v3869_v0 }
 0x79f   :  { %2016 = vmatprep.subr.bf16.mxu0 %v3874_v49  ;;  %2089 = vmatprep.subr.bf16.mxu1 %v3877_v42  ;;  %v5650_v42 = vld [vmem:[#allocation24_spill] sm:$0xff] }
 0x7a2   :  { %2017 = vmatpush1.bf16.msra.mxu0 %v3872_v25  ;;  %2090 = vmatpush1.bf16.msra.mxu1 %v3875_v11 }
 0x7a3   :  { %2018 = vmatprep.subr.bf16.mxu0 %v3880_v23  ;;  %2091 = vmatprep.subr.bf16.mxu1 %v3883_v26 }
 0x7a6   :  { %2019 = vmatpush1.bf16.msra.mxu0 %v3878_v13  ;;  %2092 = vmatpush1.bf16.msra.mxu1 %v3881_v52 }
 0x7a7   :  { %2020 = vmatprep.subr.bf16.mxu0 %v3886_v28  ;;  %2093 = vmatprep.subr.bf16.mxu1 %v3889_v40  ;;  %v5651_v40 = vld [vmem:[#allocation33_spill] sm:$0xff] }
 0x7aa   :  { %2021 = vmatpush1.bf16.msra.mxu0 %v3884_v44  ;;  %2094 = vmatpush1.bf16.msra.mxu1 %v3887_v32 }
 0x7ab   :  { %2022 = vmatprep.subr.bf16.mxu0 %v3892_v4  ;;  %2095 = vmatprep.subr.bf16.mxu1 %v3895_v7 }
 0x7ae   :  { %2023 = vmatpush1.bf16.msra.mxu0 %v3890_v29  ;;  %2096 = vmatpush1.bf16.msra.mxu1 %v3893_v8 }
 0x7af   :  { %2024 = vmatprep.subr.bf16.mxu0 %v3898_v30  ;;  %2097 = vmatprep.subr.bf16.mxu1 %v3901_v17 }
 0x7b2   :  { %2025 = vmatpush1.bf16.msra.mxu0 %v3896_v24  ;;  %2098 = vmatpush1.bf16.msra.mxu1 %v3899_v55 }
 0x7b3   :  { %2354 = vmatprep.subr.bf16.mxu0 %v4978_v39  ;;  %2395 = vmatprep.subr.bf16.mxu1 %v4980_v58 }
 0x7b5   :  { %2043 = vmatmul.mubr.bf16.vlgmr.msra.gmra.mxu0 %v3902_v56  ;;  %2116 = vmatmul.mubr.bf16.vlgmr.msra.gmra.mxu1 %v3902_v56 }
 0x7b6   :  { %2052 = vmatprep.mubr.bf16.mxu0 %v5634_v37  ;;  %2125 = vmatprep.mubr.bf16.mxu1 %v5634_v37 }
 0x7b7   :  { %2355 = vmatpush1.bf16.msra.mxu0 %v4982_v21  ;;  %2396 = vmatpush1.bf16.msra.mxu1 %v4984_v53 }
 0x7b8   :  { %2356 = vmatprep.subr.bf16.mxu0 %v4990_v59  ;;  %2397 = vmatprep.subr.bf16.mxu1 %v4992_v22 }
 0x7bb   :  { %2357 = vmatpush1.bf16.msra.mxu0 %v4994_v60  ;;  %2398 = vmatpush1.bf16.msra.mxu1 %v4996_v61 }
 0x7bc   :  { %2358 = vmatprep.subr.bf16.mxu0 %v5002_v62  ;;  %2399 = vmatprep.subr.bf16.mxu1 %v5004_v63 }
 0x7bd   :  { %2053 = vmatmul.mubr.bf16.gmra.mxu0 %v3903_v18  ;;  %2126 = vmatmul.mubr.bf16.gmra.mxu1 %v3903_v18 }
 0x7be   :  { %2062 = vmatprep.mubr.bf16.mxu0 %v5634_v37  ;;  %2135 = vmatprep.mubr.bf16.mxu1 %v5634_v37 }
 0x7bf   :  { %2359 = vmatpush1.bf16.msra.mxu0 %v5006_v1  ;;  %2400 = vmatpush1.bf16.msra.mxu1 %v5008_v2 }
 0x7c0   :  { %2360 = vmatprep.subr.bf16.mxu0 %v5014_v5  ;;  %2401 = vmatprep.subr.bf16.mxu1 %v5016_v6 }
 0x7c3   :  { %2361 = vmatpush1.bf16.msra.mxu0 %v5018_v33  ;;  %2402 = vmatpush1.bf16.msra.mxu1 %v5020_v19 }
 0x7c4   :  { %2362 = vmatprep.subr.bf16.mxu0 %v5026_v27  ;;  %2403 = vmatprep.subr.bf16.mxu1 %v5028_v9 }
 0x7c5   :  { %2063 = vmatmul.mubr.bf16.gmra.mxu0 %v3904_v57  ;;  %2136 = vmatmul.mubr.bf16.gmra.mxu1 %v3904_v57 }
 0x7c6   :  { %2072 = vmatprep.mubr.bf16.mxu0 %v5634_v37  ;;  %2145 = vmatprep.mubr.bf16.mxu1 %v5634_v37 }
 0x7c7   :  { %2363 = vmatpush1.bf16.msra.mxu0 %v5030_v48  ;;  %2404 = vmatpush1.bf16.msra.mxu1 %v5032_v46 }
 0x7c8   :  { %2364 = vmatprep.subr.bf16.mxu0 %v5034_v10  ;;  %2405 = vmatprep.subr.bf16.mxu1 %v5038_v14 }
 0x7cb   :  { %2365 = vmatpush1.bf16.msra.mxu0 %v5042_v3  ;;  %2406 = vmatpush1.bf16.msra.mxu1 %v5044_v20 }
 0x7cc   :  { %2366 = vmatprep.subr.bf16.mxu0 %v5050_v41  ;;  %2407 = vmatprep.subr.bf16.mxu1 %v5052_v50 }
 0x7cf   :  { %2367 = vmatpush1.bf16.msra.mxu0 %v5054_v43  ;;  %2408 = vmatpush1.bf16.msra.mxu1 %v5056_v51 }
 0x7d0   :  { %2368 = vmatprep.subr.bf16.mxu0 %v5058_v54  ;;  %2409 = vmatprep.subr.bf16.mxu1 %v5062_v35 }
 0x7d3   :  { %2369 = vmatpush1.bf16.msra.mxu0 %v5066_v15  ;;  %2410 = vmatpush1.bf16.msra.mxu1 %v5068_v45 }
 0x7d4   :  { %2474 = vmatprep.subr.bf16.mxu0 %v4978_v39  ;;  %2515 = vmatprep.subr.bf16.mxu1 %v4980_v58 }
 0x855   :  { %v1645_v38 = vpop.f32.mrf.mxu0  ;;  %v1686_v47 = vpop.f32.mrf.mxu1 }
 0x856   :  { %v1693_v12 = vadd.f32 %v1645_v38, %v5649_v36  ;;  %v1695_v44 = vadd.f32 %v1686_v47, %v5651_v40 }
 0x857   :  { %v1647_v34 = vpop.f32.mrf.mxu0  ;;  %v1688_v0 = vpop.f32.mrf.mxu1 }
 0x858   :  { %v3603_v49 = vmul.f32 -1.442695, %v1693_v12  ;;  %v1694_v25 = vadd.f32 %v1647_v34, %v5650_v42  ;;  %v1696_v28 = vadd.f32 %v1688_v0, %v4687_v31 }
 0x859   :  { %v1649_v11 = vpop.f32.mrf.mxu0  ;;  %v1690_v23 = vpop.f32.mrf.mxu1 }
 0x85a   :  { %4078 = vpow2.f32 %v3603_v49  ;;  %v3604_v26 = vmul.f32 -1.442695, %v1694_v25  ;;  %v3605_v32 = vmul.f32 -1.442695, %v1696_v28 }
 0x85b   :  { %v1650_v13 = vpop.f32.mrf.mxu0  ;;  %v1691_v52 = vpop.f32.mrf.mxu1 }
 0x85c   :  { %4080 = vpow2.f32 %v3604_v26 }
 0x85d   :  { %4082 = vtanh.f32 %v1695_v44 }
 0x85e   :  { %4084 = vpow2.f32 %v3605_v32 }
 0x867   :  { %v4079_v4 = vpop.eup %4078 }
 0x868   :  { %v1700_v7 = vadd.f32 1.0, %v4079_v4 }
 0x869   :  { %v4081_v29 = vpop.eup %4080 }
 0x86a   :  { %4086 = vrcp.f32 %v1700_v7  ;;  %v1706_v8 = vadd.f32 1.0, %v4081_v29  ;;  %v4083_v30 = vpop.eup %4082 }
 0x86b   :  { %v4085_v17 = vpop.eup %4084 }
 0x86c   :  { %4088 = vrcp.f32 %v1706_v8  ;;  %v1713_v18 = vadd.f32 1.0, %v4085_v17 }
 0x86e   :  { %4090 = vrcp.f32 %v1713_v18 }
 0x875   :  { %v2117_v49 = vpop.f32.mrf.mxu1 }
 0x877   :  { %v4087_v24 = vpop.eup %4086  ;;  %v2119_v25 = vpop.f32.mrf.mxu1 }
 0x878   :  { %v1717_v55 = vmul.f32 %v4087_v24, %v4083_v30 }
 0x879   :  { %v4089_v56 = vpop.eup %4088  ;;  %v5120_v23 = vpop.f32.mrf.mxu1 }
 0x87a   :  { %v1716_v57 = vmul.f32 %v4089_v56, %v4967_v16  ;;  %v2044_v16 = vpop.f32.mrf.mxu0 }
 0x87b   :  { %v4091_v38 = vpop.eup %4090  ;;  %v5124_v13 = vpop.f32.mrf.mxu1 }
 0x87c   :  { %v1718_v31 = vadd.f32 %v1717_v55, %v1716_v57  ;;  %v2046_v42 = vpop.f32.mrf.mxu0 }
 0x87d   :  { %v5128_v28 = vpop.f32.mrf.mxu1 }
 0x87e   :  { %4092 = vtanh.f32 %v1718_v31  ;;  %v5118_v11 = vpop.f32.mrf.mxu0  ;;  %5652 = vst [vmem:[#allocation26_spill] sm:$0xff] %v5128_v28  ;;  %v1794_v31 = vld [vmem:[%s5604_s6] sm:$0xf] }
 0x87f   :  { %v5132_v44 = vpop.f32.mrf.mxu1 }
 0x880   :  { %v5122_v26 = vpop.f32.mrf.mxu0 }
 0x881   :  { %v5136_v4 = vpop.f32.mrf.mxu1 }
 0x882   :  { %v5126_v52 = vpop.f32.mrf.mxu0  ;;  %5654 = vst [vmem:[#allocation17_spill] sm:$0xff] %v5136_v4 }
 0x883   :  { %v5140_v29 = vpop.f32.mrf.mxu1 }
 0x884   :  { %v5130_v40 = vpop.f32.mrf.mxu0  ;;  %5656 = vst [vmem:[#allocation28_spill] sm:$0xff] %v5140_v29 }
 0x885   :  { %v5144_v30 = vpop.f32.mrf.mxu1 }
 0x886   :  { %v5134_v32 = vpop.f32.mrf.mxu0  ;;  %5658 = vst [vmem:[#allocation19_spill] sm:$0xff] %v5144_v30 }
 0x887   :  { %5653 = vst [vmem:[#allocation25_spill] sm:$0xff] %v5134_v32  ;;  %v5148_v24 = vpop.f32.mrf.mxu1 }
 0x888   :  { %v5138_v7 = vpop.f32.mrf.mxu0  ;;  %5660 = vst [vmem:[#allocation30_spill] sm:$0xff] %v5148_v24 }
 0x889   :  { %5655 = vst [vmem:[#allocation18_spill] sm:$0xff] %v5138_v7  ;;  %v5152_v56 = vpop.f32.mrf.mxu1 }
 0x88a   :  { %v5142_v8 = vpop.f32.mrf.mxu0  ;;  %5662 = vst [vmem:[#allocation21_spill] sm:$0xff] %v5152_v56 }
 0x88b   :  { %v4093_v47 = vpop.eup %4092  ;;  %5657 = vst [vmem:[#allocation27_spill] sm:$0xff] %v5142_v8  ;;  %v5156_v57 = vpop.f32.mrf.mxu1 }
 0x88c   :  { %v1720_v36 = vmul.f32 %v4093_v47, %v4091_v38  ;;  %v5146_v17 = vpop.f32.mrf.mxu0  ;;  %5664 = vst [vmem:[#allocation32_spill] sm:$0xff] %v5156_v57 }
 0x88d   :  { %5659 = vst [vmem:[#allocation20_spill] sm:$0xff] %v5146_v17 }
 0x88e   :  { %v1721_v12 = vpack.c.bf16 %v1720_v36, %v1720_v36  ;;  %v5150_v55 = vpop.f32.mrf.mxu0 }
 0x88f   :  { %5661 = vst [vmem:[#allocation29_spill] sm:$0xff] %v5150_v55 }
 0x890   :  { %1723 = vst [vmem:[#allocation4] sm:$0xf] %v1721_v12  ;;  %1729 = vst [vmem:[#allocation3 + $0x1c] sm:$0xf] %v1721_v12  ;;  %v5154_v18 = vpop.f32.mrf.mxu0 }
 0x891   :  { %1795 = vst [vmem:[#allocation4] sm:$0xf] %v5634_v37  ;;  %5663 = vst [vmem:[#allocation22_spill] sm:$0xff] %v5154_v18 }
 0x897   :  { %v3941_v34 = vld [vmem:[#allocation3 + $0x18] sm:$0xff]  }
 0x898   :  { %2073 = vmatmul.mubr.bf16.gmra.mxu0 %v3941_v34  ;;  %2146 = vmatmul.mubr.bf16.gmra.mxu1 %v3941_v34  ;;  %v2188_v0 = vld [vmem:[#allocation4] sm:$0xf]  ;;  %v5669_v34 = vld [vmem:[#allocation16_spill] sm:$0xff] }
 0x899   :  { %2386 = vmatprep.mubr.bf16.mxu0 %v5634_v37  ;;  %2427 = vmatprep.mubr.bf16.mxu1 %v5634_v37  ;;  %v5673_v57 = vsub.s32 1, %v5669_v34  ;;  %v5676_v32 = vsub.s32 3, %v5669_v34 }
 0x89b   :  { %v5179_v30 = vrot.slane %v1794_v31, %v5673_v57 }
 0x89d   :  { %v2047_v17 = vadd.f32 %v2046_v42, %v5179_v30  ;;  %v5677_v42 = vsub.s32 2, %v5669_v34 }
 0x8a0   :  { %2387 = vmatmul.mubr.bf16.vlgmr.msra.gmra.mxu0 %v2188_v0  ;;  %2428 = vmatmul.mubr.bf16.vlgmr.msra.gmra.mxu1 %v2188_v0  ;;  %v5670_v0 = vsub.s32 0, %v5669_v34 }
 0x8a1   :  { %2475 = vmatpush1.bf16.msra.mxu0 %v4982_v21  ;;  %2516 = vmatpush1.bf16.msra.mxu1 %v4984_v53 }
 0x8a2   :  { %2476 = vmatprep.subr.bf16.mxu0 %v4990_v59  ;;  %2517 = vmatprep.subr.bf16.mxu1 %v4992_v22  ;;  %v5171_v55 = vrot.slane %v1794_v31, %v5670_v0 }
 0x8a3   :  { %2506 = vmatprep.mubr.bf16.mxu0 %v5634_v37  ;;  %2547 = vmatprep.mubr.bf16.mxu1 %v5634_v37 }
 0x8a5   :  { %2477 = vmatpush1.bf16.msra.mxu0 %v4994_v60  ;;  %2518 = vmatpush1.bf16.msra.mxu1 %v4996_v61 }
 0x8a6   :  { %2478 = vmatprep.subr.bf16.mxu0 %v5002_v62  ;;  %2519 = vmatprep.subr.bf16.mxu1 %v5004_v63 }
 0x8a9   :  { %2479 = vmatpush1.bf16.msra.mxu0 %v5006_v1  ;;  %2520 = vmatpush1.bf16.msra.mxu1 %v5008_v2 }
 0x8aa   :  { %2480 = vmatprep.subr.bf16.mxu0 %v5014_v5  ;;  %2521 = vmatprep.subr.bf16.mxu1 %v5016_v6 }
 0x8ad   :  { %2481 = vmatpush1.bf16.msra.mxu0 %v5018_v33  ;;  %2522 = vmatpush1.bf16.msra.mxu1 %v5020_v19 }
 0x8ae   :  { %2482 = vmatprep.subr.bf16.mxu0 %v5026_v27  ;;  %2523 = vmatprep.subr.bf16.mxu1 %v5028_v9 }
 0x8b1   :  { %2483 = vmatpush1.bf16.msra.mxu0 %v5030_v48  ;;  %2524 = vmatpush1.bf16.msra.mxu1 %v5032_v46 }
 0x8b2   :  { %2484 = vmatprep.subr.bf16.mxu0 %v5034_v10  ;;  %2525 = vmatprep.subr.bf16.mxu1 %v5038_v14 }
 0x8b5   :  { %2485 = vmatpush1.bf16.msra.mxu0 %v5042_v3  ;;  %2526 = vmatpush1.bf16.msra.mxu1 %v5044_v20 }
 0x8b6   :  { %2486 = vmatprep.subr.bf16.mxu0 %v5050_v41  ;;  %2527 = vmatprep.subr.bf16.mxu1 %v5052_v50 }
 0x8b9   :  { %2487 = vmatpush1.bf16.msra.mxu0 %v5054_v43  ;;  %2528 = vmatpush1.bf16.msra.mxu1 %v5056_v51 }
 0x8ba   :  { %2488 = vmatprep.subr.bf16.mxu0 %v5058_v54  ;;  %2529 = vmatprep.subr.bf16.mxu1 %v5062_v35 }
 0x8bd   :  { %2489 = vmatpush1.bf16.msra.mxu0 %v5066_v15  ;;  %2530 = vmatpush1.bf16.msra.mxu1 %v5068_v45 }
 0x8be   :  { %2594 = vmatprep.subr.bf16.mxu0 %v4978_v39  ;;  %2635 = vmatprep.subr.bf16.mxu1 %v4980_v58 }
 0x958   :  { %v5161_v38 = vpop.f32.mrf.mxu0  ;;  %v5163_v47 = vpop.f32.mrf.mxu1 }
 0x959   :  { %5665 = vst [vmem:[#allocation31_spill] sm:$0xff] %v5161_v38  ;;  %5666 = vst [vmem:[#allocation23_spill] sm:$0xff] %v5163_v47  ;;  %v2045_v47 = vadd.f32 %v2044_v16, %v5171_v55 }
 0x95a   :  { %v5165_v36 = vpop.f32.mrf.mxu0  ;;  %v5167_v12 = vpop.f32.mrf.mxu1 }
 0x95b   :  { %5667 = vst [vmem:[#allocation24_spill] sm:$0xff] %v5165_v36  ;;  %5668 = vst [vmem:[#allocation33_spill] sm:$0xff] %v5167_v12 }
 0x95c   :  { %v5173_v56 = vpop.f32.mrf.mxu0  ;;  %v5175_v18 = vpop.f32.mrf.mxu1 }
 0x95d   :  { %5671 = vst [vmem:[#allocation16_spill] sm:$0xff] %v5173_v56  ;;  %5672 = vst [vmem:[#allocation34_spill] sm:$0xff] %v5175_v18 }
 0x95e   :  { %v5181_v24 = vpop.f32.mrf.mxu0  ;;  %v5183_v38 = vpop.f32.mrf.mxu1 }
 0x95f   :  { %5674 = vst [vmem:[#allocation35_spill] sm:$0xff] %v5181_v24  ;;  %5675 = vst [vmem:[#allocation36_spill] sm:$0xff] %v5183_v38  ;;  %v5189_v24 = vrot.slane %v1794_v31, %v5676_v32 }
 0x960   :  { %v2388_v36 = vpop.f32.mrf.mxu0  ;;  %v2429_v12 = vpop.f32.mrf.mxu1 }
 0x961   :  { %v2436_v0 = vadd.f32 %v2388_v36, %v2045_v47  ;;  %v2120_v16 = vadd.f32 %v2119_v25, %v5189_v24  ;;  %v5194_v47 = vrot.slane %v1794_v31, %v5677_v42 }
 0x962   :  { %v2390_v8 = vpop.f32.mrf.mxu0  ;;  %v2431_v4 = vpop.f32.mrf.mxu1 }
 0x963   :  { %v3674_v56 = vmul.f32 -1.442695, %v2436_v0  ;;  %v2437_v29 = vadd.f32 %v2390_v8, %v2047_v17  ;;  %v2439_v36 = vadd.f32 %v2431_v4, %v2120_v16  ;;  %v2118_v8 = vadd.f32 %v2117_v49, %v5194_v47 }
 0x964   :  { %v2392_v18 = vpop.f32.mrf.mxu0  ;;  %v2433_v7 = vpop.f32.mrf.mxu1 }
 0x965   :  { %4094 = vpow2.f32 %v3674_v56  ;;  %v3675_v57 = vmul.f32 -1.442695, %v2437_v29  ;;  %v3676_v17 = vmul.f32 -1.442695, %v2439_v36  ;;  %v2438_v56 = vadd.f32 %v2429_v12, %v2118_v8 }
 0x966   :  { %v2393_v38 = vpop.f32.mrf.mxu0  ;;  %v2434_v28 = vpop.f32.mrf.mxu1  ;;  %v2049_v8 = vadd.f32 %v5118_v11, %v5171_v55  ;;  %v2124_v11 = vadd.f32 %v5124_v13, %v5189_v24 }
 0x967   :  { %4096 = vpow2.f32 %v3675_v57 }
 0x968   :  { %4098 = vpow2.f32 %v3676_v17 }
 0x972   :  { %v4095_v7 = vpop.eup %4094 }
 0x973   :  { %v2443_v29 = vadd.f32 1.0, %v4095_v7 }
 0x974   :  { %v4097_v18 = vpop.eup %4096 }
 0x975   :  { %4100 = vrcp.f32 %v2443_v29  ;;  %v2449_v32 = vadd.f32 1.0, %v4097_v18  ;;  %v4099_v28 = vpop.eup %4098 }
 0x976   :  { %4102 = vtanh.f32 %v2438_v56  ;;  %v2456_v34 = vadd.f32 1.0, %v4099_v28  ;;  %v2051_v56 = vadd.f32 %v5122_v26, %v5179_v30 }
 0x977   :  { %4104 = vrcp.f32 %v2449_v32 }
 0x978   :  { %4106 = vrcp.f32 %v2456_v34 }
 0x982   :  { %v4101_v38 = vpop.eup %4100 }
 0x983   :  { %v4103_v25 = vpop.eup %4102 }
 0x984   :  { %v4105_v0 = vpop.eup %4104  ;;  %v2460_v57 = vmul.f32 %v4103_v25, %v4101_v38 }
 0x985   :  { %v2459_v31 = vmul.f32 0.0, %v4105_v0  ;;  %v4107_v49 = vpop.eup %4106 }
 0x987   :  { %v5197_v4 = vadd.f32 %v2460_v57, %v2459_v31 }
 0x989   :  { %4108 = vtanh.f32 %v5197_v4 }
 0x996   :  { %v4109_v12 = vpop.eup %4108 }
 0x997   :  { %v2463_v16 = vmul.f32 %v4109_v12, %v4107_v49  ;;  %v2122_v12 = vadd.f32 %v5120_v23, %v5194_v47 }
 0x999   :  { %v2464_v42 = vpack.c.bf16 %v2463_v16, %v2463_v16 }
 0x99b   :  { %2467 = vst [vmem:[#allocation3] sm:$0xf] %v2464_v42  ;;  %2466 = vst [vmem:[#allocation4] sm:$0xf] %v2464_v42 }
 0x9a2   :  { %v2468_v36 = vld [vmem:[#allocation4] sm:$0xf] }
 0x9a3   :  { %2507 = vmatmul.mubr.bf16.vlgmr.msra.gmra.mxu0 %v2468_v36  ;;  %2548 = vmatmul.mubr.bf16.vlgmr.msra.gmra.mxu1 %v2468_v36 }
 0x9a4   :  { %2595 = vmatpush1.bf16.msra.mxu0 %v4982_v21  ;;  %2636 = vmatpush1.bf16.msra.mxu1 %v4984_v53 }
 0x9a5   :  { %2596 = vmatprep.subr.bf16.mxu0 %v4990_v59  ;;  %2637 = vmatprep.subr.bf16.mxu1 %v4992_v22 }
 0x9a6   :  { %2626 = vmatprep.mubr.bf16.mxu0 %v5634_v37  ;;  %2667 = vmatprep.mubr.bf16.mxu1 %v5634_v37 }
 0x9a8   :  { %2597 = vmatpush1.bf16.msra.mxu0 %v4994_v60  ;;  %2638 = vmatpush1.bf16.msra.mxu1 %v4996_v61 }
 0x9a9   :  { %2598 = vmatprep.subr.bf16.mxu0 %v5002_v62  ;;  %2639 = vmatprep.subr.bf16.mxu1 %v5004_v63 }
 0x9ac   :  { %2599 = vmatpush1.bf16.msra.mxu0 %v5006_v1  ;;  %2640 = vmatpush1.bf16.msra.mxu1 %v5008_v2 }
 0x9ad   :  { %2600 = vmatprep.subr.bf16.mxu0 %v5014_v5  ;;  %2641 = vmatprep.subr.bf16.mxu1 %v5016_v6 }
 0x9b0   :  { %2601 = vmatpush1.bf16.msra.mxu0 %v5018_v33  ;;  %2642 = vmatpush1.bf16.msra.mxu1 %v5020_v19 }
 0x9b1   :  { %2602 = vmatprep.subr.bf16.mxu0 %v5026_v27  ;;  %2643 = vmatprep.subr.bf16.mxu1 %v5028_v9 }
 0x9b4   :  { %2603 = vmatpush1.bf16.msra.mxu0 %v5030_v48  ;;  %2644 = vmatpush1.bf16.msra.mxu1 %v5032_v46 }
 0x9b5   :  { %2604 = vmatprep.subr.bf16.mxu0 %v5034_v10  ;;  %2645 = vmatprep.subr.bf16.mxu1 %v5038_v14 }
 0x9b8   :  { %2605 = vmatpush1.bf16.msra.mxu0 %v5042_v3  ;;  %2646 = vmatpush1.bf16.msra.mxu1 %v5044_v20 }
 0x9b9   :  { %2606 = vmatprep.subr.bf16.mxu0 %v5050_v41  ;;  %2647 = vmatprep.subr.bf16.mxu1 %v5052_v50 }
 0x9bc   :  { %2607 = vmatpush1.bf16.msra.mxu0 %v5054_v43  ;;  %2648 = vmatpush1.bf16.msra.mxu1 %v5056_v51 }
 0x9bd   :  { %2608 = vmatprep.subr.bf16.mxu0 %v5058_v54  ;;  %2649 = vmatprep.subr.bf16.mxu1 %v5062_v35 }
 0x9c0   :  { %2609 = vmatpush1.bf16.msra.mxu0 %v5066_v15  ;;  %2650 = vmatpush1.bf16.msra.mxu1 %v5068_v45 }
 0x9c1   :  { %2714 = vmatprep.subr.bf16.mxu0 %v4978_v39  ;;  %2755 = vmatprep.subr.bf16.mxu1 %v4980_v58 }
 0xa63   :  { %v2508_v17 = vpop.f32.mrf.mxu0  ;;  %v2549_v7 = vpop.f32.mrf.mxu1 }
 0xa64   :  { %v2556_v29 = vadd.f32 %v2508_v17, %v2049_v8  ;;  %v2558_v26 = vadd.f32 %v2549_v7, %v2122_v12 }
 0xa65   :  { %v2510_v18 = vpop.f32.mrf.mxu0  ;;  %v2551_v32 = vpop.f32.mrf.mxu1 }
 0xa66   :  { %v3677_v28 = vmul.f32 -1.442695, %v2556_v29  ;;  %v2557_v38 = vadd.f32 %v2510_v18, %v2051_v56  ;;  %v2559_v49 = vadd.f32 %v2551_v32, %v2124_v11 }
 0xa67   :  { %v2512_v25 = vpop.f32.mrf.mxu0  ;;  %v2553_v0 = vpop.f32.mrf.mxu1 }
 0xa68   :  { %4110 = vpow2.f32 %v3677_v28  ;;  %v3678_v34 = vmul.f32 -1.442695, %v2557_v38  ;;  %v3679_v16 = vmul.f32 -1.442695, %v2559_v49  ;;  %v2057_v49 = vadd.f32 %v5130_v40, %v5179_v30 }
 0xa69   :  { %v2513_v31 = vpop.f32.mrf.mxu0  ;;  %v2554_v57 = vpop.f32.mrf.mxu1 }
 0xa6a   :  { %4112 = vpow2.f32 %v3678_v34 }
 0xa6b   :  { %4114 = vtanh.f32 %v2558_v26 }
 0xa6c   :  { %4116 = vpow2.f32 %v3679_v16 }
 0xa75   :  { %v4111_v42 = vpop.eup %4110 }
 0xa76   :  { %v2563_v36 = vadd.f32 1.0, %v4111_v42 }
 0xa77   :  { %v4113_v8 = vpop.eup %4112 }
 0xa78   :  { %4118 = vrcp.f32 %v2563_v36  ;;  %v2569_v17 = vadd.f32 1.0, %v4113_v8  ;;  %v4115_v56 = vpop.eup %4114 }
 0xa79   :  { %v4117_v29 = vpop.eup %4116 }
 0xa7a   :  { %4120 = vrcp.f32 %v2569_v17  ;;  %v2576_v13 = vadd.f32 1.0, %v4117_v29 }
 0xa7c   :  { %4122 = vrcp.f32 %v2576_v13 }
 0xa85   :  { %v4119_v18 = vpop.eup %4118 }
 0xa86   :  { %v2580_v28 = vmul.f32 %v4119_v18, %v4115_v56 }
 0xa87   :  { %v4121_v38 = vpop.eup %4120 }
 0xa88   :  { %v2579_v32 = vmul.f32 %v4121_v38, %v5197_v4  ;;  %v2055_v4 = vadd.f32 %v5126_v52, %v5171_v55  ;;  %v2130_v52 = vadd.f32 %v5132_v44, %v5189_v24  ;;  %v5678_v38 = vld [vmem:[#allocation26_spill] sm:$0xff] }
 0xa89   :  { %v4123_v23 = vpop.eup %4122  ;;  %v2128_v13 = vadd.f32 %v5678_v38, %v5194_v47 }
 0xa8a   :  { %v5243_v25 = vadd.f32 %v2580_v28, %v2579_v32 }
 0xa8c   :  { %4124 = vtanh.f32 %v5243_v25 }
 0xa99   :  { %v4125_v7 = vpop.eup %4124 }
 0xa9a   :  { %v2583_v0 = vmul.f32 %v4125_v7, %v4123_v23 }
 0xa9c   :  { %v2584_v34 = vpack.c.bf16 %v2583_v0, %v2583_v0 }
 0xa9e   :  { %2587 = vst [vmem:[#allocation3 + $0x4] sm:$0xf] %v2584_v34  ;;  %2586 = vst [vmem:[#allocation4] sm:$0xf] %v2584_v34 }
 0xaa5   :  { %v2588_v31 = vld [vmem:[#allocation4] sm:$0xf] }
 0xaa6   :  { %2627 = vmatmul.mubr.bf16.vlgmr.msra.gmra.mxu0 %v2588_v31  ;;  %2668 = vmatmul.mubr.bf16.vlgmr.msra.gmra.mxu1 %v2588_v31 }
 0xaa7   :  { %2715 = vmatpush1.bf16.msra.mxu0 %v4982_v21  ;;  %2756 = vmatpush1.bf16.msra.mxu1 %v4984_v53 }
 0xaa8   :  { %2716 = vmatprep.subr.bf16.mxu0 %v4990_v59  ;;  %2757 = vmatprep.subr.bf16.mxu1 %v4992_v22 }
 0xaa9   :  { %2746 = vmatprep.mubr.bf16.mxu0 %v5634_v37  ;;  %2787 = vmatprep.mubr.bf16.mxu1 %v5634_v37 }
 0xaab   :  { %2717 = vmatpush1.bf16.msra.mxu0 %v4994_v60  ;;  %2758 = vmatpush1.bf16.msra.mxu1 %v4996_v61 }
 0xaac   :  { %2718 = vmatprep.subr.bf16.mxu0 %v5002_v62  ;;  %2759 = vmatprep.subr.bf16.mxu1 %v5004_v63 }
 0xaaf   :  { %2719 = vmatpush1.bf16.msra.mxu0 %v5006_v1  ;;  %2760 = vmatpush1.bf16.msra.mxu1 %v5008_v2 }
 0xab0   :  { %2720 = vmatprep.subr.bf16.mxu0 %v5014_v5  ;;  %2761 = vmatprep.subr.bf16.mxu1 %v5016_v6 }
 0xab3   :  { %2721 = vmatpush1.bf16.msra.mxu0 %v5018_v33  ;;  %2762 = vmatpush1.bf16.msra.mxu1 %v5020_v19 }
 0xab4   :  { %2722 = vmatprep.subr.bf16.mxu0 %v5026_v27  ;;  %2763 = vmatprep.subr.bf16.mxu1 %v5028_v9 }
 0xab7   :  { %2723 = vmatpush1.bf16.msra.mxu0 %v5030_v48  ;;  %2764 = vmatpush1.bf16.msra.mxu1 %v5032_v46 }
 0xab8   :  { %2724 = vmatprep.subr.bf16.mxu0 %v5034_v10  ;;  %2765 = vmatprep.subr.bf16.mxu1 %v5038_v14 }
 0xabb   :  { %2725 = vmatpush1.bf16.msra.mxu0 %v5042_v3  ;;  %2766 = vmatpush1.bf16.msra.mxu1 %v5044_v20 }
 0xabc   :  { %2726 = vmatprep.subr.bf16.mxu0 %v5050_v41  ;;  %2767 = vmatprep.subr.bf16.mxu1 %v5052_v50 }
 0xabf   :  { %2727 = vmatpush1.bf16.msra.mxu0 %v5054_v43  ;;  %2768 = vmatpush1.bf16.msra.mxu1 %v5056_v51 }
 0xac0   :  { %2728 = vmatprep.subr.bf16.mxu0 %v5058_v54  ;;  %2769 = vmatprep.subr.bf16.mxu1 %v5062_v35 }
 0xac3   :  { %2729 = vmatpush1.bf16.msra.mxu0 %v5066_v15  ;;  %2770 = vmatpush1.bf16.msra.mxu1 %v5068_v45 }
 0xac4   :  { %2834 = vmatprep.subr.bf16.mxu0 %v4978_v39  ;;  %2875 = vmatprep.subr.bf16.mxu1 %v4980_v58 }
 0xb66   :  { %v2628_v57 = vpop.f32.mrf.mxu0  ;;  %v2669_v11 = vpop.f32.mrf.mxu1 }
 0xb67   :  { %v2676_v12 = vadd.f32 %v2628_v57, %v2055_v4  ;;  %v2678_v40 = vadd.f32 %v2669_v11, %v2128_v13 }
 0xb68   :  { %v2630_v26 = vpop.f32.mrf.mxu0  ;;  %v2671_v16 = vpop.f32.mrf.mxu1 }
 0xb69   :  { %v3680_v42 = vmul.f32 -1.442695, %v2676_v12  ;;  %v2677_v36 = vadd.f32 %v2630_v26, %v2057_v49  ;;  %v2679_v28 = vadd.f32 %v2671_v16, %v2130_v52  ;;  %v5680_v52 = vld [vmem:[#allocation18_spill] sm:$0xff] }
 0xb6a   :  { %v2632_v8 = vpop.f32.mrf.mxu0  ;;  %v2673_v17 = vpop.f32.mrf.mxu1 }
 0xb6b   :  { %4126 = vpow2.f32 %v3680_v42  ;;  %v3681_v56 = vmul.f32 -1.442695, %v2677_v36  ;;  %v3682_v32 = vmul.f32 -1.442695, %v2679_v28  ;;  %v2061_v28 = vadd.f32 %v5680_v52, %v5179_v30 }
 0xb6c   :  { %v2633_v29 = vpop.f32.mrf.mxu0  ;;  %v2674_v18 = vpop.f32.mrf.mxu1 }
 0xb6d   :  { %4128 = vpow2.f32 %v3681_v56 }
 0xb6e   :  { %4130 = vtanh.f32 %v2678_v40 }
 0xb6f   :  { %4132 = vpow2.f32 %v3682_v32 }
 0xb78   :  { %v4127_v23 = vpop.eup %4126 }
 0xb79   :  { %v2683_v7 = vadd.f32 1.0, %v4127_v23 }
 0xb7a   :  { %v4129_v0 = vpop.eup %4128 }
 0xb7b   :  { %4134 = vrcp.f32 %v2683_v7  ;;  %v2689_v34 = vadd.f32 1.0, %v4129_v0  ;;  %v4131_v31 = vpop.eup %4130 }
 0xb7c   :  { %v4133_v4 = vpop.eup %4132 }
 0xb7d   :  { %4136 = vrcp.f32 %v2689_v34  ;;  %v2696_v44 = vadd.f32 1.0, %v4133_v4 }
 0xb7f   :  { %4138 = vrcp.f32 %v2696_v44 }
 0xb88   :  { %v4135_v57 = vpop.eup %4134 }
 0xb89   :  { %v2700_v49 = vmul.f32 %v4135_v57, %v4131_v31 }
 0xb8a   :  { %v4137_v12 = vpop.eup %4136 }
 0xb8b   :  { %v2699_v26 = vmul.f32 %v4137_v12, %v5243_v25  ;;  %v5679_v25 = vld [vmem:[#allocation25_spill] sm:$0xff] }
 0xb8c   :  { %v4139_v11 = vpop.eup %4138  ;;  %v2059_v56 = vadd.f32 %v5679_v25, %v5171_v55 }
 0xb8d   :  { %v5289_v16 = vadd.f32 %v2700_v49, %v2699_v26  ;;  %v5682_v49 = vld [vmem:[#allocation17_spill] sm:$0xff] }
 0xb8e   :  { %v2132_v12 = vadd.f32 %v5682_v49, %v5194_v47 }
 0xb8f   :  { %4140 = vtanh.f32 %v5289_v16 }
 0xb9c   :  { %v4141_v42 = vpop.eup %4140 }
 0xb9d   :  { %v2703_v36 = vmul.f32 %v4141_v42, %v4139_v11 }
 0xb9f   :  { %v2704_v8 = vpack.c.bf16 %v2703_v36, %v2703_v36 }
 0xba1   :  { %2707 = vst [vmem:[#allocation3 + $0x8] sm:$0xf] %v2704_v8  ;;  %2706 = vst [vmem:[#allocation4] sm:$0xf] %v2704_v8 }
 0xba8   :  { %v2708_v17 = vld [vmem:[#allocation4] sm:$0xf] }
 0xba9   :  { %2747 = vmatmul.mubr.bf16.vlgmr.msra.gmra.mxu0 %v2708_v17  ;;  %2788 = vmatmul.mubr.bf16.vlgmr.msra.gmra.mxu1 %v2708_v17 }
 0xbaa   :  { %2835 = vmatpush1.bf16.msra.mxu0 %v4982_v21  ;;  %2876 = vmatpush1.bf16.msra.mxu1 %v4984_v53 }
 0xbab   :  { %2836 = vmatprep.subr.bf16.mxu0 %v4990_v59  ;;  %2877 = vmatprep.subr.bf16.mxu1 %v4992_v22 }
 0xbac   :  { %2866 = vmatprep.mubr.bf16.mxu0 %v5634_v37  ;;  %2907 = vmatprep.mubr.bf16.mxu1 %v5634_v37 }
 0xbae   :  { %2837 = vmatpush1.bf16.msra.mxu0 %v4994_v60  ;;  %2878 = vmatpush1.bf16.msra.mxu1 %v4996_v61 }
 0xbaf   :  { %2838 = vmatprep.subr.bf16.mxu0 %v5002_v62  ;;  %2879 = vmatprep.subr.bf16.mxu1 %v5004_v63 }
 0xbb2   :  { %2839 = vmatpush1.bf16.msra.mxu0 %v5006_v1  ;;  %2880 = vmatpush1.bf16.msra.mxu1 %v5008_v2 }
 0xbb3   :  { %2840 = vmatprep.subr.bf16.mxu0 %v5014_v5  ;;  %2881 = vmatprep.subr.bf16.mxu1 %v5016_v6 }
 0xbb6   :  { %2841 = vmatpush1.bf16.msra.mxu0 %v5018_v33  ;;  %2882 = vmatpush1.bf16.msra.mxu1 %v5020_v19 }
 0xbb7   :  { %2842 = vmatprep.subr.bf16.mxu0 %v5026_v27  ;;  %2883 = vmatprep.subr.bf16.mxu1 %v5028_v9 }
 0xbba   :  { %2843 = vmatpush1.bf16.msra.mxu0 %v5030_v48  ;;  %2884 = vmatpush1.bf16.msra.mxu1 %v5032_v46 }
 0xbbb   :  { %2844 = vmatprep.subr.bf16.mxu0 %v5034_v10  ;;  %2885 = vmatprep.subr.bf16.mxu1 %v5038_v14 }
 0xbbe   :  { %2845 = vmatpush1.bf16.msra.mxu0 %v5042_v3  ;;  %2886 = vmatpush1.bf16.msra.mxu1 %v5044_v20 }
 0xbbf   :  { %2846 = vmatprep.subr.bf16.mxu0 %v5050_v41  ;;  %2887 = vmatprep.subr.bf16.mxu1 %v5052_v50 }
 0xbc2   :  { %2847 = vmatpush1.bf16.msra.mxu0 %v5054_v43  ;;  %2888 = vmatpush1.bf16.msra.mxu1 %v5056_v51 }
 0xbc3   :  { %2848 = vmatprep.subr.bf16.mxu0 %v5058_v54  ;;  %2889 = vmatprep.subr.bf16.mxu1 %v5062_v35 }
 0xbc6   :  { %2849 = vmatpush1.bf16.msra.mxu0 %v5066_v15  ;;  %2890 = vmatpush1.bf16.msra.mxu1 %v5068_v45 }
 0xbc7   :  { %2954 = vmatprep.subr.bf16.mxu0 %v4978_v39  ;;  %2995 = vmatprep.subr.bf16.mxu1 %v4980_v58  ;;  %v5681_v58 = vld [vmem:[#allocation28_spill] sm:$0xff] }
 0xbc8   :  { %v2134_v4 = vadd.f32 %v5681_v58, %v5189_v24 }
 0xc69   :  { %v2748_v29 = vpop.f32.mrf.mxu0  ;;  %v2789_v18 = vpop.f32.mrf.mxu1 }
 0xc6a   :  { %v2796_v38 = vadd.f32 %v2748_v29, %v2059_v56  ;;  %v2798_v44 = vadd.f32 %v2789_v18, %v2132_v12 }
 0xc6b   :  { %v2750_v13 = vpop.f32.mrf.mxu0  ;;  %v2791_v40 = vpop.f32.mrf.mxu1 }
 0xc6c   :  { %v3683_v32 = vmul.f32 -1.442695, %v2796_v38  ;;  %v2797_v23 = vadd.f32 %v2750_v13, %v2061_v28  ;;  %v2799_v57 = vadd.f32 %v2791_v40, %v2134_v4 }
 0xc6d   :  { %v2752_v7 = vpop.f32.mrf.mxu0  ;;  %v2793_v0 = vpop.f32.mrf.mxu1 }
 0xc6e   :  { %4142 = vpow2.f32 %v3683_v32  ;;  %v3684_v34 = vmul.f32 -1.442695, %v2797_v23  ;;  %v3685_v26 = vmul.f32 -1.442695, %v2799_v57 }
 0xc6f   :  { %v2753_v39 = vpop.f32.mrf.mxu0  ;;  %v2794_v31 = vpop.f32.mrf.mxu1 }
 0xc70   :  { %4144 = vpow2.f32 %v3684_v34 }
 0xc71   :  { %4146 = vtanh.f32 %v2798_v44 }
 0xc72   :  { %4148 = vpow2.f32 %v3685_v26 }
 0xc7b   :  { %v4143_v11 = vpop.eup %4142 }
 0xc7c   :  { %v2803_v42 = vadd.f32 1.0, %v4143_v11  ;;  %v5388_v11 = vld [vmem:[#allocation11 + $0xe0] ss:$16 sps:$4 sm:$0xff]  }
 0xc7d   :  { %v4145_v36 = vpop.eup %4144 }
 0xc7e   :  { %4150 = vrcp.f32 %v2803_v42  ;;  %v2809_v8 = vadd.f32 1.0, %v4145_v36  ;;  %v4147_v17 = vpop.eup %4146  ;;  %v5391_v42 = vld [vmem:[#allocation11 + $0xe8] ss:$16 sps:$4 sm:$0xff]   ;;  %v5394_v36 = vld [vmem:[#allocation11 + $0xc4] ss:$16 sps:$4 sm:$0xff]  }
 0xc7f   :  { %v4149_v25 = vpop.eup %4148 }
 0xc80   :  { %4152 = vrcp.f32 %v2809_v8  ;;  %v2816_v28 = vadd.f32 1.0, %v4149_v25  ;;  %v5397_v8 = vld [vmem:[#allocation11 + $0xcc] ss:$16 sps:$4 sm:$0xff]   ;;  %v5405_v25 = vld [vmem:[#allocation11 + $0xc8] ss:$16 sps:$4 sm:$0xff]  }
 0xc82   :  { %4154 = vrcp.f32 %v2816_v28  ;;  %v5417_v28 = vld [vmem:[#allocation11 + $0xa8] ss:$16 sps:$4 sm:$0xff]  }
 0xc8b   :  { %v4151_v56 = vpop.eup %4150 }
 0xc8c   :  { %v2820_v29 = vmul.f32 %v4151_v56, %v4147_v17  ;;  %v5402_v17 = vld [vmem:[#allocation11 + $0xc0] ss:$16 sps:$4 sm:$0xff]   ;;  %v5408_v56 = vld [vmem:[#allocation11 + $0xa4] ss:$16 sps:$4 sm:$0xff]  }
 0xc8d   :  { %v4153_v52 = vpop.eup %4152 }
 0xc8e   :  { %v2819_v38 = vmul.f32 %v4153_v52, %v5289_v16  ;;  %v5414_v52 = vld [vmem:[#allocation11 + $0xa0] ss:$16 sps:$4 sm:$0xff]  }
 0xc8f   :  { %v4155_v18 = vpop.eup %4154 }
 0xc90   :  { %v5335_v13 = vadd.f32 %v2820_v29, %v2819_v38  ;;  %v5411_v29 = vld [vmem:[#allocation11 + $0xac] ss:$16 sps:$4 sm:$0xff]   ;;  %v5420_v38 = vld [vmem:[#allocation11 + $0x84] ss:$16 sps:$4 sm:$0xff]  }
 0xc92   :  { %4156 = vtanh.f32 %v5335_v13 }
 0xc9f   :  { %v4157_v40 = vpop.eup %4156 }
 0xca0   :  { %v2823_v32 = vmul.f32 %v4157_v40, %v4155_v18  ;;  %v5426_v18 = vld [vmem:[#allocation11 + $0x80] ss:$16 sps:$4 sm:$0xff]   ;;  %v5429_v40 = vld [vmem:[#allocation11 + $0x88] ss:$16 sps:$4 sm:$0xff]  }
 0xca2   :  { %v2824_v23 = vpack.c.bf16 %v2823_v32, %v2823_v32  ;;  %v5432_v32 = vld [vmem:[#allocation11 + $0x64] ss:$16 sps:$4 sm:$0xff]  }
 0xca4   :  { %2827 = vst [vmem:[#allocation3 + $0xc] sm:$0xf] %v2824_v23  ;;  %2826 = vst [vmem:[#allocation4] sm:$0xf] %v2824_v23  ;;  %v5435_v23 = vld [vmem:[#allocation11 + $0x6c] ss:$16 sps:$4 sm:$0xff]  }
 0xcab   :  { %v2828_v7 = vld [vmem:[#allocation4] sm:$0xf] }
 0xcac   :  { %2867 = vmatmul.mubr.bf16.vlgmr.msra.gmra.mxu0 %v2828_v7  ;;  %2908 = vmatmul.mubr.bf16.vlgmr.msra.gmra.mxu1 %v2828_v7  ;;  %v5438_v7 = vld [vmem:[#allocation11 + $0x60] ss:$16 sps:$4 sm:$0xff]  }
 0xcad   :  { %2955 = vmatpush1.bf16.msra.mxu0 %v4982_v21  ;;  %2996 = vmatpush1.bf16.msra.mxu1 %v4984_v53  ;;  %v5370_v21 = vld [vmem:[#allocation11 + $0xe4] ss:$16 sps:$4 sm:$0xff]   ;;  %v5373_v53 = vld [vmem:[#allocation11 + $0xec] ss:$16 sps:$4 sm:$0xff]  }
 0xcae   :  { %2956 = vmatprep.subr.bf16.mxu0 %v4990_v59  ;;  %2997 = vmatprep.subr.bf16.mxu1 %v4992_v22  ;;  %v5683_v59 = vld [vmem:[#allocation27_spill] sm:$0xff] }
 0xcaf   :  { %2986 = vmatprep.mubr.bf16.mxu0 %v5634_v37  ;;  %3027 = vmatprep.mubr.bf16.mxu1 %v5634_v37  ;;  %v2065_v22 = vadd.f32 %v5683_v59, %v5171_v55  ;;  %v5441_v59 = vld [vmem:[#allocation11 + $0x68] ss:$16 sps:$4 sm:$0xff]  }
 0xcb1   :  { %2957 = vmatpush1.bf16.msra.mxu0 %v4994_v60  ;;  %2998 = vmatpush1.bf16.msra.mxu1 %v4996_v61 }
 0xcb2   :  { %2958 = vmatprep.subr.bf16.mxu0 %v5002_v62  ;;  %2999 = vmatprep.subr.bf16.mxu1 %v5004_v63  ;;  %v5684_v62 = vld [vmem:[#allocation20_spill] sm:$0xff] }
 0xcb3   :  { %v2067_v63 = vadd.f32 %v5684_v62, %v5179_v30  ;;  %v5453_v62 = vld [vmem:[#allocation11 + $0x48] ss:$16 sps:$4 sm:$0xff]  }
 0xcb5   :  { %2959 = vmatpush1.bf16.msra.mxu0 %v5006_v1  ;;  %3000 = vmatpush1.bf16.msra.mxu1 %v5008_v2 }
 0xcb6   :  { %2960 = vmatprep.subr.bf16.mxu0 %v5014_v5  ;;  %3001 = vmatprep.subr.bf16.mxu1 %v5016_v6 }
 0xcb9   :  { %2961 = vmatpush1.bf16.msra.mxu0 %v5018_v33  ;;  %3002 = vmatpush1.bf16.msra.mxu1 %v5020_v19 }
 0xcba   :  { %2962 = vmatprep.subr.bf16.mxu0 %v5026_v27  ;;  %3003 = vmatprep.subr.bf16.mxu1 %v5028_v9 }
 0xcbd   :  { %2963 = vmatpush1.bf16.msra.mxu0 %v5030_v48  ;;  %3004 = vmatpush1.bf16.msra.mxu1 %v5032_v46 }
 0xcbe   :  { %2964 = vmatprep.subr.bf16.mxu0 %v5034_v10  ;;  %3005 = vmatprep.subr.bf16.mxu1 %v5038_v14  ;;  %v5685_v10 = vld [vmem:[#allocation30_spill] sm:$0xff] }
 0xcbf   :  { %v2140_v14 = vadd.f32 %v5685_v10, %v5189_v24 }
 0xcc1   :  { %2965 = vmatpush1.bf16.msra.mxu0 %v5042_v3  ;;  %3006 = vmatpush1.bf16.msra.mxu1 %v5044_v20  ;;  %v5686_v20 = vld [vmem:[#allocation19_spill] sm:$0xff] }
 0xcc2   :  { %2966 = vmatprep.subr.bf16.mxu0 %v5050_v41  ;;  %3007 = vmatprep.subr.bf16.mxu1 %v5052_v50  ;;  %v2138_v41 = vadd.f32 %v5686_v20, %v5194_v47 }
 0xcc5   :  { %2967 = vmatpush1.bf16.msra.mxu0 %v5054_v43  ;;  %3008 = vmatpush1.bf16.msra.mxu1 %v5056_v51 }
 0xcc6   :  { %2968 = vmatprep.subr.bf16.mxu0 %v5058_v54  ;;  %3009 = vmatprep.subr.bf16.mxu1 %v5062_v35 }
 0xcc9   :  { %2969 = vmatpush1.bf16.msra.mxu0 %v5066_v15  ;;  %3010 = vmatpush1.bf16.msra.mxu1 %v5068_v45 }
 0xcca   :  { %3074 = vmatprep.subr.bf16.mxu0 %v5370_v21  ;;  %3115 = vmatprep.subr.bf16.mxu1 %v5373_v53 }
 0xd6c   :  { %v2868_v60 = vpop.f32.mrf.mxu0  ;;  %v2909_v61 = vpop.f32.mrf.mxu1 }
 0xd6d   :  { %v2916_v1 = vadd.f32 %v2868_v60, %v2065_v22  ;;  %v2918_v50 = vadd.f32 %v2909_v61, %v2138_v41  ;;  %v5444_v22 = vld [vmem:[#allocation11 + $0x44] ss:$16 sps:$4 sm:$0xff]   ;;  %v5447_v60 = vld [vmem:[#allocation11 + $0x4c] ss:$16 sps:$4 sm:$0xff]   ;;  %v5450_v61 = vld [vmem:[#allocation11 + $0x40] ss:$16 sps:$4 sm:$0xff]  }
 0xd6e   :  { %v2870_v2 = vpop.f32.mrf.mxu0  ;;  %v2911_v5 = vpop.f32.mrf.mxu1 }
 0xd6f   :  { %v3686_v6 = vmul.f32 -1.442695, %v2916_v1  ;;  %v2917_v33 = vadd.f32 %v2870_v2, %v2067_v63  ;;  %v2919_v3 = vadd.f32 %v2911_v5, %v2140_v14  ;;  %v5456_v63 = vld [vmem:[#allocation11 + $0x24] ss:$16 sps:$4 sm:$0xff]   ;;  %v5459_v1 = vld [vmem:[#allocation11 + $0x2c] ss:$16 sps:$4 sm:$0xff]  }
 0xd70   :  { %v2872_v19 = vpop.f32.mrf.mxu0  ;;  %v2913_v27 = vpop.f32.mrf.mxu1  ;;  %v5462_v2 = vld [vmem:[#allocation11 + $0x20] ss:$16 sps:$4 sm:$0xff]   ;;  %v5465_v5 = vld [vmem:[#allocation11 + $0x28] ss:$16 sps:$4 sm:$0xff]  }
 0xd71   :  { %4158 = vpow2.f32 %v3686_v6  ;;  %v3687_v9 = vmul.f32 -1.442695, %v2917_v33  ;;  %v3688_v43 = vmul.f32 -1.442695, %v2919_v3  ;;  %v5468_v6 = vld [vmem:[#allocation11 + $0x4] ss:$16 sps:$4 sm:$0xff]  }
 0xd72   :  { %v2873_v48 = vpop.f32.mrf.mxu0  ;;  %v2914_v46 = vpop.f32.mrf.mxu1  ;;  %v5471_v33 = vld [vmem:[#allocation11 + $0xc] ss:$16 sps:$4 sm:$0xff]   ;;  %v5474_v19 = vld [vmem:[#allocation11] ss:$16 sps:$4 sm:$0xff]   ;;  %v5477_v27 = vld [vmem:[#allocation11 + $0x8] ss:$16 sps:$4 sm:$0xff]  }
 0xd73   :  { %4160 = vpow2.f32 %v3687_v9  ;;  %v5687_v9 = vld [vmem:[#allocation29_spill] sm:$0xff]  ;;  %v5688_v14 = vld [vmem:[#allocation22_spill] sm:$0xff] }
 0xd74   :  { %4162 = vtanh.f32 %v2918_v50  ;;  %v2069_v48 = vadd.f32 %v5687_v9, %v5171_v55  ;;  %v2071_v3 = vadd.f32 %v5688_v14, %v5179_v30 }
 0xd75   :  { %4164 = vpow2.f32 %v3688_v43 }
 0xd7e   :  { %v4159_v51 = vpop.eup %4158 }
 0xd7f   :  { %v2923_v54 = vadd.f32 1.0, %v4159_v51 }
 0xd80   :  { %v4161_v35 = vpop.eup %4160 }
 0xd81   :  { %4166 = vrcp.f32 %v2923_v54  ;;  %v2929_v15 = vadd.f32 1.0, %v4161_v35  ;;  %v4163_v45 = vpop.eup %4162 }
 0xd82   :  { %v4165_v16 = vpop.eup %4164 }
 0xd83   :  { %4168 = vrcp.f32 %v2929_v15  ;;  %v2936_v31 = vadd.f32 1.0, %v4165_v16 }
 0xd85   :  { %4170 = vrcp.f32 %v2936_v31 }
 0xd8e   :  { %v4167_v0 = vpop.eup %4166 }
 0xd8f   :  { %v2940_v34 = vmul.f32 %v4167_v0, %v4163_v45 }
 0xd90   :  { %v4169_v39 = vpop.eup %4168 }
 0xd91   :  { %v2939_v58 = vmul.f32 %v4169_v39, %v5335_v13  ;;  %v5423_v13 = vld [vmem:[#allocation11 + $0x8c] ss:$16 sps:$4 sm:$0xff]  }
 0xd92   :  { %v4171_v57 = vpop.eup %4170 }
 0xd93   :  { %v5385_v4 = vadd.f32 %v2940_v34, %v2939_v58  ;;  %v5690_v34 = vld [vmem:[#allocation21_spill] sm:$0xff] }
 0xd94   :  { %v2142_v39 = vadd.f32 %v5690_v34, %v5194_v47 }
 0xd95   :  { %4172 = vtanh.f32 %v5385_v4 }
 0xda2   :  { %v4173_v49 = vpop.eup %4172 }
 0xda3   :  { %v2943_v12 = vmul.f32 %v4173_v49, %v4171_v57 }
 0xda5   :  { %v2944_v44 = vpack.c.bf16 %v2943_v12, %v2943_v12 }
 0xda7   :  { %2947 = vst [vmem:[#allocation3 + $0x10] sm:$0xf] %v2944_v44  ;;  %2946 = vst [vmem:[#allocation4] sm:$0xf] %v2944_v44 }
 0xdae   :  { %v2948_v26 = vld [vmem:[#allocation4] sm:$0xf] }
 0xdaf   :  { %2987 = vmatmul.mubr.bf16.vlgmr.msra.gmra.mxu0 %v2948_v26  ;;  %3028 = vmatmul.mubr.bf16.vlgmr.msra.gmra.mxu1 %v2948_v26 }
 0xdb0   :  { %3075 = vmatpush1.bf16.msra.mxu0 %v5388_v11  ;;  %3116 = vmatpush1.bf16.msra.mxu1 %v5391_v42 }
 0xdb1   :  { %3076 = vmatprep.subr.bf16.mxu0 %v5394_v36  ;;  %3117 = vmatprep.subr.bf16.mxu1 %v5397_v8 }
 0xdb2   :  { %3106 = vmatprep.mubr.bf16.mxu0 %v5634_v37  ;;  %3147 = vmatprep.mubr.bf16.mxu1 %v5634_v37 }
 0xdb4   :  { %3077 = vmatpush1.bf16.msra.mxu0 %v5402_v17  ;;  %3118 = vmatpush1.bf16.msra.mxu1 %v5405_v25 }
 0xdb5   :  { %3078 = vmatprep.subr.bf16.mxu0 %v5408_v56  ;;  %3119 = vmatprep.subr.bf16.mxu1 %v5411_v29 }
 0xdb8   :  { %3079 = vmatpush1.bf16.msra.mxu0 %v5414_v52  ;;  %3120 = vmatpush1.bf16.msra.mxu1 %v5417_v28 }
 0xdb9   :  { %3080 = vmatprep.subr.bf16.mxu0 %v5420_v38  ;;  %3121 = vmatprep.subr.bf16.mxu1 %v5423_v13 }
 0xdbc   :  { %3081 = vmatpush1.bf16.msra.mxu0 %v5426_v18  ;;  %3122 = vmatpush1.bf16.msra.mxu1 %v5429_v40 }
 0xdbd   :  { %3082 = vmatprep.subr.bf16.mxu0 %v5432_v32  ;;  %3123 = vmatprep.subr.bf16.mxu1 %v5435_v23 }
 0xdc0   :  { %3083 = vmatpush1.bf16.msra.mxu0 %v5438_v7  ;;  %3124 = vmatpush1.bf16.msra.mxu1 %v5441_v59 }
 0xdc1   :  { %3084 = vmatprep.subr.bf16.mxu0 %v5444_v22  ;;  %3125 = vmatprep.subr.bf16.mxu1 %v5447_v60 }
 0xdc4   :  { %3085 = vmatpush1.bf16.msra.mxu0 %v5450_v61  ;;  %3126 = vmatpush1.bf16.msra.mxu1 %v5453_v62 }
 0xdc5   :  { %3086 = vmatprep.subr.bf16.mxu0 %v5456_v63  ;;  %3127 = vmatprep.subr.bf16.mxu1 %v5459_v1 }
 0xdc8   :  { %3087 = vmatpush1.bf16.msra.mxu0 %v5462_v2  ;;  %3128 = vmatpush1.bf16.msra.mxu1 %v5465_v5 }
 0xdc9   :  { %3088 = vmatprep.subr.bf16.mxu0 %v5468_v6  ;;  %3129 = vmatprep.subr.bf16.mxu1 %v5471_v33 }
 0xdcc   :  { %3089 = vmatpush1.bf16.msra.mxu0 %v5474_v19  ;;  %3130 = vmatpush1.bf16.msra.mxu1 %v5477_v27 }
 0xdcd   :  { %3194 = vmatprep.subr.bf16.mxu0 %v5370_v21  ;;  %3235 = vmatprep.subr.bf16.mxu1 %v5373_v53  ;;  %v5689_v53 = vld [vmem:[#allocation32_spill] sm:$0xff] }
 0xdce   :  { %v2144_v16 = vadd.f32 %v5689_v53, %v5189_v24 }
 0xe6f   :  { %v2988_v46 = vpop.f32.mrf.mxu0  ;;  %v3029_v10 = vpop.f32.mrf.mxu1 }
 0xe70   :  { %v3036_v20 = vadd.f32 %v2988_v46, %v2069_v48  ;;  %v3038_v31 = vadd.f32 %v3029_v10, %v2142_v39  ;;  %v3956_v39 = vld [vmem:[%s5605_s7 + $0x30] sm:$0xff]  }
 0xe71   :  { %v2990_v41 = vpop.f32.mrf.mxu0  ;;  %v3031_v50 = vpop.f32.mrf.mxu1 }
 0xe72   :  { %v3689_v43 = vmul.f32 -1.442695, %v3036_v20  ;;  %v3037_v51 = vadd.f32 %v2990_v41, %v2071_v3  ;;  %v3039_v0 = vadd.f32 %v3031_v50, %v2144_v16 }
 0xe73   :  { %v2992_v54 = vpop.f32.mrf.mxu0  ;;  %v3033_v35 = vpop.f32.mrf.mxu1 }
 0xe74   :  { %4174 = vpow2.f32 %v3689_v43  ;;  %v3690_v15 = vmul.f32 -1.442695, %v3037_v51  ;;  %v3691_v58 = vmul.f32 -1.442695, %v3039_v0 }
 0xe75   :  { %v2993_v21 = vpop.f32.mrf.mxu0  ;;  %v3034_v45 = vpop.f32.mrf.mxu1 }
 0xe76   :  { %4176 = vpow2.f32 %v3690_v15 }
 0xe77   :  { %4178 = vtanh.f32 %v3038_v31 }
 0xe78   :  { %4180 = vpow2.f32 %v3691_v58  ;;  %v3955_v58 = vld [vmem:[#allocation3] sm:$0xff]  }
 0xe81   :  { %v4175_v57 = vpop.eup %4174 }
 0xe82   :  { %v3043_v49 = vadd.f32 1.0, %v4175_v57  ;;  %v3957_v57 = vld [vmem:[%s5605_s7 + $0x28] sm:$0xff]  }
 0xe83   :  { %v4177_v12 = vpop.eup %4176 }
 0xe84   :  { %4182 = vrcp.f32 %v3043_v49  ;;  %v3049_v44 = vadd.f32 1.0, %v4177_v12  ;;  %v4179_v26 = vpop.eup %4178  ;;  %v3958_v49 = vld [vmem:[%s5605_s7 + $0x20] sm:$0xff]   ;;  %v3959_v12 = vld [vmem:[%s5605_s7 + $0x18] sm:$0xff]  }
 0xe85   :  { %v4181_v9 = vpop.eup %4180 }
 0xe86   :  { %4184 = vrcp.f32 %v3049_v44  ;;  %v3056_v3 = vadd.f32 1.0, %v4181_v9  ;;  %v3960_v44 = vld [vmem:[%s5605_s7 + $0x10] sm:$0xff]   ;;  %v3962_v9 = vld [vmem:[%s5605_s7] sm:$0xff]  }
 0xe88   :  { %4186 = vrcp.f32 %v3056_v3 }
 0xe91   :  { %v4183_v48 = vpop.eup %4182 }
 0xe92   :  { %v3060_v46 = vmul.f32 %v4183_v48, %v4179_v26  ;;  %v3961_v26 = vld [vmem:[%s5605_s7 + $0x8] sm:$0xff]  }
 0xe93   :  { %v4185_v14 = vpop.eup %4184  ;;  %v3963_v48 = vld [vmem:[#allocation3 + $0x8] sm:$0xff]  }
 0xe94   :  { %v3059_v20 = vmul.f32 %v4185_v14, %v5385_v4  ;;  %v5691_v4 = vld [vmem:[#allocation31_spill] sm:$0xff]  ;;  %v5695_v14 = vld [vmem:[#allocation16_spill] sm:$0xff] }
 0xe95   :  { %v4187_v10 = vpop.eup %4186  ;;  %v2079_v3 = vadd.f32 %v5695_v14, %v5171_v55 }
 0xe96   :  { %v5491_v41 = vadd.f32 %v3060_v46, %v3059_v20 }
 0xe98   :  { %4188 = vtanh.f32 %v5491_v41 }
 0xea5   :  { %v4189_v50 = vpop.eup %4188 }
 0xea6   :  { %v3063_v43 = vmul.f32 %v4189_v50, %v4187_v10  ;;  %v5696_v10 = vld [vmem:[#allocation35_spill] sm:$0xff] }
 0xea7   :  { %v2081_v50 = vadd.f32 %v5696_v10, %v5179_v30 }
 0xea8   :  { %v3064_v51 = vpack.c.bf16 %v3063_v43, %v3063_v43 }
 0xeaa   :  { %3067 = vst [vmem:[#allocation3 + $0x14] sm:$0xf] %v3064_v51  ;;  %3066 = vst [vmem:[#allocation4] sm:$0xf] %v3064_v51 }
 0xeb1   :  { %v3068_v54 = vld [vmem:[#allocation4] sm:$0xf]  ;;  %v3964_v46 = vld [vmem:[#allocation3 + $0x10] sm:$0xff]  }
 0xeb2   :  { %3107 = vmatmul.mubr.bf16.vlgmr.msra.gmra.mxu0 %v3068_v54  ;;  %3148 = vmatmul.mubr.bf16.vlgmr.msra.gmra.mxu1 %v3068_v54 }
 0xeb3   :  { %3195 = vmatpush1.bf16.msra.mxu0 %v5388_v11  ;;  %3236 = vmatpush1.bf16.msra.mxu1 %v5391_v42  ;;  %v2075_v11 = vadd.f32 %v5691_v4, %v5171_v55 }
 0xeb4   :  { %3196 = vmatprep.subr.bf16.mxu0 %v5394_v36  ;;  %3237 = vmatprep.subr.bf16.mxu1 %v5397_v8  ;;  %v5692_v8 = vld [vmem:[#allocation24_spill] sm:$0xff] }
 0xeb5   :  { %3226 = vmatprep.mubr.bf16.mxu0 %v5634_v37  ;;  %3267 = vmatprep.mubr.bf16.mxu1 %v5634_v37  ;;  %v3954_v37 = vld [vmem:[%s5605_s7 + $0x38] sm:$0xff]  }
 0xeb7   :  { %3197 = vmatpush1.bf16.msra.mxu0 %v5402_v17  ;;  %3238 = vmatpush1.bf16.msra.mxu1 %v5405_v25  ;;  %v2077_v17 = vadd.f32 %v5692_v8, %v5179_v30 }
 0xeb8   :  { %3198 = vmatprep.subr.bf16.mxu0 %v5408_v56  ;;  %3239 = vmatprep.subr.bf16.mxu1 %v5411_v29 }
 0xebb   :  { %3199 = vmatpush1.bf16.msra.mxu0 %v5414_v52  ;;  %3240 = vmatpush1.bf16.msra.mxu1 %v5417_v28 }
 0xebc   :  { %3200 = vmatprep.subr.bf16.mxu0 %v5420_v38  ;;  %3241 = vmatprep.subr.bf16.mxu1 %v5423_v13 }
 0xebf   :  { %3201 = vmatpush1.bf16.msra.mxu0 %v5426_v18  ;;  %3242 = vmatpush1.bf16.msra.mxu1 %v5429_v40 }
 0xec0   :  { %3202 = vmatprep.subr.bf16.mxu0 %v5432_v32  ;;  %3243 = vmatprep.subr.bf16.mxu1 %v5435_v23  ;;  %v5693_v23 = vld [vmem:[#allocation33_spill] sm:$0xff] }
 0xec3   :  { %3203 = vmatpush1.bf16.msra.mxu0 %v5438_v7  ;;  %3244 = vmatpush1.bf16.msra.mxu1 %v5441_v59  ;;  %v2150_v7 = vadd.f32 %v5693_v23, %v5189_v24 }
 0xec4   :  { %3204 = vmatprep.subr.bf16.mxu0 %v5444_v22  ;;  %3245 = vmatprep.subr.bf16.mxu1 %v5447_v60  ;;  %v5694_v22 = vld [vmem:[#allocation23_spill] sm:$0xff] }
 0xec5   :  { %v2148_v60 = vadd.f32 %v5694_v22, %v5194_v47 }
 0xec7   :  { %3205 = vmatpush1.bf16.msra.mxu0 %v5450_v61  ;;  %3246 = vmatpush1.bf16.msra.mxu1 %v5453_v62 }
 0xec8   :  { %3206 = vmatprep.subr.bf16.mxu0 %v5456_v63  ;;  %3247 = vmatprep.subr.bf16.mxu1 %v5459_v1 }
 0xecb   :  { %3207 = vmatpush1.bf16.msra.mxu0 %v5462_v2  ;;  %3248 = vmatpush1.bf16.msra.mxu1 %v5465_v5 }
 0xecc   :  { %3208 = vmatprep.subr.bf16.mxu0 %v5468_v6  ;;  %3249 = vmatprep.subr.bf16.mxu1 %v5471_v33 }
 0xecf   :  { %3209 = vmatpush1.bf16.msra.mxu0 %v5474_v19  ;;  %3250 = vmatpush1.bf16.msra.mxu1 %v5477_v27 }
 0xed0   :  { %3723 = vmatprep.subr.bf16.mxu0 %v3954_v37 }
 0xf72   :  { %v3108_v42 = vpop.f32.mrf.mxu0  ;;  %v3149_v36 = vpop.f32.mrf.mxu1 }
 0xf73   :  { %v3156_v25 = vadd.f32 %v3108_v42, %v2075_v11  ;;  %v3158_v61 = vadd.f32 %v3149_v36, %v2148_v60 }
 0xf74   :  { %v3110_v56 = vpop.f32.mrf.mxu0  ;;  %v3151_v29 = vpop.f32.mrf.mxu1 }
 0xf75   :  { %v3692_v52 = vmul.f32 -1.442695, %v3156_v25  ;;  %v3157_v28 = vadd.f32 %v3110_v56, %v2077_v17  ;;  %v3159_v59 = vadd.f32 %v3151_v29, %v2150_v7  ;;  %v5697_v25 = vld [vmem:[#allocation36_spill] sm:$0xff]  ;;  %v5698_v29 = vld [vmem:[#allocation34_spill] sm:$0xff] }
 0xf76   :  { %v3112_v38 = vpop.f32.mrf.mxu0  ;;  %v3153_v13 = vpop.f32.mrf.mxu1  ;;  %v2154_v55 = vadd.f32 %v5697_v25, %v5189_v24 }
 0xf77   :  { %4190 = vpow2.f32 %v3692_v52  ;;  %v3693_v18 = vmul.f32 -1.442695, %v3157_v28  ;;  %v3694_v62 = vmul.f32 -1.442695, %v3159_v59  ;;  %v2152_v52 = vadd.f32 %v5698_v29, %v5194_v47 }
 0xf78   :  { %v3113_v40 = vpop.f32.mrf.mxu0  ;;  %v3154_v32 = vpop.f32.mrf.mxu1 }
 0xf79   :  { %4192 = vpow2.f32 %v3693_v18  ;;  %v3698_v32 = vld [vmem:[%s5606_s8] ss:$0 sm:$0xff] }
 0xf7a   :  { %4194 = vtanh.f32 %v3158_v61 }
 0xf7b   :  { %4196 = vpow2.f32 %v3694_v62 }
 0xf84   :  { %v4191_v63 = vpop.eup %4190 }
 0xf85   :  { %v3163_v1 = vadd.f32 1.0, %v4191_v63 }
 0xf86   :  { %v4193_v2 = vpop.eup %4192 }
 0xf87   :  { %4198 = vrcp.f32 %v3163_v1  ;;  %v3169_v5 = vadd.f32 1.0, %v4193_v2  ;;  %v4195_v6 = vpop.eup %4194 }
 0xf88   :  { %v4197_v33 = vpop.eup %4196 }
 0xf89   :  { %4200 = vrcp.f32 %v3169_v5  ;;  %v3176_v15 = vadd.f32 1.0, %v4197_v33 }
 0xf8b   :  { %4202 = vrcp.f32 %v3176_v15 }
 0xf94   :  { %v4199_v19 = vpop.eup %4198 }
 0xf95   :  { %v3180_v27 = vmul.f32 %v4199_v19, %v4195_v6 }
 0xf96   :  { %v4201_v35 = vpop.eup %4200 }
 0xf97   :  { %v3179_v21 = vmul.f32 %v4201_v35, %v5491_v41 }
 0xf98   :  { %v4203_v53 = vpop.eup %4202 }
 0xf99   :  { %v5538_v45 = vadd.f32 %v3180_v27, %v3179_v21 }
 0xf9b   :  { %4204 = vtanh.f32 %v5538_v45 }
 0xfa8   :  { %v4205_v16 = vpop.eup %4204 }
 0xfa9   :  { %v3183_v0 = vmul.f32 %v4205_v16, %v4203_v53 }
 0xfab   :  { %v3184_v34 = vpack.c.bf16 %v3183_v0, %v3183_v0 }
 0xfad   :  { %3187 = vst [vmem:[#allocation3 + $0x18] sm:$0xf] %v3184_v34  ;;  %3186 = vst [vmem:[#allocation4] sm:$0xf] %v3184_v34 }
 0xfb4   :  { %v3188_v31 = vld [vmem:[#allocation4] sm:$0xf] }
 0xfb5   :  { %3227 = vmatmul.mubr.bf16.vlgmr.msra.gmra.mxu0 %v3188_v31  ;;  %3268 = vmatmul.mubr.bf16.vlgmr.msra.gmra.mxu1 %v3188_v31 }
 0xfb6   :  { %3724 = vmatpush3.bf16.msra.mxu0 %v3954_v37  ;;  %3739 = vmatprep.mubr.bf16.mxu0 %v3955_v58 }
 0xfb7   :  { %3725 = vmatprep.subr.bf16.mxu0 %v3956_v39 }
 0xfba   :  { %3726 = vmatpush3.bf16.msra.mxu0 %v3956_v39 }
 0xfbb   :  { %3727 = vmatprep.subr.bf16.mxu0 %v3957_v57 }
 0xfbe   :  { %3728 = vmatpush3.bf16.msra.mxu0 %v3957_v57 }
 0xfbf   :  { %3729 = vmatprep.subr.bf16.mxu0 %v3958_v49 }
 0xfc2   :  { %3730 = vmatpush3.bf16.msra.mxu0 %v3958_v49 }
 0xfc3   :  { %3731 = vmatprep.subr.bf16.mxu0 %v3959_v12 }
 0xfc6   :  { %3732 = vmatpush3.bf16.msra.mxu0 %v3959_v12 }
 0xfc7   :  { %3733 = vmatprep.subr.bf16.mxu0 %v3960_v44 }
 0xfca   :  { %3734 = vmatpush3.bf16.msra.mxu0 %v3960_v44 }
 0xfcb   :  { %3735 = vmatprep.subr.bf16.mxu0 %v3961_v26 }
 0xfce   :  { %3736 = vmatpush3.bf16.msra.mxu0 %v3961_v26 }
 0xfcf   :  { %3737 = vmatprep.subr.bf16.mxu0 %v3962_v9 }
 0xfd2   :  { %3738 = vmatpush3.bf16.msra.mxu0 %v3962_v9 }
 0xfd5   :  { %3740 = vmatmul.mubr.bf16.vlgmr.msra.gmra.mxu0 %v3963_v48 }
 0xfd6   :  { %3743 = vmatprep.mubr.bf16.mxu0 %v3964_v46 }
0x1075   :  { %v3228_v20 = vpop.f32.mrf.mxu0  ;;  %v3269_v41 = vpop.f32.mrf.mxu1 }
0x1076   :  { %v3276_v43 = vadd.f32 %v3228_v20, %v2079_v3  ;;  %v3278_v30 = vadd.f32 %v3269_v41, %v2152_v52 }
0x1077   :  { %v3230_v51 = vpop.f32.mrf.mxu0  ;;  %v3271_v54 = vpop.f32.mrf.mxu1 }
0x1078   :  { %v3695_v37 = vmul.f32 -1.442695, %v3276_v43  ;;  %v3277_v4 = vadd.f32 %v3230_v51, %v2081_v50  ;;  %v3279_v56 = vadd.f32 %v3271_v54, %v2154_v55 }
0x1079   :  { %v3232_v11 = vpop.f32.mrf.mxu0  ;;  %v3273_v42 = vpop.f32.mrf.mxu1 }
0x107a   :  { %4206 = vpow2.f32 %v3695_v37  ;;  %v3696_v36 = vmul.f32 -1.442695, %v3277_v4  ;;  %v3697_v28 = vmul.f32 -1.442695, %v3279_v56 }
0x107b   :  { %v3233_v8 = vpop.f32.mrf.mxu0  ;;  %v3274_v17 = vpop.f32.mrf.mxu1 }
0x107c   :  { %4208 = vpow2.f32 %v3696_v36 }
0x107d   :  { %4210 = vtanh.f32 %v3278_v30 }
0x107e   :  { %4212 = vpow2.f32 %v3697_v28 }
0x1087   :  { %v4207_v38 = vpop.eup %4206 }
0x1088   :  { %v3283_v13 = vadd.f32 1.0, %v4207_v38 }
0x1089   :  { %v4209_v18 = vpop.eup %4208 }
0x108a   :  { %4214 = vrcp.f32 %v3283_v13  ;;  %v3289_v40 = vadd.f32 1.0, %v4209_v18  ;;  %v4211_v23 = vpop.eup %4210 }
0x108b   :  { %v4213_v7 = vpop.eup %4212 }
0x108c   :  { %4216 = vrcp.f32 %v3289_v40  ;;  %v3296_v63 = vadd.f32 1.0, %v4213_v7 }
0x108e   :  { %4218 = vrcp.f32 %v3296_v63 }
0x1095   :  { %v3741_v24 = vpop.f32.mrf.mxu0 }
0x1096   :  { %v3454_v59 = vadd.f32 %v3741_v24, %v3698_v32 }
0x1097   :  { %v4215_v22 = vpop.eup %4214  ;;  %v3445_v47 = vpop.f32.mrf.mxu0 }
0x1098   :  { %v3300_v60 = vmul.f32 %v4215_v22, %v4211_v23  ;;  %3478 = vst [vmem:[%s5607_s9 + $0x10] sm:$0xff] %v3454_v59  ;;  %v3446_v61 = vadd.f32 %v3698_v32, %v3445_v47 }
0x1099   :  { %v4217_v62 = vpop.eup %4216  ;;  %v3742_v1 = vpop.f32.mrf.mxu0 }
0x109a   :  { %v3299_v2 = vmul.f32 %v4217_v62, %v5538_v45  ;;  %3476 = vst [vmem:[%s5607_s9] sm:$0xff] %v3446_v61  ;;  %v3457_v5 = vadd.f32 %v3742_v1, %v3698_v32 }
0x109b   :  { %v3448_v6 = vpop.f32.mrf.mxu0  ;;  %v4219_v27 = vpop.eup %4218 }
0x109c   :  { %v3301_v33 = vadd.f32 %v3300_v60, %v3299_v2  ;;  %3479 = vst [vmem:[%s5607_s9 + $0x18] sm:$0xff] %v3457_v5  ;;  %v3449_v19 = vadd.f32 %v3698_v32, %v3448_v6 }
0x109e   :  { %4220 = vtanh.f32 %v3301_v33  ;;  %3477 = vst [vmem:[%s5607_s9 + $0x8] sm:$0xff] %v3449_v19 }
0x10ab   :  { %v4221_v35 = vpop.eup %4220 }
0x10ac   :  { %v3303_v15 = vmul.f32 %v4221_v35, %v4219_v27 }
0x10ae   :  { %v3304_v21 = vpack.c.bf16 %v3303_v15, %v3303_v15 }
0x10b0   :  { %3306 = vst [vmem:[#allocation4] sm:$0xf] %v3304_v21  ;;  %3307 = vst [vmem:[#allocation3 + $0x1c] sm:$0xf] %v3304_v21 }
0x10b7   :  { %v3965_v45 = vld [vmem:[#allocation3 + $0x18] sm:$0xff]  }
0x10b8   :  { %3744 = vmatmul.mubr.bf16.gmra.mxu0 %v3965_v45 }
0x1178   :  { %v3745_v53 = vpop.f32.mrf.mxu0 }
0x1179   :  { %v3470_v16 = vadd.f32 %v3745_v53, %v3698_v32 }
0x117a   :  { %v3461_v0 = vpop.f32.mrf.mxu0 }
0x117b   :  { %3482 = vst [vmem:[%s5607_s9 + $0x30] sm:$0xff] %v3470_v16  ;;  %v3462_v34 = vadd.f32 %v3698_v32, %v3461_v0 }
0x117c   :  { %v3746_v39 = vpop.f32.mrf.mxu0 }
0x117d   :  { %3480 = vst [vmem:[%s5607_s9 + $0x20] sm:$0xff] %v3462_v34  ;;  %v3473_v31 = vadd.f32 %v3746_v39, %v3698_v32 }
0x117e   :  { %v3464_v58 = vpop.f32.mrf.mxu0 }
0x117f   :  { %3483 = vst [vmem:[%s5607_s9 + $0x38] sm:$0xff] %v3473_v31  ;;  %v3465_v57 = vadd.f32 %v3698_v32, %v3464_v58 }
0x1181   :  { %3481 = vst [vmem:[%s5607_s9 + $0x28] sm:$0xff] %v3465_v57 }
0x1182   :  { %3488 = vsyncpa [#allocation7], 1 }
0x1183   :  { %3489 = vsyncpa [#allocation9], 1 }
0x1184   :  { %3490 = vsyncpa [#allocation12], 1 }

</bundles_post_ra>
